<compile_context>
chip_gen: v5e
topology: v5e:2x2
jax: 0.10.0
libtpu: 0.0.40
codegen_flags: <defaults>
</compile_context>

<pallas_src>
import jax
import jax.numpy as jnp
from jax.experimental import pallas as pl
from jax.experimental.pallas import tpu as pltpu

NFEAT = 512       # s/r/o feature dim (pinned by the module's 768/640 constants)
NHID = 512        # nhidden
NPROJ = 128       # FC(nhidden, 128) projection dim
MAX_TILE_B = 256  # batch tile (rows streamed per grid step)
SUBLANE = 16      # bf16 sublane packing; batch tiles are multiples of this


def _round_up(x, m):
    return ((x + m - 1) // m) * m


def _iterative_structure_kernel(
    sf_ref, rf_ref, of_ref,                 # [tb, 512] bf16 activation tiles
    w_spo_ref, b_spo_ref,                   # [512, 128] bf16, [1, 128] f32
    w_p_ref, b_p_ref,                       # [512, 128] bf16, [1, 128] f32
    w_fcp_so_ref, w_fcp_r_ref, b_fcp_ref,   # [256, 512], [512, 512] bf16, [1, 512] f32
    w_lin_ref, b_lin_ref,                   # [640, 512] bf16, [1, 512] f32
    out_s_ref, out_r_ref, out_o_ref,        # [tb, 512] f32 output tiles
):
    f32 = jnp.float32
    sf = sf_ref[...]
    rf = rf_ref[...]
    of = of_ref[...]
    tb = sf.shape[0]

    # --- projections: s/o share W_spo -> one stacked matmul ([sf; of]) ------
    so = jnp.dot(jnp.concatenate([sf, of], axis=0), w_spo_ref[...],
                 preferred_element_type=f32) + b_spo_ref[...]
    so = jnp.maximum(so, 0.0).astype(sf.dtype)
    s = so[:tb]
    o = so[tb:]

    r = jnp.maximum(
        jnp.dot(rf, w_p_ref[...], preferred_element_type=f32) + b_p_ref[...], 0.0
    ).astype(rf.dtype)

    # --- out_r = relu(cat([s, r_feature, o]) @ W_fcp + b_fcp) ---------------
    # W_fcp was permuted host-side so the s-rows and o-rows are contiguous:
    #   w_fcp_so = concat(W_fcp[0:128], W_fcp[640:768])  (one K=256 matmul)
    #   w_fcp_r  = W_fcp[128:640]
    out_r = (
        jnp.dot(jnp.concatenate([s, o], axis=1), w_fcp_so_ref[...],
                preferred_element_type=f32)
        + jnp.dot(rf, w_fcp_r_ref[...], preferred_element_type=f32)
        + b_fcp_ref[...]
    )
    out_r_ref[...] = jnp.maximum(out_r, 0.0).astype(out_r_ref.dtype)

    # --- out_s = relu(cat([s_feature, r]) @ W_lin + b_lin) ------------------
    # Concats are expressed as matmul splits over sublane-aligned W_lin row
    # slices (0:512 / 512:640), so no 640-wide activation copy is built.
    out_s = (
        jnp.dot(sf, w_lin_ref[0:NFEAT, :], preferred_element_type=f32)
        + jnp.dot(r, w_lin_ref[NFEAT:NFEAT + NPROJ, :], preferred_element_type=f32)
        + b_lin_ref[...]
    )
    out_s_ref[...] = jnp.maximum(out_s, 0.0).astype(out_s_ref.dtype)

    # --- out_o = relu(cat([r, o_feature]) @ W_lin + b_lin) ------------------
    out_o = (
        jnp.dot(r, w_lin_ref[0:NPROJ, :], preferred_element_type=f32)
        + jnp.dot(of, w_lin_ref[NPROJ:NPROJ + NFEAT, :], preferred_element_type=f32)
        + b_lin_ref[...]
    )
    out_o_ref[...] = jnp.maximum(out_o, 0.0).astype(out_o_ref.dtype)


def prepare_params(params, dtype=jnp.bfloat16):
    """Cast weights to bf16 and pre-permute W_fcp so the s/o rows are contiguous.

    Do this once at model-load time (not per forward call).
    """
    w_fcp = params["w_fcp"]
    w_fcp_so = jnp.concatenate(
        [w_fcp[0:NPROJ, :], w_fcp[NPROJ + NFEAT:NPROJ + NFEAT + NPROJ, :]], axis=0)
    w_fcp_r = w_fcp[NPROJ:NPROJ + NFEAT, :]
    f32 = jnp.float32
    return {
        "w_spo": params["w_spo"].astype(dtype),
        "b_spo": params["b_spo"].astype(f32),
        "w_p": params["w_p"].astype(dtype),
        "b_p": params["b_p"].astype(f32),
        "w_fcp_so": w_fcp_so.astype(dtype),
        "w_fcp_r": w_fcp_r.astype(dtype),
        "b_fcp": params["b_fcp"].astype(f32),
        "w_lin": params["w_lin"].astype(dtype),
        "b_lin": params["b_lin"].astype(f32),
    }


def iterative_structure(s_feature, r_feature, o_feature, prepared, *,
                        max_tile_b=MAX_TILE_B):
    """Pallas wrapper: batch grid streams activation tiles; weights stay in VMEM."""
    B = s_feature.shape[0]
    compute_dtype = prepared["w_spo"].dtype

    tb = min(max_tile_b, _round_up(B, SUBLANE))
    Bp = _round_up(B, tb)
    grid = (Bp // tb,)

    def pad_cast(x):
        x = x.astype(compute_dtype)
        if Bp != B:
            x = jnp.pad(x, ((0, Bp - B), (0, 0)))
        return x

    sf = pad_cast(s_feature)
    rf = pad_cast(r_feature)
    of = pad_cast(o_feature)

    act_spec = pl.BlockSpec((tb, NFEAT), lambda i: (i, 0))
    out_spec = pl.BlockSpec((tb, NHID), lambda i: (i, 0))

    def const_spec(arr):
        # Full-array block, constant index -> DMA'd once, resident across grid steps.
        return pl.BlockSpec(arr.shape, lambda i: (0, 0))

    param_order = ("w_spo", "b_spo", "w_p", "b_p",
                   "w_fcp_so", "w_fcp_r", "b_fcp", "w_lin", "b_lin")
    in_specs = [act_spec, act_spec, act_spec] + [
        const_spec(prepared[k]) for k in param_order]

    out_shape = tuple(
        jax.ShapeDtypeStruct((Bp, NHID), jnp.float32) for _ in range(3))

    # Advisory cost hint for XLA's scheduler (per full call).
    flops = 2 * Bp * (3 * NFEAT * NPROJ + (2 * NPROJ + NFEAT) * NHID
                      + 2 * (NFEAT + NPROJ) * NHID)
    bytes_accessed = (3 * Bp * NFEAT * 2 + 3 * Bp * NHID * 4
                      + sum(int(prepared[k].size) * prepared[k].dtype.itemsize
                            for k in param_order))

    fn = pl.pallas_call(
        _iterative_structure_kernel,
        grid=grid,
        in_specs=in_specs,
        out_specs=(out_spec, out_spec, out_spec),
        out_shape=out_shape,
        compiler_params=pltpu.CompilerParams(
            dimension_semantics=("parallel",),   # shard batch tiles across TCs (v7x)
            vmem_limit_bytes=32 << 20,           # ~11 MB footprint at tb=256; safe on v5e/v6e/v7x
        ),
        cost_estimate=pl.CostEstimate(
            flops=flops, transcendentals=0, bytes_accessed=bytes_accessed),
    )
    out_s, out_r, out_o = fn(sf, rf, of, *[prepared[k] for k in param_order])
    if Bp != B:
        out_s, out_r, out_o = out_s[:B], out_r[:B], out_o[:B]
    return out_s, out_r, out_o


def init_params(key):
    """Deterministic synthetic parameters (shapes from the module's __init__), f32."""
    ks = jax.random.split(key, 8)
    scale = 0.02
    return {
        # linear_s_p_o: FC(512, 128)
        "w_spo": scale * jax.random.normal(ks[0], (NFEAT, NPROJ), jnp.float32),
        "b_spo": scale * jax.random.normal(ks[1], (1, NPROJ), jnp.float32),
        # linear_p: FC(512, 128)
        "w_p": scale * jax.random.normal(ks[2], (NFEAT, NPROJ), jnp.float32),
        "b_p": scale * jax.random.normal(ks[3], (1, NPROJ), jnp.float32),
        # fc_p: FC(768, 512)
        "w_fcp": scale * jax.random.normal(ks[4], (NPROJ + NFEAT + NPROJ, NHID), jnp.float32),
        "b_fcp": scale * jax.random.normal(ks[5], (1, NHID), jnp.float32),
        # linear: FC(640, 512)
        "w_lin": scale * jax.random.normal(ks[6], (NFEAT + NPROJ, NHID), jnp.float32),
        "b_lin": scale * jax.random.normal(ks[7], (1, NHID), jnp.float32),
    }


def _reference(sf, rf, of, p):
    relu = lambda x: jnp.maximum(x, 0.0)
    s = relu(sf @ p["w_spo"] + p["b_spo"])
    o = relu(of @ p["w_spo"] + p["b_spo"])
    out_r = relu(jnp.concatenate([s, rf, o], axis=1) @ p["w_fcp"] + p["b_fcp"])
    r = relu(rf @ p["w_p"] + p["b_p"])
    out_s = relu(jnp.concatenate([sf, r], axis=1) @ p["w_lin"] + p["b_lin"])
    out_o = relu(jnp.concatenate([r, of], axis=1) @ p["w_lin"] + p["b_lin"])
    return out_s, out_r, out_o


def _check(outs, refs, tag):
    for name, a, b in zip(("out_s", "out_r", "out_o"), outs, refs):
        err = float(jnp.max(jnp.abs(a - b)))
        assert jnp.allclose(a, b, atol=3e-2, rtol=3e-2), f"{tag} {name} max|err|={err}"


if __name__ == "__main__":
    key = jax.random.PRNGKey(0)
    k_s, k_r, k_o, k_p = jax.random.split(key, 4)
    params = init_params(k_p)
    prepared = prepare_params(params)   # bf16 weights, W_fcp pre-permuted (done once)

    # Case 1: small batch (module spec: batch x 512 features), single grid step.
    B = 8
    s_feature = jax.random.normal(k_s, (B, NFEAT), jnp.float32)
    r_feature = jax.random.normal(k_r, (B, NFEAT), jnp.float32)
    o_feature = jax.random.normal(k_o, (B, NFEAT), jnp.float32)

    outs = iterative_structure(s_feature, r_feature, o_feature, prepared)
    jax.block_until_ready(outs)
    _check(outs, _reference(s_feature, r_feature, o_feature, params), "B=8")

    # Case 2: exercise the multi-step grid + ragged-batch padding path.
    B2 = 40
    ks2 = jax.random.split(jax.random.PRNGKey(1), 3)
    sf2 = jax.random.normal(ks2[0], (B2, NFEAT), jnp.float32)
    rf2 = jax.random.normal(ks2[1], (B2, NFEAT), jnp.float32)
    of2 = jax.random.normal(ks2[2], (B2, NFEAT), jnp.float32)
    outs2 = iterative_structure(sf2, rf2, of2, prepared, max_tile_b=16)
    jax.block_until_ready(outs2)
    _check(outs2, _reference(sf2, rf2, of2, params), "B=40")

    print("KERNEL_OK")
</pallas_src>

<mosaic_0001>
module attributes {stable_mosaic.version = 11 : i64} {
  func.func @_iterative_structure_kernel(%arg0: i32, %arg1: memref<16x512xbf16, #tpu.memory_space<vmem>>, %arg2: memref<16x512xbf16, #tpu.memory_space<vmem>>, %arg3: memref<16x512xbf16, #tpu.memory_space<vmem>>, %arg4: memref<512x128xbf16, #tpu.memory_space<vmem>>, %arg5: memref<1x128xf32, #tpu.memory_space<vmem>>, %arg6: memref<512x128xbf16, #tpu.memory_space<vmem>>, %arg7: memref<1x128xf32, #tpu.memory_space<vmem>>, %arg8: memref<256x512xbf16, #tpu.memory_space<vmem>>, %arg9: memref<512x512xbf16, #tpu.memory_space<vmem>>, %arg10: memref<1x512xf32, #tpu.memory_space<vmem>>, %arg11: memref<640x512xbf16, #tpu.memory_space<vmem>>, %arg12: memref<1x512xf32, #tpu.memory_space<vmem>>, %arg13: memref<16x512xf32, #tpu.memory_space<vmem>>, %arg14: memref<16x512xf32, #tpu.memory_space<vmem>>, %arg15: memref<16x512xf32, #tpu.memory_space<vmem>>) attributes {dimension_semantics = [#tpu.dimension_semantics<parallel>], iteration_bounds = array<i64: 1>, scalar_prefetch = 0 : i64, scratch_operands = 0 : i64, tpu.core_type = #tpu.core_type<tc>, window_params = [{transform_indices = @transform_0, window_bounds = array<i64: 16, 512>}, {transform_indices = @transform_1, window_bounds = array<i64: 16, 512>}, {transform_indices = @transform_2, window_bounds = array<i64: 16, 512>}, {pipeline_mode = #tpu.pipeline_mode<synchronous>, transform_indices = @transform_3, window_bounds = array<i64: 512, 128>}, {pipeline_mode = #tpu.pipeline_mode<synchronous>, transform_indices = @transform_4, window_bounds = array<i64: 1, 128>}, {pipeline_mode = #tpu.pipeline_mode<synchronous>, transform_indices = @transform_5, window_bounds = array<i64: 512, 128>}, {pipeline_mode = #tpu.pipeline_mode<synchronous>, transform_indices = @transform_6, window_bounds = array<i64: 1, 128>}, {pipeline_mode = #tpu.pipeline_mode<synchronous>, transform_indices = @transform_7, window_bounds = array<i64: 256, 512>}, {pipeline_mode = #tpu.pipeline_mode<synchronous>, transform_indices = @transform_8, window_bounds = array<i64: 512, 512>}, {pipeline_mode = #tpu.pipeline_mode<synchronous>, transform_indices = @transform_9, window_bounds = array<i64: 1, 512>}, {pipeline_mode = #tpu.pipeline_mode<synchronous>, transform_indices = @transform_10, window_bounds = array<i64: 640, 512>}, {pipeline_mode = #tpu.pipeline_mode<synchronous>, transform_indices = @transform_11, window_bounds = array<i64: 1, 512>}, {transform_indices = @transform_12, window_bounds = array<i64: 16, 512>}, {transform_indices = @transform_13, window_bounds = array<i64: 16, 512>}, {transform_indices = @transform_14, window_bounds = array<i64: 16, 512>}]} {
    %c0 = arith.constant 0 : index
    %c0_0 = arith.constant 0 : index
    %0 = vector.load %arg1[%c0, %c0_0] : memref<16x512xbf16, #tpu.memory_space<vmem>>, vector<16x512xbf16>
    %c0_1 = arith.constant 0 : index
    %c0_2 = arith.constant 0 : index
    %1 = vector.load %arg2[%c0_1, %c0_2] : memref<16x512xbf16, #tpu.memory_space<vmem>>, vector<16x512xbf16>
    %c0_3 = arith.constant 0 : index
    %c0_4 = arith.constant 0 : index
    %2 = vector.load %arg3[%c0_3, %c0_4] : memref<16x512xbf16, #tpu.memory_space<vmem>>, vector<16x512xbf16>
    %3 = tpu.concatenate %0, %2 in 0 : vector<16x512xbf16>, vector<16x512xbf16> -> vector<32x512xbf16>
    %c0_5 = arith.constant 0 : index
    %c0_6 = arith.constant 0 : index
    %4 = vector.load %arg4[%c0_5, %c0_6] : memref<512x128xbf16, #tpu.memory_space<vmem>>, vector<512x128xbf16>
    %cst = arith.constant dense<0.000000e+00> : vector<32x128xf32>
    %5 = tpu.matmul %3, %4, %cst {dimension_numbers = #tpu.dot_dimension_numbers<[1], [0], [0], [1], [0, 0, 1, 1], [], []>} : vector<32x512xbf16>, vector<512x128xbf16>, vector<32x128xf32> -> vector<32x128xf32>
    %c0_7 = arith.constant 0 : index
    %c0_8 = arith.constant 0 : index
    %6 = vector.load %arg5[%c0_7, %c0_8] : memref<1x128xf32, #tpu.memory_space<vmem>>, vector<1x128xf32>
    %7 = vector.broadcast %6 : vector<1x128xf32> to vector<32x128xf32>
    %8 = arith.addf %5, %7 : vector<32x128xf32>
    %cst_9 = arith.constant 0.000000e+00 : f32
    %9 = vector.broadcast %cst_9 : f32 to vector<32x128xf32>
    %10 = arith.maximumf %8, %9 : vector<32x128xf32>
    %11 = arith.truncf %10 : vector<32x128xf32> to vector<32x128xbf16>
    %12 = vector.extract_strided_slice %11 {offsets = [0, 0], sizes = [16, 128], strides = [1, 1]} : vector<32x128xbf16> to vector<16x128xbf16>
    %13 = vector.extract_strided_slice %11 {offsets = [16, 0], sizes = [16, 128], strides = [1, 1]} : vector<32x128xbf16> to vector<16x128xbf16>
    %c0_10 = arith.constant 0 : index
    %c0_11 = arith.constant 0 : index
    %14 = vector.load %arg6[%c0_10, %c0_11] : memref<512x128xbf16, #tpu.memory_space<vmem>>, vector<512x128xbf16>
    %cst_12 = arith.constant dense<0.000000e+00> : vector<16x128xf32>
    %15 = tpu.matmul %1, %14, %cst_12 {dimension_numbers = #tpu.dot_dimension_numbers<[1], [0], [0], [1], [0, 0, 1, 1], [], []>} : vector<16x512xbf16>, vector<512x128xbf16>, vector<16x128xf32> -> vector<16x128xf32>
    %c0_13 = arith.constant 0 : index
    %c0_14 = arith.constant 0 : index
    %16 = vector.load %arg7[%c0_13, %c0_14] : memref<1x128xf32, #tpu.memory_space<vmem>>, vector<1x128xf32>
    %17 = vector.broadcast %16 : vector<1x128xf32> to vector<16x128xf32>
    %18 = arith.addf %15, %17 : vector<16x128xf32>
    %cst_15 = arith.constant 0.000000e+00 : f32
    %19 = vector.broadcast %cst_15 : f32 to vector<16x128xf32>
    %20 = arith.maximumf %18, %19 : vector<16x128xf32>
    %21 = arith.truncf %20 : vector<16x128xf32> to vector<16x128xbf16>
    %22 = tpu.concatenate %12, %13 in 1 : vector<16x128xbf16>, vector<16x128xbf16> -> vector<16x256xbf16>
    %c0_16 = arith.constant 0 : index
    %c0_17 = arith.constant 0 : index
    %23 = vector.load %arg8[%c0_16, %c0_17] : memref<256x512xbf16, #tpu.memory_space<vmem>>, vector<256x512xbf16>
    %cst_18 = arith.constant dense<0.000000e+00> : vector<16x512xf32>
    %24 = tpu.matmul %22, %23, %cst_18 {dimension_numbers = #tpu.dot_dimension_numbers<[1], [0], [0], [1], [0, 0, 1, 1], [], []>} : vector<16x256xbf16>, vector<256x512xbf16>, vector<16x512xf32> -> vector<16x512xf32>
    %c0_19 = arith.constant 0 : index
    %c0_20 = arith.constant 0 : index
    %25 = vector.load %arg9[%c0_19, %c0_20] : memref<512x512xbf16, #tpu.memory_space<vmem>>, vector<512x512xbf16>
    %cst_21 = arith.constant dense<0.000000e+00> : vector<16x512xf32>
    %26 = tpu.matmul %1, %25, %cst_21 {dimension_numbers = #tpu.dot_dimension_numbers<[1], [0], [0], [1], [0, 0, 1, 1], [], []>} : vector<16x512xbf16>, vector<512x512xbf16>, vector<16x512xf32> -> vector<16x512xf32>
    %27 = arith.addf %24, %26 : vector<16x512xf32>
    %c0_22 = arith.constant 0 : index
    %c0_23 = arith.constant 0 : index
    %28 = vector.load %arg10[%c0_22, %c0_23] : memref<1x512xf32, #tpu.memory_space<vmem>>, vector<1x512xf32>
    %29 = vector.broadcast %28 : vector<1x512xf32> to vector<16x512xf32>
    %30 = arith.addf %27, %29 : vector<16x512xf32>
    %cst_24 = arith.constant 0.000000e+00 : f32
    %31 = vector.broadcast %cst_24 : f32 to vector<16x512xf32>
    %32 = arith.maximumf %30, %31 : vector<16x512xf32>
    %c0_25 = arith.constant 0 : index
    %c0_26 = arith.constant 0 : index
    %33 = vector.load %arg14[%c0_25, %c0_26] : memref<16x512xf32, #tpu.memory_space<vmem>>, vector<16x512xf32>
    tpu.vector_store %arg14[%c0_25, %c0_26], %32 {strides = array<i32>} : memref<16x512xf32, #tpu.memory_space<vmem>>, vector<16x512xf32>,
    %c0_27 = arith.constant 0 : index
    %c0_28 = arith.constant 0 : index
    %34 = vector.load %arg11[%c0_27, %c0_28] : memref<640x512xbf16, #tpu.memory_space<vmem>>, vector<512x512xbf16>
    %cst_29 = arith.constant dense<0.000000e+00> : vector<16x512xf32>
    %35 = tpu.matmul %0, %34, %cst_29 {dimension_numbers = #tpu.dot_dimension_numbers<[1], [0], [0], [1], [0, 0, 1, 1], [], []>} : vector<16x512xbf16>, vector<512x512xbf16>, vector<16x512xf32> -> vector<16x512xf32>
    %c512 = arith.constant 512 : index
    %c0_30 = arith.constant 0 : index
    %36 = vector.load %arg11[%c512, %c0_30] : memref<640x512xbf16, #tpu.memory_space<vmem>>, vector<128x512xbf16>
    %cst_31 = arith.constant dense<0.000000e+00> : vector<16x512xf32>
    %37 = tpu.matmul %21, %36, %cst_31 {dimension_numbers = #tpu.dot_dimension_numbers<[1], [0], [0], [1], [0, 0, 1, 1], [], []>} : vector<16x128xbf16>, vector<128x512xbf16>, vector<16x512xf32> -> vector<16x512xf32>
    %38 = arith.addf %35, %37 : vector<16x512xf32>
    %c0_32 = arith.constant 0 : index
    %c0_33 = arith.constant 0 : index
    %39 = vector.load %arg12[%c0_32, %c0_33] : memref<1x512xf32, #tpu.memory_space<vmem>>, vector<1x512xf32>
    %40 = vector.broadcast %39 : vector<1x512xf32> to vector<16x512xf32>
    %41 = arith.addf %38, %40 : vector<16x512xf32>
    %cst_34 = arith.constant 0.000000e+00 : f32
    %42 = vector.broadcast %cst_34 : f32 to vector<16x512xf32>
    %43 = arith.maximumf %41, %42 : vector<16x512xf32>
    %c0_35 = arith.constant 0 : index
    %c0_36 = arith.constant 0 : index
    %44 = vector.load %arg13[%c0_35, %c0_36] : memref<16x512xf32, #tpu.memory_space<vmem>>, vector<16x512xf32>
    tpu.vector_store %arg13[%c0_35, %c0_36], %43 {strides = array<i32>} : memref<16x512xf32, #tpu.memory_space<vmem>>, vector<16x512xf32>,
    %c0_37 = arith.constant 0 : index
    %c0_38 = arith.constant 0 : index
    %45 = vector.load %arg11[%c0_37, %c0_38] : memref<640x512xbf16, #tpu.memory_space<vmem>>, vector<128x512xbf16>
    %cst_39 = arith.constant dense<0.000000e+00> : vector<16x512xf32>
    %46 = tpu.matmul %21, %45, %cst_39 {dimension_numbers = #tpu.dot_dimension_numbers<[1], [0], [0], [1], [0, 0, 1, 1], [], []>} : vector<16x128xbf16>, vector<128x512xbf16>, vector<16x512xf32> -> vector<16x512xf32>
    %c128 = arith.constant 128 : index
    %c0_40 = arith.constant 0 : index
    %47 = vector.load %arg11[%c128, %c0_40] : memref<640x512xbf16, #tpu.memory_space<vmem>>, vector<512x512xbf16>
    %cst_41 = arith.constant dense<0.000000e+00> : vector<16x512xf32>
    %48 = tpu.matmul %2, %47, %cst_41 {dimension_numbers = #tpu.dot_dimension_numbers<[1], [0], [0], [1], [0, 0, 1, 1], [], []>} : vector<16x512xbf16>, vector<512x512xbf16>, vector<16x512xf32> -> vector<16x512xf32>
    %49 = arith.addf %46, %48 : vector<16x512xf32>
    %c0_42 = arith.constant 0 : index
    %c0_43 = arith.constant 0 : index
    %50 = vector.load %arg12[%c0_42, %c0_43] : memref<1x512xf32, #tpu.memory_space<vmem>>, vector<1x512xf32>
    %51 = vector.broadcast %50 : vector<1x512xf32> to vector<16x512xf32>
    %52 = arith.addf %49, %51 : vector<16x512xf32>
    %cst_44 = arith.constant 0.000000e+00 : f32
    %53 = vector.broadcast %cst_44 : f32 to vector<16x512xf32>
    %54 = arith.maximumf %52, %53 : vector<16x512xf32>
    %c0_45 = arith.constant 0 : index
    %c0_46 = arith.constant 0 : index
    %55 = vector.load %arg15[%c0_45, %c0_46] : memref<16x512xf32, #tpu.memory_space<vmem>>, vector<16x512xf32>
    tpu.vector_store %arg15[%c0_45, %c0_46], %54 {strides = array<i32>} : memref<16x512xf32, #tpu.memory_space<vmem>>, vector<16x512xf32>,
    return
  }
  func.func @transform_0(%arg0: i32) -> (i32, i32) {
    %c0_i32 = arith.constant 0 : i32
    %c0_i32_0 = arith.constant 0 : i32
    return %arg0, %c0_i32 : i32, i32
  }
  func.func @transform_1(%arg0: i32) -> (i32, i32) {
    %c0_i32 = arith.constant 0 : i32
    %c0_i32_0 = arith.constant 0 : i32
    return %arg0, %c0_i32 : i32, i32
  }
  func.func @transform_2(%arg0: i32) -> (i32, i32) {
    %c0_i32 = arith.constant 0 : i32
    %c0_i32_0 = arith.constant 0 : i32
    return %arg0, %c0_i32 : i32, i32
  }
  func.func @transform_3(%arg0: i32) -> (i32, i32) {
    %c0_i32 = arith.constant 0 : i32
    %c0_i32_0 = arith.constant 0 : i32
    %c0_i32_1 = arith.constant 0 : i32
    return %c0_i32, %c0_i32_0 : i32, i32
  }
  func.func @transform_4(%arg0: i32) -> (i32, i32) {
    %c0_i32 = arith.constant 0 : i32
    %c0_i32_0 = arith.constant 0 : i32
    %c0_i32_1 = arith.constant 0 : i32
    return %c0_i32, %c0_i32_0 : i32, i32
  }
  func.func @transform_5(%arg0: i32) -> (i32, i32) {
    %c0_i32 = arith.constant 0 : i32
    %c0_i32_0 = arith.constant 0 : i32
    %c0_i32_1 = arith.constant 0 : i32
    return %c0_i32, %c0_i32_0 : i32, i32
  }
  func.func @transform_6(%arg0: i32) -> (i32, i32) {
    %c0_i32 = arith.constant 0 : i32
    %c0_i32_0 = arith.constant 0 : i32
    %c0_i32_1 = arith.constant 0 : i32
    return %c0_i32, %c0_i32_0 : i32, i32
  }
  func.func @transform_7(%arg0: i32) -> (i32, i32) {
    %c0_i32 = arith.constant 0 : i32
    %c0_i32_0 = arith.constant 0 : i32
    %c0_i32_1 = arith.constant 0 : i32
    return %c0_i32, %c0_i32_0 : i32, i32
  }
  func.func @transform_8(%arg0: i32) -> (i32, i32) {
    %c0_i32 = arith.constant 0 : i32
    %c0_i32_0 = arith.constant 0 : i32
    %c0_i32_1 = arith.constant 0 : i32
    return %c0_i32, %c0_i32_0 : i32, i32
  }
  func.func @transform_9(%arg0: i32) -> (i32, i32) {
    %c0_i32 = arith.constant 0 : i32
    %c0_i32_0 = arith.constant 0 : i32
    %c0_i32_1 = arith.constant 0 : i32
    return %c0_i32, %c0_i32_0 : i32, i32
  }
  func.func @transform_10(%arg0: i32) -> (i32, i32) {
    %c0_i32 = arith.constant 0 : i32
    %c0_i32_0 = arith.constant 0 : i32
    %c0_i32_1 = arith.constant 0 : i32
    return %c0_i32, %c0_i32_0 : i32, i32
  }
  func.func @transform_11(%arg0: i32) -> (i32, i32) {
    %c0_i32 = arith.constant 0 : i32
    %c0_i32_0 = arith.constant 0 : i32
    %c0_i32_1 = arith.constant 0 : i32
    return %c0_i32, %c0_i32_0 : i32, i32
  }
  func.func @transform_12(%arg0: i32) -> (i32, i32) {
    %c0_i32 = arith.constant 0 : i32
    %c0_i32_0 = arith.constant 0 : i32
    return %arg0, %c0_i32 : i32, i32
  }
  func.func @transform_13(%arg0: i32) -> (i32, i32) {
    %c0_i32 = arith.constant 0 : i32
    %c0_i32_0 = arith.constant 0 : i32
    return %arg0, %c0_i32 : i32, i32
  }
  func.func @transform_14(%arg0: i32) -> (i32, i32) {
    %c0_i32 = arith.constant 0 : i32
    %c0_i32_0 = arith.constant 0 : i32
    return %arg0, %c0_i32 : i32, i32
  }
}

</mosaic_0001>

<bundles_post_ra>
// kernel: tpu_custom_call.1
= control target key start
LH: loop header
LB: loop body
LE: loop exit
PB: predicated region body
PF: predicated region fallthrough
CT: control target
= control target key end

     0   :  { %20 = vsyncpa [#allocation3], 0  ;;  %s8847_s0 = inlined_call_operand.hbm [shape: bf16[16,512], index: 0, kind: input, shape index: {}]   ;;  %s8848_s1 = inlined_call_operand.hbm [shape: bf16[16,512], index: 1, kind: input, shape index: {}]   ;;  %s8849_s2 = inlined_call_operand.hbm [shape: bf16[16,512], index: 2, kind: input, shape index: {}]   ;;  %s8850_s3 = inlined_call_operand.hbm [shape: bf16[512,128], index: 3, kind: input, shape index: {}]   ;;  %s8851_s4 = inlined_call_operand.hbm [shape: f32[1,128], index: 4, kind: input, shape index: {}]   ;;  %s8852_s5 = inlined_call_operand.hbm [shape: bf16[512,128], index: 5, kind: input, shape index: {}]   ;;  %s8853_s6 = inlined_call_operand.hbm [shape: f32[1,128], index: 6, kind: input, shape index: {}]   ;;  %s8854_s7 = inlined_call_operand.hbm [shape: bf16[256,512], index: 7, kind: input, shape index: {}]   ;;  %s8855_s8 = inlined_call_operand.hbm [shape: bf16[512,512], index: 8, kind: input, shape index: {}]   ;;  %s8856_s9 = inlined_call_operand.vmem [shape: f32[1,512], index: 9, kind: input, shape index: {}]   ;;  %s8857_s10 = inlined_call_operand.hbm [shape: bf16[640,512], index: 10, kind: input, shape index: {}]   ;;  %s8858_s11 = inlined_call_operand.vmem [shape: f32[1,512], index: 11, kind: input, shape index: {}]   ;;  %s8859_s12 = inlined_call_operand.hbm [shape: f32[16,512], index: 12, kind: output, shape index: {0}]   ;;  %s8860_s13 = inlined_call_operand.hbm [shape: f32[16,512], index: 13, kind: output, shape index: {1}]   ;;  %s8861_s14 = inlined_call_operand.hbm [shape: f32[16,512], index: 14, kind: output, shape index: {2}]  }
   0x1   :  { %21 = vsyncpa [#allocation6], 0 }
   0x2   :  { %22 = vsyncpa [#allocation9], 0 }
   0x3   :  { %23 = vsyncpa [#allocation12], 0 }
   0x4   :  { %24 = vsyncpa [#allocation15], 0 }
   0x5   :  { %25 = vsyncpa [#allocation18], 0 }
   0x6   :  { %26 = vsyncpa [#allocation4], 0 }
   0x7   :  { %27 = vsyncpa [#allocation21], 0  ;;  %s45_s15 = sshll.u32 %s8848_s1, 4  ;;  %s8363_s16 = smov [#allocation5]   ;;  %s46_s15 = int_to_ptr.hbm [resolvable:$true] %s45_s15 }
   0x8   :  { %s47_s17 = sshll.u32 %s8363_s16, 4  ;;  %s71_s20 = sshll.u32 %s8850_s3, 4  ;;  %s48_s17 = int_to_ptr.vmem [resolvable:$true] %s47_s17  ;;  %s72_s20 = int_to_ptr.hbm [resolvable:$true] %s71_s20 }
   0x9   :  { %s8364_s21 = smov 256   ;;  %s8365_s22 = smov 16  }
   0xa   :  { %53 = dma.hbm_to_vmem [thread:$0]  %s46_s15, 512, %s48_s17, [#allocation6], %s8364_s21, %s8364_s21, %s8365_s22  }
   0xb   :  { %s8366_s23 = smov [#allocation8]   ;;  %s8367_s25 = smov 64  }
   0xc   :  { %s73_s24 = sshll.u32 %s8366_s23, 4  ;;  %s8368_s1 = smov 4   ;;  %s74_s24 = int_to_ptr.vmem [resolvable:$true] %s73_s24 }
   0xd   :  { %79 = dma.hbm_to_vmem [thread:$0]  %s72_s20, 4096, %s74_s24, [#allocation9], %s8367_s25, %s8367_s25, %s8368_s1  }
   0xe   :  { %s95_s28 = sshll.u32 %s8852_s5, 4  ;;  %s8369_s29 = smov [#allocation11]   ;;  %s96_s28 = int_to_ptr.hbm [resolvable:$true] %s95_s28 }
   0xf   :  { %s97_s3 = sshll.u32 %s8369_s29, 4  ;;  %s119_s18 = sshll.u32 %s8854_s7, 4  ;;  %s98_s3 = int_to_ptr.vmem [resolvable:$true] %s97_s3  ;;  %s120_s18 = int_to_ptr.hbm [resolvable:$true] %s119_s18 }
  0x10   :  { %103 = dma.hbm_to_vmem [thread:$0]  %s96_s28, 4096, %s98_s3, [#allocation12], %s8367_s25, %s8367_s25, %s8368_s1  }
  0x11   :  { %s8370_s15 = smov [#allocation14]   ;;  %s32_s20 = sshll.u32 %s8847_s0, 4  ;;  %s33_s20 = int_to_ptr.hbm [resolvable:$true] %s32_s20 }
  0x12   :  { %s121_s17 = sshll.u32 %s8370_s15, 4  ;;  %s58_s26 = sshll.u32 %s8849_s2, 4  ;;  %s122_s17 = int_to_ptr.vmem [resolvable:$true] %s121_s17  ;;  %s59_s26 = int_to_ptr.hbm [resolvable:$true] %s58_s26 }
  0x13   :  { %127 = dma.hbm_to_vmem [thread:$0]  %s120_s18, 8192, %s122_s17, [#allocation15], %s8364_s21, %s8364_s21, %s8365_s22  }
  0x14   :  { %s8371_s27 = smov [#allocation2]   ;;  %s8372_s25 = smov [#allocation7]  }
  0x15   :  { %s34_s7 = sshll.u32 %s8371_s27, 4  ;;  %s60_s0 = sshll.u32 %s8372_s25, 4  ;;  %s35_s7 = int_to_ptr.vmem [resolvable:$true] %s34_s7  ;;  %s61_s0 = int_to_ptr.vmem [resolvable:$true] %s60_s0 }
  0x16   :  { %40 = dma.hbm_to_vmem [thread:$0]  %s33_s20, 512, %s35_s7, [#allocation3], %s8364_s21, %s8364_s21, %s8365_s22  }
  0x17   :  { %s85_s29 = sshll.u32 %s8851_s4, 4  ;;  %s109_s30 = sshll.u32 %s8853_s6, 4  ;;  %s86_s29 = int_to_ptr.hbm [resolvable:$true] %s85_s29  ;;  %s110_s30 = int_to_ptr.hbm [resolvable:$true] %s109_s30 }
  0x18   :  { %66 = dma.hbm_to_vmem [thread:$0]  %s59_s26, 512, %s61_s0, [#allocation6], %s8364_s21, %s8364_s21, %s8365_s22  }
  0x19   :  { %s8373_s16 = smov [#allocation10]   ;;  %s8374_s15 = smov [#allocation13]  }
  0x1a   :  { %s87_s18 = sshll.u32 %s8373_s16, 4  ;;  %s111_s17 = sshll.u32 %s8374_s15, 4  ;;  %s88_s18 = int_to_ptr.vmem [resolvable:$true] %s87_s18  ;;  %s112_s17 = int_to_ptr.vmem [resolvable:$true] %s111_s17 }
  0x1b   :  { %90 = dma.hbm_to_vmem [thread:$0]  %s86_s29, 16, %s88_s18, [#allocation9]  }
  0x1c   :  { %s132_s4 = sshll.u32 %s8855_s8, 4  ;;  %s147_s24 = sshll.u32 %s8857_s10, 4  ;;  %s133_s4 = int_to_ptr.hbm [resolvable:$true] %s132_s4  ;;  %s148_s24 = int_to_ptr.hbm [resolvable:$true] %s147_s24 }
  0x1d   :  { %114 = dma.hbm_to_vmem [thread:$0]  %s110_s30, 16, %s112_s17, [#allocation12]  }
  0x1e   :  { %s8375_s26 = smov [#allocation16]   ;;  %s8376_s27 = smov [#allocation17]  }
  0x1f   :  { %s134_s6 = sshll.u32 %s8375_s26, 4  ;;  %s149_s7 = sshll.u32 %s8376_s27, 4  ;;  %s135_s6 = int_to_ptr.vmem [resolvable:$true] %s134_s6  ;;  %s150_s7 = int_to_ptr.vmem [resolvable:$true] %s149_s7 }
  0x20   :  { %140 = dma.hbm_to_vmem [thread:$0]  %s133_s4, 16384, %s135_s6, [#allocation15], %s8364_s21, %s8364_s21, %s8365_s22  }
  0x21   :  { %155 = dma.hbm_to_vmem [thread:$0]  %s148_s24, 20480, %s150_s7, [#allocation18], %s8364_s21, %s8364_s21, %s8365_s22  }
  0x22   :  { %8347 = dma.done.wait [#allocation3], 512  }
  0x23   :  { %8348 = vsyncadd [#allocation3], 4294966784 }
  0x24   :  { %8349 = dma.done.wait [#allocation6], 1024  }
  0x25   :  { %8350 = vsyncadd [#allocation6], 4294966272 }
  0x26   :  { %8351 = dma.done.wait [#allocation9], 4112  }
  0x27   :  { %8352 = vsyncadd [#allocation9], 4294963184 }
  0x28   :  { %8353 = dma.done.wait [#allocation12], 4112  }
  0x29   :  { %8354 = vsyncadd [#allocation12], 4294963184 }
  0x2a   :  { %8355 = dma.done.wait [#allocation15], 24576  }
  0x2b   :  { %8356 = vsyncadd [#allocation15], 4294942720 }
  0x2c   :  { %8357 = dma.done.wait [#allocation18], 20480  }
  0x2d   :  { %8358 = vsyncadd [#allocation18], 4294946816  ;;  %v7445_v0 = vld [vmem:[#allocation8 + $0x38] sm:$0xff]  ;;  %v7444_v4 = vld [vmem:[#allocation8 + $0x30] sm:$0xff]  ;;  %s8377_s22 = smov [#allocation20]   ;;  %s5034_s28 = sshll.u32 %s8860_s13, 4  ;;  %s5035_s28 = int_to_ptr.hbm [resolvable:$true] %s5034_s28 }
  0x2e   :  { %v7453_v1 = vld [vmem:[#allocation8 + $0x78] sm:$0xff]  ;;  %510 = vmatpush.bf16.msra.mxu0 %v7445_v0  ;;  %v7452_v5 = vld [vmem:[#allocation8 + $0x70] sm:$0xff]  ;;  %v7443_v8 = vld [vmem:[#allocation8 + $0x28] sm:$0xff]  ;;  %s5032_s25 = sshll.u32 %s8377_s22, 4  ;;  %s8378_s29 = smov 512   ;;  %s5033_s25 = int_to_ptr.vmem [resolvable:$true] %s5032_s25 }
  0x2f   :  { %v7461_v2 = vld [vmem:[#allocation8 + $0xb8] sm:$0xff]  ;;  %529 = vmatpush.bf16.msra.mxu1 %v7453_v1  ;;  %v7460_v6 = vld [vmem:[#allocation8 + $0xb0] sm:$0xff]  ;;  %v7451_v9 = vld [vmem:[#allocation8 + $0x68] sm:$0xff]  ;;  %s8379_s2 = smov 32   ;;  %s5021_s16 = sshll.u32 %s8859_s12, 4  ;;  %s5022_s16 = int_to_ptr.hbm [resolvable:$true] %s5021_s16 }
  0x30   :  { %v7469_v3 = vld [vmem:[#allocation8 + $0xf8] sm:$0xff]  ;;  %548 = vmatpush.bf16.msra.mxu2 %v7461_v2  ;;  %v7468_v7 = vld [vmem:[#allocation8 + $0xf0] sm:$0xff]  ;;  %v7459_v10 = vld [vmem:[#allocation8 + $0xa8] sm:$0xff]  ;;  %s8380_s18 = smov [#allocation19]   ;;  %s5047_s4 = sshll.u32 %s8861_s14, 4  ;;  %s5048_s4 = int_to_ptr.hbm [resolvable:$true] %s5047_s4 }
  0x31   :  { %567 = vmatpush.bf16.msra.mxu3 %v7469_v3  ;;  %v7467_v11 = vld [vmem:[#allocation8 + $0xe8] sm:$0xff]  ;;  %v7442_v12 = vld [vmem:[#allocation8 + $0x20] sm:$0xff]  ;;  %v7441_v16 = vld [vmem:[#allocation8 + $0x18] sm:$0xff]  ;;  %s5019_s15 = sshll.u32 %s8380_s18, 4  ;;  %s5020_s15 = int_to_ptr.vmem [resolvable:$true] %s5019_s15 }
  0x32   :  { %511 = vmatpush.bf16.msra.mxu0 %v7444_v4  ;;  %v7450_v13 = vld [vmem:[#allocation8 + $0x60] sm:$0xff]  ;;  %v7449_v17 = vld [vmem:[#allocation8 + $0x58] sm:$0xff]  ;;  %v7440_v20 = vld [vmem:[#allocation8 + $0x10] sm:$0xff] }
  0x33   :  { %530 = vmatpush.bf16.msra.mxu1 %v7452_v5  ;;  %v7458_v14 = vld [vmem:[#allocation8 + $0xa0] sm:$0xff]  ;;  %v7457_v18 = vld [vmem:[#allocation8 + $0x98] sm:$0xff]  ;;  %v7448_v21 = vld [vmem:[#allocation8 + $0x50] sm:$0xff] }
  0x34   :  { %549 = vmatpush.bf16.msra.mxu2 %v7460_v6  ;;  %v7466_v15 = vld [vmem:[#allocation8 + $0xe0] sm:$0xff]  ;;  %v7465_v19 = vld [vmem:[#allocation8 + $0xd8] sm:$0xff]  ;;  %v7456_v22 = vld [vmem:[#allocation8 + $0x90] sm:$0xff] }
  0x35   :  { %568 = vmatpush.bf16.msra.mxu3 %v7468_v7  ;;  %v7464_v23 = vld [vmem:[#allocation8 + $0xd0] sm:$0xff]  ;;  %v7439_v24 = vld [vmem:[#allocation8 + $0x8] sm:$0xff]  ;;  %v7438_v28 = vld [vmem:[#allocation8] sm:$0xff] }
  0x36   :  { %512 = vmatpush.bf16.msra.mxu0 %v7443_v8  ;;  %v7447_v25 = vld [vmem:[#allocation8 + $0x48] sm:$0xff]  ;;  %v7446_v29 = vld [vmem:[#allocation8 + $0x40] sm:$0xff]  ;;  %v7429_v35 = vld [vmem:[#allocation2 + $0x14] sm:$0xf0] }
  0x37   :  { %531 = vmatpush.bf16.msra.mxu1 %v7451_v9  ;;  %v7455_v26 = vld [vmem:[#allocation8 + $0x88] sm:$0xff]  ;;  %v7454_v30 = vld [vmem:[#allocation8 + $0x80] sm:$0xff]  ;;  %v7428_v37 = vld [vmem:[#allocation2 + $0xc] sm:$0xf0] }
  0x38   :  { %550 = vmatpush.bf16.msra.mxu2 %v7459_v10  ;;  %v7463_v27 = vld [vmem:[#allocation8 + $0xc8] sm:$0xff]  ;;  %v7462_v31 = vld [vmem:[#allocation8 + $0xc0] sm:$0xff]  ;;  %v5086_v39 = vld [vmem:[#allocation2 + $0x18] sm:$0xf0] }
  0x39   :  { %569 = vmatpush.bf16.msra.mxu3 %v7467_v11  ;;  %v7477_v32 = vld [vmem:[#allocation11 + $0x38] sm:$0xff]  ;;  %v5084_v34 = vld [vmem:[#allocation2 + $0x8] sm:$0xf]  ;;  %v7427_v38 = vld [vmem:[#allocation2 + $0xc] sm:$0xf] }
  0x3a   :  { %513 = vmatpush.bf16.msra.mxu0 %v7442_v12  ;;  %v7485_v33 = vld [vmem:[#allocation11 + $0x78] sm:$0xff]  ;;  %v7426_v40 = vld [vmem:[#allocation2 + $0x4] sm:$0xf]  ;;  %v5078_v41 = vld [vmem:[#allocation2 + $0x10] sm:$0xf0]  ;;  %v8505_v44 = vor.u32 %v7429_v35, %v5084_v34  ;;  %v8509_v46 = vor.u32 %v7427_v38, %v5086_v39 }
  0x3b   :  { %532 = vmatpush.bf16.msra.mxu1 %v7450_v13  ;;  %v5076_v36 = vld [vmem:[#allocation2] sm:$0xf]  ;;  %v8511_v47 = vor.u32 %v7426_v40, %v5078_v41  ;;  %v7476_v48 = vld [vmem:[#allocation11 + $0x30] sm:$0xff]  ;;  %v7475_v52 = vld [vmem:[#allocation11 + $0x28] sm:$0xff] }
  0x3c   :  { %551 = vmatpush.bf16.msra.mxu2 %v7458_v14  ;;  %v7493_v42 = vld [vmem:[#allocation11 + $0xb8] sm:$0xff]  ;;  %v8507_v45 = vor.u32 %v7428_v37, %v5076_v36  ;;  %v7484_v49 = vld [vmem:[#allocation11 + $0x70] sm:$0xff]  ;;  %v7483_v53 = vld [vmem:[#allocation11 + $0x68] sm:$0xff] }
  0x3d   :  { %570 = vmatpush.bf16.msra.mxu3 %v7466_v15  ;;  %v7501_v43 = vld [vmem:[#allocation11 + $0xf8] sm:$0xff]  ;;  %v7492_v50 = vld [vmem:[#allocation11 + $0xb0] sm:$0xff]  ;;  %v7491_v54 = vld [vmem:[#allocation11 + $0xa8] sm:$0xff] }
  0x3e   :  { %514 = vmatpush.bf16.msra.mxu0 %v7441_v16  ;;  %v7500_v51 = vld [vmem:[#allocation11 + $0xf0] sm:$0xff]  ;;  %v7499_v55 = vld [vmem:[#allocation11 + $0xe8] sm:$0xff]  ;;  %v7474_v56 = vld [vmem:[#allocation11 + $0x20] sm:$0xff] }
  0x3f   :  { %533 = vmatpush.bf16.msra.mxu1 %v7449_v17  ;;  %v7482_v57 = vld [vmem:[#allocation11 + $0x60] sm:$0xff]  ;;  %v7473_v60 = vld [vmem:[#allocation11 + $0x18] sm:$0xff]  ;;  %v7436_v1 = vld [vmem:[#allocation7 + $0xc] sm:$0xf0] }
  0x40   :  { %552 = vmatpush.bf16.msra.mxu2 %v7457_v18  ;;  %v7490_v58 = vld [vmem:[#allocation11 + $0xa0] sm:$0xff]  ;;  %v7481_v61 = vld [vmem:[#allocation11 + $0x58] sm:$0xff]  ;;  %v7435_v2 = vld [vmem:[#allocation7 + $0xc] sm:$0xf] }
  0x41   :  { %571 = vmatpush.bf16.msra.mxu3 %v7465_v19  ;;  %v7498_v59 = vld [vmem:[#allocation11 + $0xe0] sm:$0xff]  ;;  %v7437_v63 = vld [vmem:[#allocation7 + $0x14] sm:$0xf0]  ;;  %v5102_v3 = vld [vmem:[#allocation7 + $0x18] sm:$0xf0] }
  0x42   :  { %515 = vmatpush.bf16.msra.mxu0 %v7440_v20  ;;  %v5100_v62 = vld [vmem:[#allocation7 + $0x8] sm:$0xf]  ;;  %v5092_v0 = vld [vmem:[#allocation7] sm:$0xf]  ;;  %v7434_v4 = vld [vmem:[#allocation7 + $0x4] sm:$0xf]  ;;  %v8521_v10 = vor.u32 %v7435_v2, %v5102_v3 }
  0x43   :  { %534 = vmatpush.bf16.msra.mxu1 %v7448_v21  ;;  %v5094_v5 = vld [vmem:[#allocation7 + $0x10] sm:$0xf0]  ;;  %v7489_v6 = vld [vmem:[#allocation11 + $0x98] sm:$0xff]  ;;  %v8517_v8 = vor.u32 %v7437_v63, %v5100_v62  ;;  %v8519_v9 = vor.u32 %v7436_v1, %v5092_v0  ;;  %v7471_v16 = vld [vmem:[#allocation11 + $0x8] sm:$0xff] }
  0x44   :  { %553 = vmatpush.bf16.msra.mxu2 %v7456_v22  ;;  %v7497_v7 = vld [vmem:[#allocation11 + $0xd8] sm:$0xff]  ;;  %v8523_v11 = vor.u32 %v7434_v4, %v5094_v5  ;;  %v7472_v12 = vld [vmem:[#allocation11 + $0x10] sm:$0xff]  ;;  %v7479_v17 = vld [vmem:[#allocation11 + $0x48] sm:$0xff] }
  0x45   :  { %572 = vmatpush.bf16.msra.mxu3 %v7464_v23  ;;  %8868 = vst [vmem:[#allocation31_spill] sm:$0xff] %v8519_v9  ;;  %v7480_v13 = vld [vmem:[#allocation11 + $0x50] sm:$0xff]  ;;  %v7487_v18 = vld [vmem:[#allocation11 + $0x88] sm:$0xff]  ;;  %v7470_v20 = vld [vmem:[#allocation11] sm:$0xff] }
  0x46   :  { %516 = vmatpush.bf16.msra.mxu0 %v7439_v24  ;;  %8869 = vst [vmem:[#allocation32_spill] sm:$0xff] %v8523_v11  ;;  %v7488_v14 = vld [vmem:[#allocation11 + $0x90] sm:$0xff]  ;;  %v7495_v19 = vld [vmem:[#allocation11 + $0xc8] sm:$0xff]  ;;  %v7478_v21 = vld [vmem:[#allocation11 + $0x40] sm:$0xff] }
  0x47   :  { %535 = vmatpush.bf16.msra.mxu1 %v7447_v25  ;;  %v7496_v15 = vld [vmem:[#allocation11 + $0xd0] sm:$0xff]  ;;  %v5492_v22 = vld [vmem:[#allocation16 + $0xe0] sm:$0xf] }
  0x48   :  { %554 = vmatpush.bf16.msra.mxu2 %v7455_v26  ;;  %v7596_v23 = vld [vmem:[#allocation16 + $0xec] sm:$0xf0]  ;;  %v5620_v24 = vld [vmem:[#allocation16 + $0x1e0] sm:$0xf] }
  0x49   :  { %573 = vmatpush.bf16.msra.mxu3 %v7463_v27  ;;  %v7628_v25 = vld [vmem:[#allocation16 + $0x1ec] sm:$0xf0]  ;;  %v5748_v26 = vld [vmem:[#allocation16 + $0x2e0] sm:$0xf] }
  0x4a   :  { %517 = vmatpush.bf16.msra.mxu0 %v7438_v28  ;;  %v7660_v27 = vld [vmem:[#allocation16 + $0x2ec] sm:$0xf0]  ;;  %v5876_v28 = vld [vmem:[#allocation16 + $0x3e0] sm:$0xf]  ;;  %v5621_v34 = vor.u32 %v7628_v25, %v5620_v24 }
  0x4b   :  { %536 = vmatpush.bf16.msra.mxu1 %v7446_v29  ;;  %v7692_v29 = vld [vmem:[#allocation16 + $0x3ec] sm:$0xf0]  ;;  %v5604_v36 = vld [vmem:[#allocation16 + $0x1c0] sm:$0xf]  ;;  %v5749_v38 = vor.u32 %v7660_v27, %v5748_v26 }
  0x4c   :  { %555 = vmatpush.bf16.msra.mxu2 %v7454_v30  ;;  %v7486_v30 = vld [vmem:[#allocation11 + $0x80] sm:$0xff]  ;;  %v7592_v35 = vld [vmem:[#allocation16 + $0xcc] sm:$0xf0]  ;;  %v5877_v39 = vor.u32 %v7692_v29, %v5876_v28 }
  0x4d   :  { %574 = vmatpush.bf16.msra.mxu3 %v7462_v31  ;;  %518 = vmatmul.bf16.vlgmr.msra.gmra.mxu0 %v8507_v45  ;;  %v7494_v31 = vld [vmem:[#allocation11 + $0xc0] sm:$0xff]  ;;  %v7624_v37 = vld [vmem:[#allocation16 + $0x1cc] sm:$0xf0] }
  0x4e   :  { %874 = vmatpush.bf16.msrb.mxu0 %v7477_v32  ;;  %537 = vmatmul.bf16.vlgmr.msra.gmra.mxu1 %v8511_v47  ;;  %v5476_v32 = vld [vmem:[#allocation16 + $0xc0] sm:$0xf]  ;;  %v7656_v41 = vld [vmem:[#allocation16 + $0x2cc] sm:$0xf0] }
  0x4f   :  { %888 = vmatpush.bf16.msrb.mxu1 %v7485_v33  ;;  %556 = vmatmul.bf16.vlgmr.msra.gmra.mxu2 %v8505_v44  ;;  %v5493_v33 = vor.u32 %v7596_v23, %v5492_v22  ;;  %v5732_v40 = vld [vmem:[#allocation16 + $0x2c0] sm:$0xf]  ;;  %v7620_v63 = vld [vmem:[#allocation16 + $0x1ac] sm:$0xf0] }
  0x50   :  { %902 = vmatpush.bf16.msrb.mxu2 %v7493_v42  ;;  %575 = vmatmul.bf16.vlgmr.msra.gmra.mxu3 %v8509_v46  ;;  %v5860_v42 = vld [vmem:[#allocation16 + $0x3c0] sm:$0xf]  ;;  %v7652_v1 = vld [vmem:[#allocation16 + $0x2ac] sm:$0xf0] }
  0x51   :  { %916 = vmatpush.bf16.msrb.mxu3 %v7501_v43  ;;  %v7688_v43 = vld [vmem:[#allocation16 + $0x3cc] sm:$0xf0]  ;;  %v5588_v62 = vld [vmem:[#allocation16 + $0x1a0] sm:$0xf] }
  0x52   :  { %875 = vmatpush.bf16.msrb.mxu0 %v7476_v48  ;;  %v5244_v48 = vld [vmem:[#allocation5 + $0x8] sm:$0xf]  ;;  %v5716_v0 = vld [vmem:[#allocation16 + $0x2a0] sm:$0xf]  ;;  %v7684_v3 = vld [vmem:[#allocation16 + $0x3ac] sm:$0xf0] }
  0x53   :  { %889 = vmatpush.bf16.msrb.mxu1 %v7484_v49  ;;  %v7433_v49 = vld [vmem:[#allocation5 + $0x14] sm:$0xf0]  ;;  %v5844_v2 = vld [vmem:[#allocation16 + $0x3a0] sm:$0xf]  ;;  %v7680_v23 = vld [vmem:[#allocation16 + $0x38c] sm:$0xf0] }
  0x54   :  { %903 = vmatpush.bf16.msrb.mxu2 %v7492_v50  ;;  %v5460_v50 = vld [vmem:[#allocation16 + $0xa0] sm:$0xf]  ;;  %v8529_v4 = vor.u32 %v7433_v49, %v5244_v48  ;;  %v7580_v27 = vld [vmem:[#allocation16 + $0x6c] sm:$0xf0] }
  0x55   :  { %917 = vmatpush.bf16.msrb.mxu3 %v7500_v51  ;;  %v7588_v51 = vld [vmem:[#allocation16 + $0xac] sm:$0xf0]  ;;  %v5828_v22 = vld [vmem:[#allocation16 + $0x380] sm:$0xf] }
  0x56   :  { %876 = vmatpush.bf16.msrb.mxu0 %v7475_v52  ;;  %v5236_v52 = vld [vmem:[#allocation5] sm:$0xf]  ;;  %v5428_v26 = vld [vmem:[#allocation16 + $0x60] sm:$0xf]  ;;  %v5829_v29 = vor.u32 %v7680_v23, %v5828_v22  ;;  %v7640_v49 = vld [vmem:[#allocation16 + $0x24c] sm:$0xf0] }
  0x57   :  { %890 = vmatpush.bf16.msrb.mxu1 %v7483_v53  ;;  %v7432_v53 = vld [vmem:[#allocation5 + $0xc] sm:$0xf0]  ;;  %v5668_v48 = vld [vmem:[#allocation16 + $0x240] sm:$0xf]  ;;  %v7626_v22 = vld [vmem:[#allocation16 + $0x1e4] sm:$0xf] }
  0x58   :  { %904 = vmatpush.bf16.msrb.mxu2 %v7491_v54  ;;  %v7431_v54 = vld [vmem:[#allocation5 + $0xc] sm:$0xf]  ;;  %v8531_v5 = vor.u32 %v7432_v53, %v5236_v52  ;;  %v5622_v23 = vld [vmem:[#allocation16 + $0x1f0] sm:$0xf0] }
  0x59   :  { %918 = vmatpush.bf16.msrb.mxu3 %v7499_v55  ;;  %v5477_v55 = vor.u32 %v7592_v35, %v5476_v32  ;;  %v5684_v32 = vld [vmem:[#allocation16 + $0x260] sm:$0xf]  ;;  %v7676_v35 = vld [vmem:[#allocation16 + $0x36c] sm:$0xf0] }
  0x5a   :  { %877 = vmatpush.bf16.msrb.mxu0 %v7474_v56  ;;  %v5605_v56 = vor.u32 %v7624_v37, %v5604_v36  ;;  %v5429_v36 = vor.u32 %v7580_v27, %v5428_v26  ;;  %v5750_v27 = vld [vmem:[#allocation16 + $0x2f0] sm:$0xf0] }
  0x5b   :  { %891 = vmatpush.bf16.msrb.mxu1 %v7482_v57  ;;  %v5246_v57 = vld [vmem:[#allocation5 + $0x18] sm:$0xf0] }
  0x5c   :  { %905 = vmatpush.bf16.msrb.mxu2 %v7490_v58  ;;  %v7430_v58 = vld [vmem:[#allocation5 + $0x4] sm:$0xf] }
  0x5d   :  { %919 = vmatpush.bf16.msrb.mxu3 %v7498_v59  ;;  %523 = vmatmul.bf16.gmra.mxu0 %v8519_v9  ;;  %v5238_v59 = vld [vmem:[#allocation5 + $0x10] sm:$0xf0] }
  0x5e   :  { %878 = vmatpush.bf16.msrb.mxu0 %v7473_v60  ;;  %542 = vmatmul.bf16.gmra.mxu1 %v8523_v11  ;;  %v5733_v60 = vor.u32 %v7656_v41, %v5732_v40 }
  0x5f   :  { %892 = vmatpush.bf16.msrb.mxu1 %v7481_v61  ;;  %561 = vmatmul.bf16.gmra.mxu2 %v8517_v8  ;;  %v5861_v61 = vor.u32 %v7688_v43, %v5860_v42  ;;  %v5540_v42 = vld [vmem:[#allocation16 + $0x140] sm:$0xf]  ;;  %v7608_v43 = vld [vmem:[#allocation16 + $0x14c] sm:$0xf0] }
  0x60   :  { %906 = vmatpush.bf16.msrb.mxu2 %v7489_v6  ;;  %580 = vmatmul.bf16.gmra.mxu3 %v8521_v10  ;;  %v8533_v6 = vor.u32 %v7431_v54, %v5246_v57  ;;  %v5541_v53 = vor.u32 %v7608_v43, %v5540_v42  ;;  %v5396_v54 = vld [vmem:[#allocation16 + $0x20] sm:$0xf]  ;;  %v7686_v42 = vld [vmem:[#allocation16 + $0x3c4] sm:$0xf]  ;;  %v5862_v43 = vld [vmem:[#allocation16 + $0x3d0] sm:$0xf0] }
  0x61   :  { %920 = vmatpush.bf16.msrb.mxu3 %v7497_v7  ;;  %v8535_v7 = vor.u32 %v7430_v58, %v5238_v59  ;;  %v5524_v58 = vld [vmem:[#allocation16 + $0x120] sm:$0xf]  ;;  %v7604_v59 = vld [vmem:[#allocation16 + $0x12c] sm:$0xf0] }
  0x62   :  { %879 = vmatpush.bf16.msrb.mxu0 %v7472_v12  ;;  %v5461_v12 = vor.u32 %v7588_v51, %v5460_v50  ;;  %v5796_v50 = vld [vmem:[#allocation16 + $0x340] sm:$0xf]  ;;  %v7672_v51 = vld [vmem:[#allocation16 + $0x34c] sm:$0xf0] }
  0x63   :  { %893 = vmatpush.bf16.msrb.mxu1 %v7480_v13  ;;  %v5589_v13 = vor.u32 %v7620_v63, %v5588_v62  ;;  %v5797_v57 = vor.u32 %v7672_v51, %v5796_v50  ;;  %v5780_v62 = vld [vmem:[#allocation16 + $0x320] sm:$0xf]  ;;  %v7668_v63 = vld [vmem:[#allocation16 + $0x32c] sm:$0xf0]  ;;  %v7586_v50 = vld [vmem:[#allocation16 + $0xa4] sm:$0xf] }
  0x64   :  { %907 = vmatpush.bf16.msrb.mxu2 %v7488_v14  ;;  %v5444_v14 = vld [vmem:[#allocation16 + $0x80] sm:$0xf]  ;;  %v5462_v51 = vld [vmem:[#allocation16 + $0xb0] sm:$0xf0] }
  0x65   :  { %921 = vmatpush.bf16.msrb.mxu3 %v7496_v15  ;;  %v7584_v15 = vld [vmem:[#allocation16 + $0x8c] sm:$0xf0] }
  0x66   :  { %880 = vmatpush.bf16.msrb.mxu0 %v7471_v16  ;;  %v5717_v16 = vor.u32 %v7652_v1, %v5716_v0  ;;  %v5445_v24 = vor.u32 %v7584_v15, %v5444_v14  ;;  %v5380_v0 = vld [vmem:[#allocation16] sm:$0xf]  ;;  %v5781_v15 = vor.u32 %v7668_v63, %v5780_v62  ;;  %v7582_v62 = vld [vmem:[#allocation16 + $0x84] sm:$0xf]  ;;  %v5446_v63 = vld [vmem:[#allocation16 + $0x90] sm:$0xf0] }
  0x67   :  { %894 = vmatpush.bf16.msrb.mxu1 %v7479_v17  ;;  %v5845_v17 = vor.u32 %v7684_v3, %v5844_v2  ;;  %v5525_v2 = vor.u32 %v7604_v59, %v5524_v58  ;;  %v7568_v3 = vld [vmem:[#allocation16 + $0xc] sm:$0xf0]  ;;  %v7682_v58 = vld [vmem:[#allocation16 + $0x3a4] sm:$0xf]  ;;  %v5846_v59 = vld [vmem:[#allocation16 + $0x3b0] sm:$0xf0] }
  0x68   :  { %908 = vmatpush.bf16.msrb.mxu2 %v7487_v18  ;;  %v5572_v18 = vld [vmem:[#allocation16 + $0x180] sm:$0xf] }
  0x69   :  { %922 = vmatpush.bf16.msrb.mxu3 %v7495_v19  ;;  %v7616_v19 = vld [vmem:[#allocation16 + $0x18c] sm:$0xf0] }
  0x6a   :  { %881 = vmatpush.bf16.msrb.mxu0 %v7470_v20  ;;  %v5700_v20 = vld [vmem:[#allocation16 + $0x280] sm:$0xf]  ;;  %v5573_v25 = vor.u32 %v7616_v19, %v5572_v18  ;;  %v7664_v19 = vld [vmem:[#allocation16 + $0x30c] sm:$0xf0] }
  0x6b   :  { %895 = vmatpush.bf16.msrb.mxu1 %v7478_v21  ;;  %v7648_v21 = vld [vmem:[#allocation16 + $0x28c] sm:$0xf0]  ;;  %v5764_v18 = vld [vmem:[#allocation16 + $0x300] sm:$0xf] }
  0x6c   :  { %909 = vmatpush.bf16.msrb.mxu2 %v7486_v30  ;;  %v5701_v28 = vor.u32 %v7648_v21, %v5700_v20  ;;  %v5556_v30 = vld [vmem:[#allocation16 + $0x160] sm:$0xf]  ;;  %v7594_v20 = vld [vmem:[#allocation16 + $0xe4] sm:$0xf]  ;;  %v5494_v21 = vld [vmem:[#allocation16 + $0xf0] sm:$0xf0] }
  0x6d   :  { %923 = vmatpush.bf16.msrb.mxu3 %v7494_v31  ;;  %882 = vmatmul.bf16.vlgmr.msrb.gmra.mxu0 %v8531_v5  ;;  %v7612_v31 = vld [vmem:[#allocation16 + $0x16c] sm:$0xf0] }
  0x6e   :  { %1777 = vmatpush.bf16.msra.mxu0 %v5493_v33  ;;  %896 = vmatmul.bf16.vlgmr.msrb.gmra.mxu1 %v8535_v7  ;;  %v7644_v33 = vld [vmem:[#allocation16 + $0x26c] sm:$0xf0]  ;;  %v5557_v37 = vor.u32 %v7612_v31, %v5556_v30  ;;  %v5765_v31 = vor.u32 %v7664_v19, %v5764_v18  ;;  %v7578_v18 = vld [vmem:[#allocation16 + $0x64] sm:$0xf]  ;;  %v5430_v19 = vld [vmem:[#allocation16 + $0x70] sm:$0xf0] }
  0x6f   :  { %1791 = vmatpush.bf16.msra.mxu1 %v5621_v34  ;;  %910 = vmatmul.bf16.vlgmr.msrb.gmra.mxu2 %v8529_v4  ;;  %v5812_v34 = vld [vmem:[#allocation16 + $0x360] sm:$0xf]  ;;  %v5685_v40 = vor.u32 %v7644_v33, %v5684_v32  ;;  %v5497_v32 = vor.u32 %v7594_v20, %v5494_v21  ;;  %v5625_v33 = vor.u32 %v7626_v22, %v5622_v23  ;;  %v7610_v22 = vld [vmem:[#allocation16 + $0x164] sm:$0xf]  ;;  %v5558_v23 = vld [vmem:[#allocation16 + $0x170] sm:$0xf0] }
  0x70   :  { %1805 = vmatpush.bf16.msra.mxu2 %v5749_v38  ;;  %924 = vmatmul.bf16.vlgmr.msrb.gmra.mxu3 %v8533_v6  ;;  %v5412_v38 = vld [vmem:[#allocation16 + $0x40] sm:$0xf]  ;;  %v5813_v41 = vor.u32 %v7676_v35, %v5812_v34  ;;  %v7590_v34 = vld [vmem:[#allocation16 + $0xc4] sm:$0xf]  ;;  %v5478_v35 = vld [vmem:[#allocation16 + $0xd0] sm:$0xf0] }
  0x71   :  { %1819 = vmatpush.bf16.msra.mxu3 %v5877_v39  ;;  %v7576_v39 = vld [vmem:[#allocation16 + $0x4c] sm:$0xf0] }
  0x72   :  { %1778 = vmatpush.bf16.msra.mxu0 %v5477_v55  ;;  %v5413_v52 = vor.u32 %v7576_v39, %v5412_v38  ;;  %v7572_v55 = vld [vmem:[#allocation16 + $0x2c] sm:$0xf0]  ;;  %v7622_v38 = vld [vmem:[#allocation16 + $0x1c4] sm:$0xf]  ;;  %v5606_v39 = vld [vmem:[#allocation16 + $0x1d0] sm:$0xf0] }
  0x73   :  { %1792 = vmatpush.bf16.msra.mxu1 %v5605_v56  ;;  %v5669_v56 = vor.u32 %v7640_v49, %v5668_v48  ;;  %v5397_v1 = vor.u32 %v7572_v55, %v5396_v54  ;;  %v5481_v48 = vor.u32 %v7590_v34, %v5478_v35  ;;  %v5609_v49 = vor.u32 %v7622_v38, %v5606_v39  ;;  %v7618_v54 = vld [vmem:[#allocation16 + $0x1a4] sm:$0xf]  ;;  %v5590_v55 = vld [vmem:[#allocation16 + $0x1b0] sm:$0xf0] }
  0x74   :  { %1806 = vmatpush.bf16.msra.mxu2 %v5733_v60  ;;  %v5652_v60 = vld [vmem:[#allocation16 + $0x220] sm:$0xf]  ;;  %v7606_v34 = vld [vmem:[#allocation16 + $0x144] sm:$0xf]  ;;  %v5542_v35 = vld [vmem:[#allocation16 + $0x150] sm:$0xf0] }
  0x75   :  { %1820 = vmatpush.bf16.msra.mxu3 %v5861_v61  ;;  %v7636_v61 = vld [vmem:[#allocation16 + $0x22c] sm:$0xf0]  ;;  %v7670_v38 = vld [vmem:[#allocation16 + $0x344] sm:$0xf]  ;;  %v5798_v39 = vld [vmem:[#allocation16 + $0x350] sm:$0xf0] }
  0x76   :  { %1779 = vmatpush.bf16.msra.mxu0 %v5461_v12  ;;  %v5508_v12 = vld [vmem:[#allocation16 + $0x100] sm:$0xf]  ;;  %v5653_v14 = vor.u32 %v7636_v61, %v5652_v60  ;;  %v5465_v60 = vor.u32 %v7586_v50, %v5462_v51  ;;  %v5593_v61 = vor.u32 %v7618_v54, %v5590_v55  ;;  %v7602_v50 = vld [vmem:[#allocation16 + $0x124] sm:$0xf]  ;;  %v5526_v51 = vld [vmem:[#allocation16 + $0x130] sm:$0xf0] }
  0x77   :  { %1793 = vmatpush.bf16.msra.mxu1 %v5589_v13  ;;  %v7600_v13 = vld [vmem:[#allocation16 + $0x10c] sm:$0xf0]  ;;  %v7666_v54 = vld [vmem:[#allocation16 + $0x324] sm:$0xf]  ;;  %v5782_v55 = vld [vmem:[#allocation16 + $0x330] sm:$0xf0] }
  0x78   :  { %1807 = vmatpush.bf16.msra.mxu2 %v5717_v16  ;;  %v5636_v16 = vld [vmem:[#allocation16 + $0x200] sm:$0xf]  ;;  %v5509_v26 = vor.u32 %v7600_v13, %v5508_v12  ;;  %v7646_v12 = vld [vmem:[#allocation16 + $0x284] sm:$0xf]  ;;  %v5702_v13 = vld [vmem:[#allocation16 + $0x290] sm:$0xf0] }
  0x79   :  { %1821 = vmatpush.bf16.msra.mxu3 %v5845_v17  ;;  %v7632_v17 = vld [vmem:[#allocation16 + $0x20c] sm:$0xf0]  ;;  %v5705_v20 = vor.u32 %v7646_v12, %v5702_v13  ;;  %v5500_v12 = vld [vmem:[#allocation16 + $0xe8] sm:$0xf]  ;;  %v7597_v13 = vld [vmem:[#allocation16 + $0xf4] sm:$0xf0] }
  0x7a   :  { %1780 = vmatpush.bf16.msra.mxu0 %v5445_v24  ;;  %v7658_v24 = vld [vmem:[#allocation16 + $0x2e4] sm:$0xf]  ;;  %v5637_v30 = vor.u32 %v7632_v17, %v5636_v16  ;;  %v5449_v16 = vor.u32 %v7582_v62, %v5446_v63  ;;  %v5785_v63 = vor.u32 %v7666_v54, %v5782_v55  ;;  %v5452_v54 = vld [vmem:[#allocation16 + $0x88] sm:$0xf]  ;;  %v7585_v55 = vld [vmem:[#allocation16 + $0x94] sm:$0xf0] }
  0x7b   :  { %1794 = vmatpush.bf16.msra.mxu1 %v5573_v25  ;;  %v5381_v25 = vor.u32 %v7568_v3, %v5380_v0  ;;  %v5574_v3 = vld [vmem:[#allocation16 + $0x190] sm:$0xf0] }
  0x7c   :  { %1808 = vmatpush.bf16.msra.mxu2 %v5701_v28  ;;  %v7690_v28 = vld [vmem:[#allocation16 + $0x3e4] sm:$0xf] }
  0x7d   :  { %1822 = vmatpush.bf16.msra.mxu3 %v5829_v29  ;;  %v5878_v29 = vld [vmem:[#allocation16 + $0x3f0] sm:$0xf0] }
  0x7e   :  { %1781 = vmatpush.bf16.msra.mxu0 %v5429_v36  ;;  %v5753_v36 = vor.u32 %v7658_v24, %v5750_v27  ;;  %v7642_v24 = vld [vmem:[#allocation16 + $0x264] sm:$0xf]  ;;  %v5814_v27 = vld [vmem:[#allocation16 + $0x370] sm:$0xf0] }
  0x7f   :  { %1795 = vmatpush.bf16.msra.mxu1 %v5557_v37  ;;  %v5881_v37 = vor.u32 %v7690_v28, %v5878_v29  ;;  %v5433_v28 = vor.u32 %v7578_v18, %v5430_v19  ;;  %v5561_v29 = vor.u32 %v7610_v22, %v5558_v23  ;;  %v7661_v19 = vld [vmem:[#allocation16 + $0x2f4] sm:$0xf0] }
  0x80   :  { %1809 = vmatpush.bf16.msra.mxu2 %v5685_v40  ;;  %v7654_v40 = vld [vmem:[#allocation16 + $0x2c4] sm:$0xf] }
  0x81   :  { %1823 = vmatpush.bf16.msra.mxu3 %v5813_v41  ;;  %v5734_v41 = vld [vmem:[#allocation16 + $0x2d0] sm:$0xf0] }
  0x82   :  { %1782 = vmatpush.bf16.msra.mxu0 %v5413_v52  ;;  %v5737_v52 = vor.u32 %v7654_v40, %v5734_v41  ;;  %v5545_v41 = vor.u32 %v7606_v34, %v5542_v35  ;;  %v5868_v34 = vld [vmem:[#allocation16 + $0x3c8] sm:$0xf]  ;;  %v7689_v35 = vld [vmem:[#allocation16 + $0x3d4] sm:$0xf0] }
  0x83   :  { %1796 = vmatpush.bf16.msra.mxu1 %v5541_v53  ;;  %v5865_v53 = vor.u32 %v7686_v42, %v5862_v43  ;;  %v7570_v42 = vld [vmem:[#allocation16 + $0x24] sm:$0xf]  ;;  %v5398_v43 = vld [vmem:[#allocation16 + $0x30] sm:$0xf0] }
  0x84   :  { %1810 = vmatpush.bf16.msra.mxu2 %v5669_v56  ;;  %v7650_v56 = vld [vmem:[#allocation16 + $0x2a4] sm:$0xf] }
  0x85   :  { %1824 = vmatpush.bf16.msra.mxu3 %v5797_v57  ;;  %v5718_v57 = vld [vmem:[#allocation16 + $0x2b0] sm:$0xf0] }
  0x86   :  { %1783 = vmatpush.bf16.msra.mxu0 %v5397_v1  ;;  %v5721_v0 = vor.u32 %v7650_v56, %v5718_v57  ;;  %v5849_v1 = vor.u32 %v7682_v58, %v5846_v59  ;;  %v7566_v56 = vld [vmem:[#allocation16 + $0x4] sm:$0xf]  ;;  %v5401_v57 = vor.u32 %v7570_v42, %v5398_v43  ;;  %v5529_v58 = vor.u32 %v7602_v50, %v5526_v51  ;;  %v5382_v59 = vld [vmem:[#allocation16 + $0x10] sm:$0xf0]  ;;  %v5596_v42 = vld [vmem:[#allocation16 + $0x1a8] sm:$0xf] }
  0x87   :  { %1797 = vmatpush.bf16.msra.mxu1 %v5525_v2  ;;  %v7614_v2 = vld [vmem:[#allocation16 + $0x184] sm:$0xf]  ;;  %v7621_v43 = vld [vmem:[#allocation16 + $0x1b4] sm:$0xf0]  ;;  %v5852_v50 = vld [vmem:[#allocation16 + $0x3a8] sm:$0xf] }
  0x88   :  { %1811 = vmatpush.bf16.msra.mxu2 %v5653_v14  ;;  %v7678_v14 = vld [vmem:[#allocation16 + $0x384] sm:$0xf]  ;;  %v5577_v17 = vor.u32 %v7614_v2, %v5574_v3  ;;  %v5766_v3 = vld [vmem:[#allocation16 + $0x310] sm:$0xf0]  ;;  %v7685_v51 = vld [vmem:[#allocation16 + $0x3b4] sm:$0xf0] }
  0x89   :  { %1825 = vmatpush.bf16.msra.mxu3 %v5781_v15  ;;  %v5830_v15 = vld [vmem:[#allocation16 + $0x390] sm:$0xf0]  ;;  %v7662_v2 = vld [vmem:[#allocation16 + $0x304] sm:$0xf] }
  0x8a   :  { %1784 = vmatpush.bf16.msra.mxu0 %v5381_v25  ;;  %v5833_v21 = vor.u32 %v7678_v14, %v5830_v15  ;;  %v5686_v25 = vld [vmem:[#allocation16 + $0x270] sm:$0xf0]  ;;  %v5628_v14 = vld [vmem:[#allocation16 + $0x1e8] sm:$0xf]  ;;  %v7629_v15 = vld [vmem:[#allocation16 + $0x1f4] sm:$0xf0]  ;;  %v5769_v23 = vor.u32 %v7662_v2, %v5766_v3 }
  0x8b   :  { %1798 = vmatpush.bf16.msra.mxu1 %v5509_v26  ;;  %v7674_v26 = vld [vmem:[#allocation16 + $0x364] sm:$0xf]  ;;  %v5436_v2 = vld [vmem:[#allocation16 + $0x68] sm:$0xf]  ;;  %v7581_v3 = vld [vmem:[#allocation16 + $0x74] sm:$0xf0] }
  0x8c   :  { %1812 = vmatpush.bf16.msra.mxu2 %v5637_v30  ;;  %v7574_v30 = vld [vmem:[#allocation16 + $0x44] sm:$0xf] }
  0x8d   :  { %1826 = vmatpush.bf16.msra.mxu3 %v5765_v31  ;;  %1785 = vmatmul.bf16.vlgmr.msra.gmra.mxu0 %v8531_v5  ;;  %v5414_v31 = vld [vmem:[#allocation16 + $0x50] sm:$0xf0] }
  0x8e   :  { %1833 = vmatpush.bf16.msrb.mxu0 %v5497_v32  ;;  %1799 = vmatmul.bf16.vlgmr.msra.gmra.mxu1 %v8535_v7  ;;  %v5689_v32 = vor.u32 %v7642_v24, %v5686_v25  ;;  %v5417_v40 = vor.u32 %v7574_v30, %v5414_v31  ;;  %v5501_v24 = vor.u32 %v7597_v13, %v5500_v12  ;;  %v5612_v30 = vld [vmem:[#allocation16 + $0x1c8] sm:$0xf]  ;;  %v7625_v31 = vld [vmem:[#allocation16 + $0x1d4] sm:$0xf0] }
  0x8f   :  { %1847 = vmatpush.bf16.msrb.mxu1 %v5625_v33  ;;  %1813 = vmatmul.bf16.vlgmr.msra.gmra.mxu2 %v8529_v4  ;;  %v5817_v33 = vor.u32 %v7674_v26, %v5814_v27  ;;  %v5629_v25 = vor.u32 %v7629_v15, %v5628_v14  ;;  %v5484_v26 = vld [vmem:[#allocation16 + $0xc8] sm:$0xf]  ;;  %v7593_v27 = vld [vmem:[#allocation16 + $0xd4] sm:$0xf0] }
  0x90   :  { %1861 = vmatpush.bf16.msrb.mxu2 %v5753_v36  ;;  %1827 = vmatmul.bf16.vlgmr.msra.gmra.mxu3 %v8533_v6  ;;  %v7638_v36 = vld [vmem:[#allocation16 + $0x244] sm:$0xf]  ;;  %v5564_v14 = vld [vmem:[#allocation16 + $0x168] sm:$0xf]  ;;  %v7613_v15 = vld [vmem:[#allocation16 + $0x174] sm:$0xf0] }
  0x91   :  { %1875 = vmatpush.bf16.msrb.mxu3 %v5881_v37  ;;  %v5670_v37 = vld [vmem:[#allocation16 + $0x250] sm:$0xf0] }
  0x92   :  { %1834 = vmatpush.bf16.msrb.mxu0 %v5481_v48  ;;  %v5673_v48 = vor.u32 %v7638_v36, %v5670_v37  ;;  %v5485_v36 = vor.u32 %v7593_v27, %v5484_v26  ;;  %v5613_v37 = vor.u32 %v7625_v31, %v5612_v30  ;;  %v5548_v26 = vld [vmem:[#allocation16 + $0x148] sm:$0xf]  ;;  %v7609_v27 = vld [vmem:[#allocation16 + $0x154] sm:$0xf0] }
  0x93   :  { %1848 = vmatpush.bf16.msrb.mxu1 %v5609_v49  ;;  %v5801_v49 = vor.u32 %v7670_v38, %v5798_v39  ;;  %v5468_v38 = vld [vmem:[#allocation16 + $0xa8] sm:$0xf]  ;;  %v7589_v39 = vld [vmem:[#allocation16 + $0xb4] sm:$0xf0] }
  0x94   :  { %1862 = vmatpush.bf16.msrb.mxu2 %v5737_v52  ;;  %v7634_v52 = vld [vmem:[#allocation16 + $0x224] sm:$0xf]  ;;  %v5804_v30 = vld [vmem:[#allocation16 + $0x348] sm:$0xf]  ;;  %v7673_v31 = vld [vmem:[#allocation16 + $0x354] sm:$0xf0] }
  0x95   :  { %1876 = vmatpush.bf16.msrb.mxu3 %v5865_v53  ;;  %v5654_v53 = vld [vmem:[#allocation16 + $0x230] sm:$0xf0] }
  0x96   :  { %1835 = vmatpush.bf16.msrb.mxu0 %v5465_v60  ;;  %v7598_v60 = vld [vmem:[#allocation16 + $0x104] sm:$0xf]  ;;  %v5657_v62 = vor.u32 %v7634_v52, %v5654_v53  ;;  %v5469_v52 = vor.u32 %v7589_v39, %v5468_v38  ;;  %v5597_v53 = vor.u32 %v7621_v43, %v5596_v42  ;;  %v5532_v38 = vld [vmem:[#allocation16 + $0x128] sm:$0xf]  ;;  %v7605_v39 = vld [vmem:[#allocation16 + $0x134] sm:$0xf0] }
  0x97   :  { %1849 = vmatpush.bf16.msrb.mxu1 %v5593_v61  ;;  %v5510_v61 = vld [vmem:[#allocation16 + $0x110] sm:$0xf0]  ;;  %v5788_v42 = vld [vmem:[#allocation16 + $0x328] sm:$0xf]  ;;  %v7669_v43 = vld [vmem:[#allocation16 + $0x334] sm:$0xf0] }
  0x98   :  { %1863 = vmatpush.bf16.msrb.mxu2 %v5721_v0  ;;  %v7630_v0 = vld [vmem:[#allocation16 + $0x204] sm:$0xf]  ;;  %v5513_v18 = vor.u32 %v7598_v60, %v5510_v61  ;;  %v5708_v60 = vld [vmem:[#allocation16 + $0x288] sm:$0xf]  ;;  %v7649_v61 = vld [vmem:[#allocation16 + $0x294] sm:$0xf0] }
  0x99   :  { %1877 = vmatpush.bf16.msrb.mxu3 %v5849_v1  ;;  %v5638_v1 = vld [vmem:[#allocation16 + $0x210] sm:$0xf0]  ;;  %v5709_v12 = vor.u32 %v7649_v61, %v5708_v60  ;;  %v7595_v60 = vld [vmem:[#allocation16 + $0xec] sm:$0xf]  ;;  %v5502_v61 = vld [vmem:[#allocation16 + $0xf8] sm:$0xf0] }
  0x9a   :  { %1836 = vmatpush.bf16.msrb.mxu0 %v5449_v16  ;;  %v5756_v16 = vld [vmem:[#allocation16 + $0x2e8] sm:$0xf]  ;;  %v5641_v22 = vor.u32 %v7630_v0, %v5638_v1  ;;  %v5453_v0 = vor.u32 %v7585_v55, %v5452_v54  ;;  %v5789_v55 = vor.u32 %v7669_v43, %v5788_v42  ;;  %v7583_v42 = vld [vmem:[#allocation16 + $0x8c] sm:$0xf]  ;;  %v5454_v43 = vld [vmem:[#allocation16 + $0x98] sm:$0xf0] }
  0x9b   :  { %1850 = vmatpush.bf16.msrb.mxu1 %v5577_v17  ;;  %v5385_v17 = vor.u32 %v7566_v56, %v5382_v59  ;;  %v7617_v59 = vld [vmem:[#allocation16 + $0x194] sm:$0xf0] }
  0x9c   :  { %1864 = vmatpush.bf16.msrb.mxu2 %v5705_v20  ;;  %v5884_v20 = vld [vmem:[#allocation16 + $0x3e8] sm:$0xf] }
  0x9d   :  { %1878 = vmatpush.bf16.msrb.mxu3 %v5833_v21  ;;  %v7693_v21 = vld [vmem:[#allocation16 + $0x3f4] sm:$0xf0] }
  0x9e   :  { %1837 = vmatpush.bf16.msrb.mxu0 %v5433_v28  ;;  %v5757_v28 = vor.u32 %v7661_v19, %v5756_v16  ;;  %v5692_v16 = vld [vmem:[#allocation16 + $0x268] sm:$0xf]  ;;  %v7677_v19 = vld [vmem:[#allocation16 + $0x374] sm:$0xf0] }
  0x9f   :  { %1851 = vmatpush.bf16.msrb.mxu1 %v5561_v29  ;;  %v5885_v29 = vor.u32 %v7693_v21, %v5884_v20  ;;  %v5437_v20 = vor.u32 %v7581_v3, %v5436_v2  ;;  %v5565_v21 = vor.u32 %v7613_v15, %v5564_v14  ;;  %v5758_v3 = vld [vmem:[#allocation16 + $0x2f8] sm:$0xf0] }
  0xa0   :  { %1865 = vmatpush.bf16.msrb.mxu2 %v5689_v32  ;;  %v5740_v32 = vld [vmem:[#allocation16 + $0x2c8] sm:$0xf] }
  0xa1   :  { %1879 = vmatpush.bf16.msrb.mxu3 %v5817_v33  ;;  %v7657_v33 = vld [vmem:[#allocation16 + $0x2d4] sm:$0xf0] }
  0xa2   :  { %1838 = vmatpush.bf16.msrb.mxu0 %v5417_v40  ;;  %v5741_v40 = vor.u32 %v7657_v33, %v5740_v32  ;;  %v5549_v33 = vor.u32 %v7609_v27, %v5548_v26  ;;  %v7687_v26 = vld [vmem:[#allocation16 + $0x3cc] sm:$0xf]  ;;  %v5870_v27 = vld [vmem:[#allocation16 + $0x3d8] sm:$0xf0] }
  0xa3   :  { %1852 = vmatpush.bf16.msrb.mxu1 %v5545_v41  ;;  %v5869_v41 = vor.u32 %v7689_v35, %v5868_v34  ;;  %v5404_v34 = vld [vmem:[#allocation16 + $0x28] sm:$0xf]  ;;  %v7573_v35 = vld [vmem:[#allocation16 + $0x34] sm:$0xf0] }
  0xa4   :  { %1866 = vmatpush.bf16.msrb.mxu2 %v5673_v48  ;;  %v5724_v48 = vld [vmem:[#allocation16 + $0x2a8] sm:$0xf] }
  0xa5   :  { %1880 = vmatpush.bf16.msrb.mxu3 %v5801_v49  ;;  %v7653_v49 = vld [vmem:[#allocation16 + $0x2b4] sm:$0xf0] }
  0xa6   :  { %1839 = vmatpush.bf16.msrb.mxu0 %v5401_v57  ;;  %v5725_v56 = vor.u32 %v7653_v49, %v5724_v48  ;;  %v5853_v57 = vor.u32 %v7685_v51, %v5852_v50  ;;  %v5388_v48 = vld [vmem:[#allocation16 + $0x8] sm:$0xf]  ;;  %v5405_v49 = vor.u32 %v7573_v35, %v5404_v34  ;;  %v5533_v50 = vor.u32 %v7605_v39, %v5532_v38  ;;  %v7569_v51 = vld [vmem:[#allocation16 + $0x14] sm:$0xf0]  ;;  %v7619_v34 = vld [vmem:[#allocation16 + $0x1ac] sm:$0xf] }
  0xa7   :  { %1853 = vmatpush.bf16.msrb.mxu1 %v5529_v58  ;;  %v5580_v58 = vld [vmem:[#allocation16 + $0x188] sm:$0xf]  ;;  %v5598_v35 = vld [vmem:[#allocation16 + $0x1b8] sm:$0xf0]  ;;  %v7683_v38 = vld [vmem:[#allocation16 + $0x3ac] sm:$0xf] }
  0xa8   :  { %1867 = vmatpush.bf16.msrb.mxu2 %v5657_v62  ;;  %v5836_v62 = vld [vmem:[#allocation16 + $0x388] sm:$0xf]  ;;  %v5581_v1 = vor.u32 %v7617_v59, %v5580_v58  ;;  %v7665_v59 = vld [vmem:[#allocation16 + $0x314] sm:$0xf0]  ;;  %v5854_v39 = vld [vmem:[#allocation16 + $0x3b8] sm:$0xf0] }
  0xa9   :  { %1881 = vmatpush.bf16.msrb.mxu3 %v5785_v63  ;;  %v7681_v63 = vld [vmem:[#allocation16 + $0x394] sm:$0xf0]  ;;  %v5772_v58 = vld [vmem:[#allocation16 + $0x308] sm:$0xf] }
  0xaa   :  { %1840 = vmatpush.bf16.msrb.mxu0 %v5385_v17  ;;  %v5837_v13 = vor.u32 %v7681_v63, %v5836_v62  ;;  %v7645_v17 = vld [vmem:[#allocation16 + $0x274] sm:$0xf0]  ;;  %v7627_v62 = vld [vmem:[#allocation16 + $0x1ec] sm:$0xf]  ;;  %v5630_v63 = vld [vmem:[#allocation16 + $0x1f8] sm:$0xf0]  ;;  %v5773_v15 = vor.u32 %v7665_v59, %v5772_v58 }
  0xab   :  { %1854 = vmatpush.bf16.msrb.mxu1 %v5513_v18  ;;  %v5820_v18 = vld [vmem:[#allocation16 + $0x368] sm:$0xf]  ;;  %v7579_v59 = vld [vmem:[#allocation16 + $0x6c] sm:$0xf] }
  0xac   :  { %1868 = vmatpush.bf16.msrb.mxu2 %v5641_v22  ;;  %v5420_v22 = vld [vmem:[#allocation16 + $0x48] sm:$0xf] }
  0xad   :  { %1882 = vmatpush.bf16.msrb.mxu3 %v5769_v23  ;;  %1841 = vmatmul.bf16.vlgmr.msrb.gmra.mxu0 %v8531_v5  ;;  %v7577_v23 = vld [vmem:[#allocation16 + $0x54] sm:$0xf0] }
  0xae   :  { %1889 = vmatpush.bf16.msra.mxu0 %v5501_v24  ;;  %1855 = vmatmul.bf16.vlgmr.msrb.gmra.mxu1 %v8535_v7  ;;  %v5693_v24 = vor.u32 %v7645_v17, %v5692_v16  ;;  %v5421_v32 = vor.u32 %v7577_v23, %v5420_v22  ;;  %v5505_v16 = vor.u32 %v7595_v60, %v5502_v61  ;;  %v7623_v22 = vld [vmem:[#allocation16 + $0x1cc] sm:$0xf]  ;;  %v5614_v23 = vld [vmem:[#allocation16 + $0x1d8] sm:$0xf0] }
  0xaf   :  { %1903 = vmatpush.bf16.msra.mxu1 %v5629_v25  ;;  %1869 = vmatmul.bf16.vlgmr.msrb.gmra.mxu2 %v8529_v4  ;;  %v5821_v25 = vor.u32 %v7677_v19, %v5820_v18  ;;  %v5633_v17 = vor.u32 %v7627_v62, %v5630_v63  ;;  %v7591_v18 = vld [vmem:[#allocation16 + $0xcc] sm:$0xf]  ;;  %v5486_v19 = vld [vmem:[#allocation16 + $0xd8] sm:$0xf0] }
  0xb0   :  { %1917 = vmatpush.bf16.msra.mxu2 %v5757_v28  ;;  %1883 = vmatmul.bf16.vlgmr.msrb.gmra.mxu3 %v8533_v6  ;;  %v5676_v28 = vld [vmem:[#allocation16 + $0x248] sm:$0xf]  ;;  %v5438_v60 = vld [vmem:[#allocation16 + $0x78] sm:$0xf0] }
  0xb1   :  { %1931 = vmatpush.bf16.msra.mxu3 %v5885_v29  ;;  %v7641_v29 = vld [vmem:[#allocation16 + $0x254] sm:$0xf0] }
  0xb2   :  { %1890 = vmatpush.bf16.msra.mxu0 %v5485_v36  ;;  %v5677_v36 = vor.u32 %v7641_v29, %v5676_v28  ;;  %v5489_v28 = vor.u32 %v7591_v18, %v5486_v19  ;;  %v5617_v29 = vor.u32 %v7623_v22, %v5614_v23  ;;  %v7639_v22 = vld [vmem:[#allocation16 + $0x24c] sm:$0xf] }
  0xb3   :  { %1904 = vmatpush.bf16.msra.mxu1 %v5613_v37  ;;  %v5805_v37 = vor.u32 %v7673_v31, %v5804_v30  ;;  %v7587_v30 = vld [vmem:[#allocation16 + $0xac] sm:$0xf]  ;;  %v5470_v31 = vld [vmem:[#allocation16 + $0xb8] sm:$0xf0] }
  0xb4   :  { %1918 = vmatpush.bf16.msra.mxu2 %v5741_v40  ;;  %v5660_v40 = vld [vmem:[#allocation16 + $0x228] sm:$0xf] }
  0xb5   :  { %1932 = vmatpush.bf16.msra.mxu3 %v5869_v41  ;;  %v7637_v41 = vld [vmem:[#allocation16 + $0x234] sm:$0xf0] }
  0xb6   :  { %1891 = vmatpush.bf16.msra.mxu0 %v5469_v52  ;;  %v5516_v52 = vld [vmem:[#allocation16 + $0x108] sm:$0xf]  ;;  %v5661_v54 = vor.u32 %v7637_v41, %v5660_v40  ;;  %v5473_v40 = vor.u32 %v7587_v30, %v5470_v31  ;;  %v5601_v41 = vor.u32 %v7619_v34, %v5598_v35  ;;  %v7571_v31 = vld [vmem:[#allocation16 + $0x2c] sm:$0xf] }
  0xb7   :  { %1905 = vmatpush.bf16.msra.mxu1 %v5597_v53  ;;  %v7601_v53 = vld [vmem:[#allocation16 + $0x114] sm:$0xf0] }
  0xb8   :  { %1919 = vmatpush.bf16.msra.mxu2 %v5725_v56  ;;  %v5644_v56 = vld [vmem:[#allocation16 + $0x208] sm:$0xf]  ;;  %v5517_v2 = vor.u32 %v7601_v53, %v5516_v52  ;;  %v7647_v52 = vld [vmem:[#allocation16 + $0x28c] sm:$0xf]  ;;  %v5710_v53 = vld [vmem:[#allocation16 + $0x298] sm:$0xf0] }
  0xb9   :  { %1933 = vmatpush.bf16.msra.mxu3 %v5853_v57  ;;  %v7633_v57 = vld [vmem:[#allocation16 + $0x214] sm:$0xf0]  ;;  %v5713_v62 = vor.u32 %v7647_v52, %v5710_v53 }
  0xba   :  { %1892 = vmatpush.bf16.msra.mxu0 %v5453_v0  ;;  %v7659_v0 = vld [vmem:[#allocation16 + $0x2ec] sm:$0xf]  ;;  %v5645_v14 = vor.u32 %v7633_v57, %v5644_v56  ;;  %v5457_v57 = vor.u32 %v7583_v42, %v5454_v43 }
  0xbb   :  { %1906 = vmatpush.bf16.msra.mxu1 %v5581_v1  ;;  %v5389_v1 = vor.u32 %v7569_v51, %v5388_v48  ;;  %v5582_v51 = vld [vmem:[#allocation16 + $0x198] sm:$0xf0]  ;;  %v7567_v42 = vld [vmem:[#allocation16 + $0xc] sm:$0xf] }
  0xbc   :  { %1920 = vmatpush.bf16.msra.mxu2 %v5709_v12  ;;  %v7691_v12 = vld [vmem:[#allocation16 + $0x3ec] sm:$0xf] }
  0xbd   :  { %1934 = vmatpush.bf16.msra.mxu3 %v5837_v13  ;;  %v5886_v13 = vld [vmem:[#allocation16 + $0x3f8] sm:$0xf0] }
  0xbe   :  { %1893 = vmatpush.bf16.msra.mxu0 %v5437_v20  ;;  %v5761_v20 = vor.u32 %v7659_v0, %v5758_v3  ;;  %v7611_v0 = vld [vmem:[#allocation16 + $0x16c] sm:$0xf]  ;;  %v5694_v3 = vld [vmem:[#allocation16 + $0x278] sm:$0xf0] }
  0xbf   :  { %1907 = vmatpush.bf16.msra.mxu1 %v5565_v21  ;;  %v5889_v21 = vor.u32 %v7691_v12, %v5886_v13  ;;  %v7675_v12 = vld [vmem:[#allocation16 + $0x36c] sm:$0xf]  ;;  %v5822_v13 = vld [vmem:[#allocation16 + $0x378] sm:$0xf0] }
  0xc0   :  { %1921 = vmatpush.bf16.msra.mxu2 %v5693_v24  ;;  %v7655_v24 = vld [vmem:[#allocation16 + $0x2cc] sm:$0xf]  ;;  %v5825_v19 = vor.u32 %v7675_v12, %v5822_v13 }
  0xc1   :  { %1935 = vmatpush.bf16.msra.mxu3 %v5821_v25  ;;  %v5742_v25 = vld [vmem:[#allocation16 + $0x2d8] sm:$0xf0] }
  0xc2   :  { %1894 = vmatpush.bf16.msra.mxu0 %v5421_v32  ;;  %v5745_v32 = vor.u32 %v7655_v24, %v5742_v25  ;;  %v5678_v24 = vld [vmem:[#allocation16 + $0x258] sm:$0xf0]  ;;  %v7671_v25 = vld [vmem:[#allocation16 + $0x34c] sm:$0xf] }
  0xc3   :  { %1908 = vmatpush.bf16.msra.mxu1 %v5549_v33  ;;  %v5873_v33 = vor.u32 %v7687_v26, %v5870_v27  ;;  %v5806_v26 = vld [vmem:[#allocation16 + $0x358] sm:$0xf0]  ;;  %v5681_v34 = vor.u32 %v7639_v22, %v5678_v24  ;;  %v5988_v24 = vld [vmem:[#allocation14 + $0xc0] sm:$0xf] }
  0xc4   :  { %1922 = vmatpush.bf16.msra.mxu2 %v5677_v36  ;;  %v7651_v36 = vld [vmem:[#allocation16 + $0x2ac] sm:$0xf]  ;;  %v5809_v35 = vor.u32 %v7671_v25, %v5806_v26  ;;  %v7528_v25 = vld [vmem:[#allocation14 + $0xcc] sm:$0xf0] }
  0xc5   :  { %1936 = vmatpush.bf16.msra.mxu3 %v5805_v37  ;;  %v5726_v37 = vld [vmem:[#allocation16 + $0x2b8] sm:$0xf0] }
  0xc6   :  { %1895 = vmatpush.bf16.msra.mxu0 %v5405_v49  ;;  %v5729_v48 = vor.u32 %v7651_v36, %v5726_v37  ;;  %v5857_v49 = vor.u32 %v7683_v38, %v5854_v39  ;;  %v7603_v36 = vld [vmem:[#allocation16 + $0x12c] sm:$0xf]  ;;  %v5534_v37 = vld [vmem:[#allocation16 + $0x138] sm:$0xf0] }
  0xc7   :  { %1909 = vmatpush.bf16.msra.mxu1 %v5533_v50  ;;  %v7615_v50 = vld [vmem:[#allocation16 + $0x18c] sm:$0xf]  ;;  %v5662_v39 = vld [vmem:[#allocation16 + $0x238] sm:$0xf0] }
  0xc8   :  { %1923 = vmatpush.bf16.msra.mxu2 %v5661_v54  ;;  %v7679_v54 = vld [vmem:[#allocation16 + $0x38c] sm:$0xf]  ;;  %v5585_v58 = vor.u32 %v7615_v50, %v5582_v51  ;;  %v5518_v51 = vld [vmem:[#allocation16 + $0x118] sm:$0xf0] }
  0xc9   :  { %1937 = vmatpush.bf16.msra.mxu3 %v5789_v55  ;;  %v5838_v55 = vld [vmem:[#allocation16 + $0x398] sm:$0xf0]  ;;  %v7635_v38 = vld [vmem:[#allocation16 + $0x22c] sm:$0xf] }
  0xca   :  { %1896 = vmatpush.bf16.msra.mxu0 %v5389_v1  ;;  %v8553_v56 = vpop.f32.mrf.mxu0  ;;  %v5841_v63 = vor.u32 %v7679_v54, %v5838_v55  ;;  %v5566_v1 = vld [vmem:[#allocation16 + $0x178] sm:$0xf0]  ;;  %v7599_v50 = vld [vmem:[#allocation16 + $0x10c] sm:$0xf]  ;;  %v5665_v52 = vor.u32 %v7635_v38, %v5662_v39  ;;  %v5989_v38 = vor.u32 %v7528_v25, %v5988_v24  ;;  %v5940_v24 = vld [vmem:[#allocation14 + $0x60] sm:$0xf] }
  0xcb   :  { %1910 = vmatpush.bf16.msra.mxu1 %v5517_v2  ;;  %v8555_v61 = vpop.f32.mrf.mxu1  ;;  %v7643_v2 = vld [vmem:[#allocation16 + $0x26c] sm:$0xf]  ;;  %v5646_v55 = vld [vmem:[#allocation16 + $0x218] sm:$0xf0]  ;;  %v5521_v13 = vor.u32 %v7599_v50, %v5518_v51  ;;  %v6100_v50 = vld [vmem:[#allocation14 + $0x1a0] sm:$0xf] }
  0xcc   :  { %1924 = vmatpush.bf16.msra.mxu2 %v5645_v14  ;;  %v5441_v14 = vor.u32 %v7579_v59, %v5438_v60  ;;  %v5697_v18 = vor.u32 %v7643_v2, %v5694_v3  ;;  %v7631_v54 = vld [vmem:[#allocation16 + $0x20c] sm:$0xf]  ;;  %v5774_v59 = vld [vmem:[#allocation16 + $0x318] sm:$0xf0]  ;;  %v6004_v60 = vld [vmem:[#allocation14 + $0xe0] sm:$0xf] }
  0xcd   :  { %1938 = vmatpush.bf16.msra.mxu3 %v5773_v15  ;;  %1897 = vmatmul.bf16.vlgmr.msra.gmra.mxu0 %v8531_v5  ;;  %v5569_v15 = vor.u32 %v7611_v0, %v5566_v1  ;;  %v6132_v0 = vld [vmem:[#allocation14 + $0x1e0] sm:$0xf]  ;;  %v7564_v1 = vld [vmem:[#allocation14 + $0x1ec] sm:$0xf0]  ;;  %v7530_v2 = vld [vmem:[#allocation14 + $0xe4] sm:$0xf] }
  0xce   :  { %1945 = vmatpush.bf16.msrb.mxu0 %v5505_v16  ;;  %1911 = vmatmul.bf16.vlgmr.msra.gmra.mxu1 %v8535_v7  ;;  %v7575_v16 = vld [vmem:[#allocation16 + $0x4c] sm:$0xf]  ;;  %v6133_v22 = vor.u32 %v7564_v1, %v6132_v0  ;;  %v7556_v51 = vld [vmem:[#allocation14 + $0x1ac] sm:$0xf0] }
  0xcf   :  { %1959 = vmatpush.bf16.msrb.mxu1 %v5633_v17  ;;  %1925 = vmatmul.bf16.vlgmr.msra.gmra.mxu2 %v8529_v4  ;;  %v5422_v17 = vld [vmem:[#allocation16 + $0x58] sm:$0xf0]  ;;  %v7516_v25 = vld [vmem:[#allocation14 + $0x6c] sm:$0xf0] }
  0xd0   :  { %1973 = vmatpush.bf16.msrb.mxu2 %v5761_v20  ;;  %1939 = vmatmul.bf16.vlgmr.msra.gmra.mxu3 %v8533_v6  ;;  %v7607_v20 = vld [vmem:[#allocation16 + $0x14c] sm:$0xf] }
  0xd1   :  { %1987 = vmatpush.bf16.msrb.mxu3 %v5889_v21  ;;  %v5550_v21 = vld [vmem:[#allocation16 + $0x158] sm:$0xf0] }
  0xd2   :  { %1946 = vmatpush.bf16.msrb.mxu0 %v5489_v28  ;;  %v8557_v23 = vpop.f32.mrf.mxu2  ;;  %v8561_v28 = vpop.f32.mrf.mxu0  ;;  %v5553_v30 = vor.u32 %v7607_v20, %v5550_v21  ;;  %v8033_v20 = vld [vmem:[#allocation10] ss:$0 sm:$0xff] }
  0xd3   :  { %1960 = vmatpush.bf16.msrb.mxu1 %v5617_v29  ;;  %v8559_v27 = vpop.f32.mrf.mxu3  ;;  %v5425_v29 = vor.u32 %v7575_v16, %v5422_v17  ;;  %v6134_v16 = vld [vmem:[#allocation14 + $0x1f0] sm:$0xf0] }
  0xd4   :  { %1974 = vmatpush.bf16.msrb.mxu2 %v5745_v32  ;;  %v5406_v32 = vld [vmem:[#allocation16 + $0x38] sm:$0xf0] }
  0xd5   :  { %1988 = vmatpush.bf16.msrb.mxu3 %v5873_v33  ;;  %v8563_v33 = vpop.f32.mrf.mxu1  ;;  %v5409_v43 = vor.u32 %v7571_v31, %v5406_v32  ;;  %v7560_v31 = vld [vmem:[#allocation14 + $0x1cc] sm:$0xf0]  ;;  %v7526_v32 = vld [vmem:[#allocation14 + $0xc4] sm:$0xf] }
  0xd6   :  { %1947 = vmatpush.bf16.msrb.mxu0 %v5473_v40  ;;  %v7667_v40 = vld [vmem:[#allocation16 + $0x32c] sm:$0xf] }
  0xd7   :  { %1961 = vmatpush.bf16.msrb.mxu1 %v5601_v41  ;;  %v5790_v41 = vld [vmem:[#allocation16 + $0x338] sm:$0xf0] }
  0xd8   :  { %1975 = vmatpush.bf16.msrb.mxu2 %v5729_v48  ;;  %v5537_v48 = vor.u32 %v7603_v36, %v5534_v37  ;;  %v5793_v53 = vor.u32 %v7667_v40, %v5790_v41  ;;  %v6118_v36 = vld [vmem:[#allocation14 + $0x1d0] sm:$0xf0]  ;;  %v5972_v41 = vld [vmem:[#allocation14 + $0xa0] sm:$0xf] }
  0xd9   :  { %1989 = vmatpush.bf16.msrb.mxu3 %v5857_v49  ;;  %v5390_v49 = vld [vmem:[#allocation16 + $0x18] sm:$0xf0] }
  0xda   :  { %1948 = vmatpush.bf16.msrb.mxu0 %v5457_v57  ;;  %v7663_v57 = vld [vmem:[#allocation16 + $0x30c] sm:$0xf]  ;;  %v524_v3 = vpop.f32.mrf.mxu0  ;;  %v5393_v12 = vor.u32 %v7567_v42, %v5390_v49  ;;  %v7524_v42 = vld [vmem:[#allocation14 + $0xac] sm:$0xf0] }
  0xdb   :  { %1962 = vmatpush.bf16.msrb.mxu1 %v5585_v58  ;;  %v8565_v58 = vpop.f32.mrf.mxu2  ;;  %v525_v40 = vadd.f32 %v8033_v20, %v524_v3  ;;  %v5973_v1 = vor.u32 %v7524_v42, %v5972_v41  ;;  %v5956_v3 = vld [vmem:[#allocation14 + $0x80] sm:$0xf] }
  0xdc   :  { %1976 = vmatpush.bf16.msrb.mxu2 %v5713_v62  ;;  %v7532_v62 = vld [vmem:[#allocation14 + $0xec] sm:$0xf0] }
  0xdd   :  { %1990 = vmatpush.bf16.msrb.mxu3 %v5841_v63  ;;  %v8567_v63 = vpop.f32.mrf.mxu3  ;;  %v543_v17 = vpop.f32.mrf.mxu1  ;;  %v6005_v21 = vor.u32 %v7532_v62, %v6004_v60  ;;  %v6102_v60 = vld [vmem:[#allocation14 + $0x1b0] sm:$0xf0] }
  0xde   :  { %1949 = vmatpush.bf16.msrb.mxu0 %v5441_v14  ;;  %v6006_v14 = vld [vmem:[#allocation14 + $0xf0] sm:$0xf0] }
  0xdf   :  { %1963 = vmatpush.bf16.msrb.mxu1 %v5569_v15  ;;  %v7562_v15 = vld [vmem:[#allocation14 + $0x1e4] sm:$0xf]  ;;  %v6009_v26 = vor.u32 %v7530_v2, %v6006_v14  ;;  %v544_v2 = vadd.f32 %v543_v17, %v525_v40 }
  0xe0   :  { %1977 = vmatpush.bf16.msrb.mxu2 %v5697_v18  ;;  %v5649_v18 = vor.u32 %v7631_v54, %v5646_v55  ;;  %v520_v54 = vadd.f32 %v8033_v20, %v8553_v56  ;;  %v522_v55 = vadd.f32 %v8033_v20, %v8561_v28  ;;  %v6101_v56 = vor.u32 %v7556_v51, %v6100_v50  ;;  %v7520_v28 = vld [vmem:[#allocation14 + $0x8c] sm:$0xf0] }
  0xe1   :  { %1991 = vmatpush.bf16.msrb.mxu3 %v5825_v19  ;;  %v5777_v19 = vor.u32 %v7663_v57, %v5774_v59  ;;  %v5974_v57 = vld [vmem:[#allocation14 + $0xb0] sm:$0xf0]  ;;  %v7554_v59 = vld [vmem:[#allocation14 + $0x1a4] sm:$0xf] }
  0xe2   :  { %1950 = vmatpush.bf16.msrb.mxu0 %v5425_v29  ;;  %v6137_v29 = vor.u32 %v7562_v15, %v6134_v16  ;;  %v6105_v14 = vor.u32 %v7554_v59, %v6102_v60  ;;  %v7552_v15 = vld [vmem:[#allocation14 + $0x18c] sm:$0xf0]  ;;  %v539_v16 = vadd.f32 %v8555_v61, %v520_v54  ;;  %v5908_v59 = vld [vmem:[#allocation14 + $0x20] sm:$0xf] }
  0xe3   :  { %1964 = vmatpush.bf16.msrb.mxu1 %v5553_v30  ;;  %v6116_v30 = vld [vmem:[#allocation14 + $0x1c0] sm:$0xf]  ;;  %v562_v37 = vpop.f32.mrf.mxu2  ;;  %v7548_v61 = vld [vmem:[#allocation14 + $0x16c] sm:$0xf0] }
  0xe4   :  { %1978 = vmatpush.bf16.msrb.mxu2 %v5681_v34  ;;  %v5990_v34 = vld [vmem:[#allocation14 + $0xd0] sm:$0xf0]  ;;  %v6117_v39 = vor.u32 %v7560_v31, %v6116_v30  ;;  %v6068_v31 = vld [vmem:[#allocation14 + $0x160] sm:$0xf] }
  0xe5   :  { %1992 = vmatpush.bf16.msrb.mxu3 %v5809_v35  ;;  %v7558_v35 = vld [vmem:[#allocation14 + $0x1c4] sm:$0xf]  ;;  %v545_v0 = vpop.f32.mrf.mxu1  ;;  %v6069_v41 = vor.u32 %v7548_v61, %v6068_v31  ;;  %v6022_v31 = vld [vmem:[#allocation14 + $0x110] sm:$0xf0]  ;;  %v6012_v61 = vld [vmem:[#allocation14 + $0xe8] sm:$0xf] }
  0xe6   :  { %1951 = vmatpush.bf16.msrb.mxu0 %v5409_v43  ;;  %v8569_v43 = vpop.f32.mrf.mxu3  ;;  %v6121_v49 = vor.u32 %v7558_v35, %v6118_v36  ;;  %v5942_v36 = vld [vmem:[#allocation14 + $0x70] sm:$0xf0] }
  0xe7   :  { %1965 = vmatpush.bf16.msrb.mxu1 %v5537_v48  ;;  %v5993_v48 = vor.u32 %v7526_v32, %v5990_v34  ;;  %v7514_v32 = vld [vmem:[#allocation14 + $0x64] sm:$0xf]  ;;  %v558_v34 = vadd.f32 %v8557_v23, %v539_v16  ;;  %v7544_v23 = vld [vmem:[#allocation14 + $0x14c] sm:$0xf0]  ;;  %v5892_v16 = vld [vmem:[#allocation14] sm:$0xf] }
  0xe8   :  { %1979 = vmatpush.bf16.msrb.mxu2 %v5665_v52  ;;  %v7522_v52 = vld [vmem:[#allocation14 + $0xa4] sm:$0xf]  ;;  %v5945_v50 = vor.u32 %v7514_v32, %v5942_v36  ;;  %v7533_v32 = vld [vmem:[#allocation14 + $0xf4] sm:$0xf0] }
  0xe9   :  { %1993 = vmatpush.bf16.msrb.mxu3 %v5793_v53  ;;  %v526_v53 = vpop.f32.mrf.mxu0 }
  0xea   :  { %1952 = vmatpush.bf16.msrb.mxu0 %v5393_v12  ;;  %v527_v62 = vadd.f32 %v8033_v20, %v526_v53  ;;  %v5957_v20 = vor.u32 %v7520_v28, %v5956_v3  ;;  %v7510_v53 = vld [vmem:[#allocation14 + $0x44] sm:$0xf] }
  0xeb   :  { %1966 = vmatpush.bf16.msrb.mxu1 %v5521_v13  ;;  %v5977_v13 = vor.u32 %v7522_v52, %v5974_v57  ;;  %v564_v17 = vpop.f32.mrf.mxu2  ;;  %v6052_v52 = vld [vmem:[#allocation14 + $0x140] sm:$0xf]  ;;  %v7542_v57 = vld [vmem:[#allocation14 + $0x144] sm:$0xf] }
  0xec   :  { %1980 = vmatpush.bf16.msrb.mxu2 %v5649_v18  ;;  %v546_v12 = vadd.f32 %v545_v0, %v527_v62  ;;  %v5958_v18 = vld [vmem:[#allocation14 + $0x90] sm:$0xf0] }
  0xed   :  { %1994 = vmatpush.bf16.msrb.mxu3 %v5777_v19  ;;  %1953 = vmatmul.bf16.vlgmr.msrb.gmra.mxu0 %v8531_v5  ;;  %v6084_v5 = vld [vmem:[#allocation14 + $0x180] sm:$0xf]  ;;  %v6086_v19 = vld [vmem:[#allocation14 + $0x190] sm:$0xf0] }
  0xee   :  { %2321 = vmatpush.bf16.msra.mxu0 %v6005_v21  ;;  %1967 = vmatmul.bf16.vlgmr.msrb.gmra.mxu1 %v8535_v7  ;;  %v7518_v7 = vld [vmem:[#allocation14 + $0x84] sm:$0xf]  ;;  %v563_v21 = vadd.f32 %v562_v37, %v544_v2  ;;  %v5941_v37 = vor.u32 %v7516_v25, %v5940_v24  ;;  %v7508_v2 = vld [vmem:[#allocation14 + $0x2c] sm:$0xf0]  ;;  %v5894_v25 = vld [vmem:[#allocation14 + $0x10] sm:$0xf0] }
  0xef   :  { %2335 = vmatpush.bf16.msra.mxu1 %v6133_v22  ;;  %1981 = vmatmul.bf16.vlgmr.msrb.gmra.mxu2 %v8529_v4  ;;  %v541_v4 = vadd.f32 %v8563_v33, %v522_v55  ;;  %v6085_v22 = vor.u32 %v7552_v15, %v6084_v5  ;;  %v583_v33 = vpop.f32.mrf.mxu3  ;;  %v5926_v55 = vld [vmem:[#allocation14 + $0x50] sm:$0xf0]  ;;  %v7538_v5 = vld [vmem:[#allocation14 + $0x124] sm:$0xf] }
  0xf0   :  { %2349 = vmatpush.bf16.msra.mxu2 %v6009_v26  ;;  %1995 = vmatmul.bf16.vlgmr.msrb.gmra.mxu3 %v8533_v6  ;;  %v7550_v6 = vld [vmem:[#allocation14 + $0x184] sm:$0xf]  ;;  %v565_v26 = vadd.f32 %v564_v17, %v546_v12  ;;  %v582_v40 = vadd.f32 %v8569_v43, %v563_v21  ;;  %v6054_v43 = vld [vmem:[#allocation14 + $0x150] sm:$0xf0]  ;;  %v5929_v3 = vor.u32 %v7510_v53, %v5926_v55  ;;  %v7540_v12 = vld [vmem:[#allocation14 + $0x12c] sm:$0xf0] }
  0xf1   :  { %2363 = vmatpush.bf16.msra.mxu3 %v6137_v29  ;;  %v5961_v29 = vor.u32 %v7518_v7, %v5958_v18  ;;  %v6089_v30 = vor.u32 %v7550_v6, %v6086_v19  ;;  %v560_v35 = vadd.f32 %v8565_v58, %v541_v4  ;;  %v577_v58 = vadd.f32 %v8559_v27, %v558_v34  ;;  %v7506_v27 = vld [vmem:[#allocation14 + $0x24] sm:$0xf]  ;;  %v6038_v15 = vld [vmem:[#allocation14 + $0x130] sm:$0xf0]  ;;  %v7504_v19 = vld [vmem:[#allocation14 + $0xc] sm:$0xf0] }
  0xf2   :  { %2322 = vmatpush.bf16.msra.mxu0 %v5989_v38  ;;  %v7546_v38 = vld [vmem:[#allocation14 + $0x164] sm:$0xf]  ;;  %v584_v42 = vadd.f32 %v583_v33, %v565_v26  ;;  %v588_v60 = vmax.f32 %v582_v40, 0.0  ;;  %v6057_v28 = vor.u32 %v7542_v57, %v6054_v43  ;;  %v5909_v7 = vor.u32 %v7508_v2, %v5908_v59  ;;  %v7536_v17 = vld [vmem:[#allocation14 + $0x10c] sm:$0xf0] }
  0xf3   :  { %2336 = vmatpush.bf16.msra.mxu1 %v6117_v39  ;;  %v6070_v39 = vld [vmem:[#allocation14 + $0x170] sm:$0xf0]  ;;  %v579_v54 = vadd.f32 %v8567_v63, %v560_v35  ;;  %v586_v63 = vmax.f32 %v577_v58, 0.0  ;;  %v7502_v24 = vld [vmem:[#allocation14 + $0x4] sm:$0xf] }
  0xf4   :  { %2350 = vmatpush.bf16.msra.mxu2 %v5993_v48  ;;  %v5924_v48 = vld [vmem:[#allocation14 + $0x40] sm:$0xf]  ;;  %v6073_v51 = vor.u32 %v7546_v38, %v6070_v39  ;;  %v589_v62 = vmax.f32 %v584_v42, 0.0  ;;  %v592_v4 = vpack.c.bf16 %v588_v60, %v588_v60  ;;  %v7534_v26 = vld [vmem:[#allocation14 + $0x104] sm:$0xf]  ;;  %v5893_v39 = vor.u32 %v7504_v19, %v5892_v16 }
  0xf5   :  { %2364 = vmatpush.bf16.msra.mxu3 %v6121_v49  ;;  %v7512_v49 = vld [vmem:[#allocation14 + $0x4c] sm:$0xf0]  ;;  %v6140_v33 = vld [vmem:[#allocation14 + $0x1e8] sm:$0xf]  ;;  %v7565_v34 = vld [vmem:[#allocation14 + $0x1f4] sm:$0xf0] }
  0xf6   :  { %2323 = vmatpush.bf16.msra.mxu0 %v5973_v1  ;;  %v5925_v0 = vor.u32 %v7512_v49, %v5924_v48  ;;  %v6053_v1 = vor.u32 %v7544_v23, %v6052_v52  ;;  %v593_v18 = vpack.c.bf16 %v589_v62, %v589_v62  ;;  %v7531_v35 = vld [vmem:[#allocation14 + $0xec] sm:$0xf]  ;;  %v941_v36 = vunpack.c.l.b16 %v592_v4  ;;  %v6014_v40 = vld [vmem:[#allocation14 + $0xf8] sm:$0xf0]  ;;  %v5996_v53 = vld [vmem:[#allocation14 + $0xc8] sm:$0xf] }
  0xf7   :  { %2337 = vmatpush.bf16.msra.mxu1 %v6101_v56  ;;  %v6036_v56 = vld [vmem:[#allocation14 + $0x120] sm:$0xf]  ;;  %v6142_v42 = vld [vmem:[#allocation14 + $0x1f8] sm:$0xf0]  ;;  %v5897_v48 = vor.u32 %v7502_v24, %v5894_v25  ;;  %v6025_v49 = vor.u32 %v7534_v26, %v6022_v31  ;;  %v6013_v52 = vor.u32 %v7533_v32, %v6012_v61  ;;  %v6141_v23 = vor.u32 %v7565_v34, %v6140_v33  ;;  %v7529_v58 = vld [vmem:[#allocation14 + $0xd4] sm:$0xf0] }
  0xf8   :  { %2351 = vmatpush.bf16.msra.mxu2 %v5977_v13  ;;  %v5910_v13 = vld [vmem:[#allocation14 + $0x30] sm:$0xf0]  ;;  %v6037_v6 = vor.u32 %v7540_v12, %v6036_v56  ;;  %v942_v38 = vunpack.c.l.b16 %v593_v18  ;;  %v6124_v57 = vld [vmem:[#allocation14 + $0x1c8] sm:$0xf]  ;;  %v7561_v43 = vld [vmem:[#allocation14 + $0x1d4] sm:$0xf0]  ;;  %v5997_v56 = vor.u32 %v7529_v58, %v5996_v53 }
  0xf9   :  { %2365 = vmatpush.bf16.msra.mxu3 %v6105_v14  ;;  %v587_v14 = vmax.f32 %v579_v54, 0.0  ;;  %v5913_v21 = vor.u32 %v7506_v27, %v5910_v13  ;;  %v6017_v54 = vor.u32 %v7531_v35, %v6014_v40  ;;  %v7527_v59 = vld [vmem:[#allocation14 + $0xcc] sm:$0xf]  ;;  %v5998_v62 = vld [vmem:[#allocation14 + $0xd8] sm:$0xf0] }
  0xfa   :  { %2324 = vmatpush.bf16.msra.mxu0 %v5957_v20  ;;  %v6020_v20 = vld [vmem:[#allocation14 + $0x100] sm:$0xf]  ;;  %v8584_v60 = vpack.c.b16 %v942_v38, %v941_v36  ;;  %v7525_v12 = vld [vmem:[#allocation14 + $0xb4] sm:$0xf0]  ;;  %v6001_v27 = vor.u32 %v7527_v59, %v5998_v62  ;;  %v6110_v16 = vld [vmem:[#allocation14 + $0x1b8] sm:$0xf0] }
  0xfb   :  { %2338 = vmatpush.bf16.msra.mxu1 %v6085_v22  ;;  %v6041_v22 = vor.u32 %v7538_v5, %v6038_v15  ;;  %v7523_v5 = vld [vmem:[#allocation14 + $0xac] sm:$0xf]  ;;  %v5982_v15 = vld [vmem:[#allocation14 + $0xb8] sm:$0xf0]  ;;  %v7521_v19 = vld [vmem:[#allocation14 + $0x94] sm:$0xf0] }
  0xfc   :  { %2352 = vmatpush.bf16.msra.mxu2 %v5961_v29  ;;  %v590_v29 = vpack.c.bf16 %v586_v63, %v586_v63  ;;  %v6108_v63 = vld [vmem:[#allocation14 + $0x1a8] sm:$0xf]  ;;  %v7519_v24 = vld [vmem:[#allocation14 + $0x8c] sm:$0xf]  ;;  %v5966_v25 = vld [vmem:[#allocation14 + $0x98] sm:$0xf0] }
  0xfd   :  { %2366 = vmatpush.bf16.msra.mxu3 %v6089_v30  ;;  %v591_v30 = vpack.c.bf16 %v587_v14, %v587_v14  ;;  %v7557_v14 = vld [vmem:[#allocation14 + $0x1b4] sm:$0xf0]  ;;  %v7551_v26 = vld [vmem:[#allocation14 + $0x18c] sm:$0xf]  ;;  %v5948_v61 = vld [vmem:[#allocation14 + $0x68] sm:$0xf]  ;;  %v5969_v33 = vor.u32 %v7519_v24, %v5966_v25 }
  0xfe   :  { %2325 = vmatpush.bf16.msra.mxu0 %v5941_v37  ;;  %v6021_v37 = vor.u32 %v7536_v17, %v6020_v20  ;;  %v6109_v18 = vor.u32 %v7557_v14, %v6108_v63  ;;  %v5985_v20 = vor.u32 %v7523_v5, %v5982_v15  ;;  %v7517_v32 = vld [vmem:[#allocation14 + $0x74] sm:$0xf0]  ;;  %v6076_v35 = vld [vmem:[#allocation14 + $0x168] sm:$0xf]  ;;  %v7515_v38 = vld [vmem:[#allocation14 + $0x6c] sm:$0xf] }
  0xff   :  { %2339 = vmatpush.bf16.msra.mxu1 %v6069_v41  ;;  %v7563_v41 = vld [vmem:[#allocation14 + $0x1ec] sm:$0xf]  ;;  %v7549_v36 = vld [vmem:[#allocation14 + $0x174] sm:$0xf0]  ;;  %v6078_v40 = vld [vmem:[#allocation14 + $0x178] sm:$0xf0] }
 0x100   :  { %2353 = vmatpush.bf16.msra.mxu2 %v5945_v50  ;;  %v935_v50 = vunpack.c.l.b16 %v590_v29  ;;  %v6145_v55 = vor.u32 %v7563_v41, %v6142_v42  ;;  %v6094_v29 = vld [vmem:[#allocation14 + $0x198] sm:$0xf0]  ;;  %v5949_v41 = vor.u32 %v7517_v32, %v5948_v61  ;;  %v6077_v42 = vor.u32 %v7549_v36, %v6076_v35  ;;  %v7511_v53 = vld [vmem:[#allocation14 + $0x4c] sm:$0xf]  ;;  %v5916_v59 = vld [vmem:[#allocation14 + $0x28] sm:$0xf] }
 0x101   :  { %2367 = vmatpush.bf16.msra.mxu3 %v6073_v51  ;;  %v936_v51 = vunpack.c.l.b16 %v591_v30  ;;  %v6097_v34 = vor.u32 %v7551_v26, %v6094_v29  ;;  %v5934_v58 = vld [vmem:[#allocation14 + $0x58] sm:$0xf0]  ;;  %v7509_v62 = vld [vmem:[#allocation14 + $0x34] sm:$0xf0]  ;;  %v5900_v63 = vld [vmem:[#allocation14 + $0x8] sm:$0xf] }
 0x102   :  { %2326 = vmatpush.bf16.msra.mxu0 %v5925_v0  ;;  %v7559_v0 = vld [vmem:[#allocation14 + $0x1cc] sm:$0xf]  ;;  %v5917_v14 = vor.u32 %v7509_v62, %v5916_v59  ;;  %v7505_v15 = vld [vmem:[#allocation14 + $0x14] sm:$0xf0]  ;;  %v7850_v24 = vld [vmem:[#allocation17 + $0x4e4] sm:$0xf] }
 0x103   :  { %2340 = vmatpush.bf16.msra.mxu1 %v6053_v1  ;;  %v6126_v1 = vld [vmem:[#allocation14 + $0x1d8] sm:$0xf0]  ;;  %v8586_v2 = vpack.c.b16 %v936_v51, %v935_v50  ;;  %v6262_v25 = vld [vmem:[#allocation17 + $0x4f0] sm:$0xf0]  ;;  %v6268_v26 = vld [vmem:[#allocation17 + $0x4e8] sm:$0xf]  ;;  %v5901_v29 = vor.u32 %v7505_v15, %v5900_v63 }
 0x104   :  { %2354 = vmatpush.bf16.msra.mxu2 %v5929_v3  ;;  %v6125_v3 = vor.u32 %v7561_v43, %v6124_v57  ;;  %v6129_v13 = vor.u32 %v7559_v0, %v6126_v1  ;;  %v5937_v0 = vor.u32 %v7511_v53, %v5934_v58  ;;  %v7851_v61 = vld [vmem:[#allocation17 + $0x4ec] sm:$0xf]  ;;  %v6270_v32 = vld [vmem:[#allocation17 + $0x4f8] sm:$0xf0]  ;;  %v6265_v36 = vor.u32 %v7850_v24, %v6262_v25  ;;  %v6228_v58 = vld [vmem:[#allocation17 + $0x4a0] sm:$0xf] }
 0x105   :  { %2368 = vmatpush.bf16.msra.mxu3 %v6057_v28  ;;  %v5980_v28 = vld [vmem:[#allocation14 + $0xa8] sm:$0xf]  ;;  %v7842_v59 = vld [vmem:[#allocation17 + $0x4a4] sm:$0xf]  ;;  %v6230_v62 = vld [vmem:[#allocation17 + $0x4b0] sm:$0xf0] }
 0x106   :  { %2327 = vmatpush.bf16.msra.mxu0 %v5909_v7  ;;  %v7555_v7 = vld [vmem:[#allocation14 + $0x1ac] sm:$0xf]  ;;  %v5981_v4 = vor.u32 %v7525_v12, %v5980_v28  ;;  %v5918_v12 = vld [vmem:[#allocation14 + $0x38] sm:$0xf0]  ;;  %v7840_v63 = vld [vmem:[#allocation17 + $0x48c] sm:$0xf0] }
 0x107   :  { %2341 = vmatpush.bf16.msra.mxu1 %v6037_v6  ;;  %v5964_v6 = vld [vmem:[#allocation14 + $0x88] sm:$0xf]  ;;  %v6113_v17 = vor.u32 %v7555_v7, %v6110_v16  ;;  %v7507_v28 = vld [vmem:[#allocation14 + $0x2c] sm:$0xf]  ;;  %v7537_v16 = vld [vmem:[#allocation14 + $0x114] sm:$0xf0] }
 0x108   :  { %2355 = vmatpush.bf16.msra.mxu2 %v5913_v21  ;;  %v6092_v21 = vld [vmem:[#allocation14 + $0x188] sm:$0xf]  ;;  %v5965_v30 = vor.u32 %v7521_v19, %v5964_v6  ;;  %v7503_v6 = vld [vmem:[#allocation14 + $0xc] sm:$0xf]  ;;  %v5902_v19 = vld [vmem:[#allocation14 + $0x18] sm:$0xf0] }
 0x109   :  { %2369 = vmatpush.bf16.msra.mxu3 %v6041_v22  ;;  %v7553_v22 = vld [vmem:[#allocation14 + $0x194] sm:$0xf0]  ;;  %v6028_v7 = vld [vmem:[#allocation14 + $0x108] sm:$0xf] }
 0x10a   :  { %2328 = vmatpush.bf16.msra.mxu0 %v5893_v39  ;;  %v6093_v31 = vor.u32 %v7553_v22, %v6092_v21  ;;  %v5950_v39 = vld [vmem:[#allocation14 + $0x78] sm:$0xf0]  ;;  %v6260_v21 = vld [vmem:[#allocation17 + $0x4e0] sm:$0xf]  ;;  %v7852_v22 = vld [vmem:[#allocation17 + $0x4ec] sm:$0xf0] }
 0x10b   :  { %2342 = vmatpush.bf16.msra.mxu1 %v6021_v37  ;;  %v7547_v37 = vld [vmem:[#allocation14 + $0x16c] sm:$0xf]  ;;  %v5953_v50 = vor.u32 %v7515_v38, %v5950_v39  ;;  %v6261_v35 = vor.u32 %v7852_v22, %v6260_v21  ;;  %v6244_v38 = vld [vmem:[#allocation17 + $0x4c0] sm:$0xf]  ;;  %v7848_v39 = vld [vmem:[#allocation17 + $0x4cc] sm:$0xf0]  ;;  %v8602_v22 = vpop.f32.mrf.mxu3 }
 0x10c   :  { %2356 = vmatpush.bf16.msra.mxu2 %v5897_v48  ;;  %v5932_v48 = vld [vmem:[#allocation14 + $0x48] sm:$0xf]  ;;  %v6081_v51 = vor.u32 %v7547_v37, %v6078_v40  ;;  %v8592_v37 = vpop.f32.mrf.mxu0  ;;  %v7836_v21 = vld [vmem:[#allocation17 + $0x46c] sm:$0xf0] }
 0x10d   :  { %2370 = vmatpush.bf16.msra.mxu3 %v6025_v49  ;;  %2329 = vmatmul.bf16.vlgmr.msra.gmra.mxu0 %v8586_v2  ;;  %v7513_v49 = vld [vmem:[#allocation14 + $0x54] sm:$0xf0] }
 0x10e   :  { %2377 = vmatpush.bf16.msrb.mxu0 %v6013_v52  ;;  %2343 = vmatmul.bf16.vlgmr.msra.gmra.mxu1 %v8584_v60  ;;  %v6060_v52 = vld [vmem:[#allocation14 + $0x148] sm:$0xf]  ;;  %v5933_v57 = vor.u32 %v7513_v49, %v5932_v48  ;;  %v6246_v48 = vld [vmem:[#allocation17 + $0x4d0] sm:$0xf0] }
 0x10f   :  { %2391 = vmatpush.bf16.msrb.mxu1 %v6141_v23  ;;  %2357 = vmatmul.bf16.vlgmr.msra.gmra.mxu2 %v8586_v2  ;;  %v7545_v23 = vld [vmem:[#allocation14 + $0x154] sm:$0xf0]  ;;  %v6252_v49 = vld [vmem:[#allocation17 + $0x4c8] sm:$0xf] }
 0x110   :  { %2405 = vmatpush.bf16.msrb.mxu2 %v6017_v54  ;;  %2371 = vmatmul.bf16.vlgmr.msra.gmra.mxu3 %v8584_v60  ;;  %v7543_v54 = vld [vmem:[#allocation14 + $0x14c] sm:$0xf]  ;;  %v6061_v43 = vor.u32 %v7545_v23, %v6060_v52  ;;  %v6254_v52 = vld [vmem:[#allocation17 + $0x4d8] sm:$0xf0]  ;;  %v6245_v23 = vor.u32 %v7848_v39, %v6244_v38  ;;  %v6180_v39 = vld [vmem:[#allocation17 + $0x440] sm:$0xf] }
 0x111   :  { %2419 = vmatpush.bf16.msrb.mxu3 %v6145_v55  ;;  %v6062_v55 = vld [vmem:[#allocation14 + $0x158] sm:$0xf0] }
 0x112   :  { %2378 = vmatpush.bf16.msrb.mxu0 %v5997_v56  ;;  %v6065_v1 = vor.u32 %v7543_v54, %v6062_v55  ;;  %v6044_v56 = vld [vmem:[#allocation14 + $0x128] sm:$0xf]  ;;  %v7844_v54 = vld [vmem:[#allocation17 + $0x4ac] sm:$0xf0]  ;;  %v8594_v55 = vpop.f32.mrf.mxu1 }
 0x113   :  { %2392 = vmatpush.bf16.msrb.mxu1 %v6125_v3  ;;  %v7541_v3 = vld [vmem:[#allocation14 + $0x134] sm:$0xf0] }
 0x114   :  { %2406 = vmatpush.bf16.msrb.mxu2 %v6001_v27  ;;  %v7539_v27 = vld [vmem:[#allocation14 + $0x12c] sm:$0xf]  ;;  %v6045_v5 = vor.u32 %v7541_v3, %v6044_v56  ;;  %v6238_v3 = vld [vmem:[#allocation17 + $0x4b8] sm:$0xf0] }
 0x115   :  { %2420 = vmatpush.bf16.msrb.mxu3 %v6129_v13  ;;  %v6046_v13 = vld [vmem:[#allocation14 + $0x138] sm:$0xf0]  ;;  %v7843_v56 = vld [vmem:[#allocation17 + $0x4ac] sm:$0xf] }
 0x116   :  { %2379 = vmatpush.bf16.msrb.mxu0 %v5981_v4  ;;  %v5921_v4 = vor.u32 %v7507_v28, %v5918_v12  ;;  %v8034_v28 = vld [vmem:[#allocation13] ss:$0 sm:$0xff]  ;;  %v6229_v12 = vor.u32 %v7844_v54, %v6228_v58  ;;  %v6241_v15 = vor.u32 %v7843_v56, %v6238_v3  ;;  %v6166_v56 = vld [vmem:[#allocation17 + $0x430] sm:$0xf0]  ;;  %v6172_v3 = vld [vmem:[#allocation17 + $0x428] sm:$0xf] }
 0x117   :  { %2393 = vmatpush.bf16.msrb.mxu1 %v6109_v18  ;;  %v6049_v18 = vor.u32 %v7539_v27, %v6046_v13  ;;  %v6233_v27 = vor.u32 %v7842_v59, %v6230_v62  ;;  %v6212_v13 = vld [vmem:[#allocation17 + $0x480] sm:$0xf]  ;;  %v7828_v59 = vld [vmem:[#allocation17 + $0x42c] sm:$0xf0] }
 0x118   :  { %2407 = vmatpush.bf16.msrb.mxu2 %v5985_v20  ;;  %v7535_v20 = vld [vmem:[#allocation14 + $0x10c] sm:$0xf] }
 0x119   :  { %2421 = vmatpush.bf16.msrb.mxu3 %v6113_v17  ;;  %v6030_v17 = vld [vmem:[#allocation14 + $0x118] sm:$0xf0] }
 0x11a   :  { %2380 = vmatpush.bf16.msrb.mxu0 %v5965_v30  ;;  %v6029_v30 = vor.u32 %v7537_v16, %v6028_v7  ;;  %v7838_v7 = vld [vmem:[#allocation17 + $0x484] sm:$0xf]  ;;  %v6214_v16 = vld [vmem:[#allocation17 + $0x490] sm:$0xf0] }
 0x11b   :  { %2394 = vmatpush.bf16.msrb.mxu1 %v6093_v31  ;;  %v7853_v31 = vld [vmem:[#allocation17 + $0x4f4] sm:$0xf0] }
 0x11c   :  { %2408 = vmatpush.bf16.msrb.mxu2 %v5969_v33  ;;  %v5905_v33 = vor.u32 %v7503_v6, %v5902_v19  ;;  %v6269_v40 = vor.u32 %v7853_v31, %v6268_v26  ;;  %v6222_v6 = vld [vmem:[#allocation17 + $0x498] sm:$0xf0]  ;;  %v6213_v19 = vor.u32 %v7840_v63, %v6212_v13  ;;  %v7834_v26 = vld [vmem:[#allocation17 + $0x464] sm:$0xf]  ;;  %v884_v31 = vadd.f32 %v8034_v28, %v8592_v37  ;;  %v927_v63 = vpop.f32.mrf.mxu3 }
 0x11d   :  { %2422 = vmatpush.bf16.msrb.mxu3 %v6097_v34  ;;  %v6033_v34 = vor.u32 %v7535_v20, %v6030_v17  ;;  %v6217_v20 = vor.u32 %v7838_v7, %v6214_v16  ;;  %v6196_v17 = vld [vmem:[#allocation17 + $0x460] sm:$0xf]  ;;  %v6174_v13 = vld [vmem:[#allocation17 + $0x438] sm:$0xf0]  ;;  %v7824_v16 = vld [vmem:[#allocation17 + $0x40c] sm:$0xf0] }
 0x11e   :  { %2381 = vmatpush.bf16.msrb.mxu0 %v5949_v41  ;;  %v6273_v41 = vor.u32 %v7851_v61, %v6270_v32  ;;  %v7837_v32 = vld [vmem:[#allocation17 + $0x474] sm:$0xf0]  ;;  %v898_v37 = vadd.f32 %v8594_v55, %v884_v31  ;;  %v7756_v31 = vld [vmem:[#allocation17 + $0x1ec] sm:$0xf0] }
 0x11f   :  { %2395 = vmatpush.bf16.msrb.mxu1 %v6077_v42  ;;  %v7846_v42 = vld [vmem:[#allocation17 + $0x4c4] sm:$0xf] }
 0x120   :  { %2409 = vmatpush.bf16.msrb.mxu2 %v5953_v50  ;;  %v7849_v50 = vld [vmem:[#allocation17 + $0x4d4] sm:$0xf0]  ;;  %v6249_v53 = vor.u32 %v7846_v42, %v6246_v48  ;;  %v7830_v48 = vld [vmem:[#allocation17 + $0x444] sm:$0xf] }
 0x121   :  { %2423 = vmatpush.bf16.msrb.mxu3 %v6081_v51  ;;  %v7847_v51 = vld [vmem:[#allocation17 + $0x4cc] sm:$0xf] }
 0x122   :  { %2382 = vmatpush.bf16.msrb.mxu0 %v5933_v57  ;;  %v6253_v57 = vor.u32 %v7849_v50, %v6252_v49  ;;  %v6182_v49 = vld [vmem:[#allocation17 + $0x450] sm:$0xf0]  ;;  %v6188_v50 = vld [vmem:[#allocation17 + $0x448] sm:$0xf] }
 0x123   :  { %2396 = vmatpush.bf16.msrb.mxu1 %v6061_v43  ;;  %v6257_v43 = vor.u32 %v7847_v51, %v6254_v52  ;;  %v7833_v52 = vld [vmem:[#allocation17 + $0x454] sm:$0xf0] }
 0x124   :  { %2410 = vmatpush.bf16.msrb.mxu2 %v5937_v0  ;;  %v6236_v0 = vld [vmem:[#allocation17 + $0x4a8] sm:$0xf]  ;;  %v6189_v62 = vor.u32 %v7833_v52, %v6188_v50  ;;  %v7752_v52 = vld [vmem:[#allocation17 + $0x1cc] sm:$0xf0] }
 0x125   :  { %2424 = vmatpush.bf16.msrb.mxu3 %v6065_v1  ;;  %v7845_v1 = vld [vmem:[#allocation17 + $0x4b4] sm:$0xf0] }
 0x126   :  { %2383 = vmatpush.bf16.msrb.mxu0 %v5917_v14  ;;  %v8600_v14 = vpop.f32.mrf.mxu2 }
 0x127   :  { %2397 = vmatpush.bf16.msrb.mxu1 %v6045_v5  ;;  %v6237_v5 = vor.u32 %v7845_v1, %v6236_v0  ;;  %v7826_v1 = vld [vmem:[#allocation17 + $0x424] sm:$0xf]  ;;  %v912_v55 = vadd.f32 %v8600_v14, %v898_v37  ;;  %v7823_v14 = vld [vmem:[#allocation17 + $0x40c] sm:$0xf] }
 0x128   :  { %2411 = vmatpush.bf16.msrb.mxu2 %v5921_v4  ;;  %v6220_v4 = vld [vmem:[#allocation17 + $0x488] sm:$0xf]  ;;  %v6169_v7 = vor.u32 %v7826_v1, %v6166_v56  ;;  %v6356_v1 = vld [vmem:[#allocation17 + $0xa0] sm:$0xf]  ;;  %v7716_v56 = vld [vmem:[#allocation17 + $0xac] sm:$0xf0] }
 0x129   :  { %2425 = vmatpush.bf16.msrb.mxu3 %v6049_v18  ;;  %v7841_v18 = vld [vmem:[#allocation17 + $0x494] sm:$0xf0] }
 0x12a   :  { %2384 = vmatpush.bf16.msrb.mxu0 %v5901_v29  ;;  %v6221_v24 = vor.u32 %v7841_v18, %v6220_v4  ;;  %v6198_v29 = vld [vmem:[#allocation17 + $0x470] sm:$0xf0]  ;;  %v7822_v4 = vld [vmem:[#allocation17 + $0x404] sm:$0xf] }
 0x12b   :  { %2398 = vmatpush.bf16.msrb.mxu1 %v6029_v30  ;;  %v6204_v30 = vld [vmem:[#allocation17 + $0x468] sm:$0xf]  ;;  %v6201_v38 = vor.u32 %v7834_v26, %v6198_v29  ;;  %v6150_v18 = vld [vmem:[#allocation17 + $0x410] sm:$0xf0] }
 0x12c   :  { %2412 = vmatpush.bf16.msrb.mxu2 %v5905_v33  ;;  %v7835_v33 = vld [vmem:[#allocation17 + $0x46c] sm:$0xf] }
 0x12d   :  { %2426 = vmatpush.bf16.msrb.mxu3 %v6033_v34  ;;  %2385 = vmatmul.bf16.vlgmr.msrb.gmra.mxu0 %v8586_v2  ;;  %v6206_v34 = vld [vmem:[#allocation17 + $0x478] sm:$0xf0] }
 0x12e   :  { %2787 = vmatpush.bf16.msra.mxu0 %v6261_v35  ;;  %2399 = vmatmul.bf16.vlgmr.msrb.gmra.mxu1 %v8584_v60  ;;  %v899_v35 = vpop.f32.mrf.mxu1  ;;  %v6209_v42 = vor.u32 %v7835_v33, %v6206_v34  ;;  %v913_v58 = vpop.f32.mrf.mxu2  ;;  %v6153_v33 = vor.u32 %v7822_v4, %v6150_v18  ;;  %v7788_v34 = vld [vmem:[#allocation17 + $0x2ec] sm:$0xf0]  ;;  %v6340_v18 = vld [vmem:[#allocation17 + $0x80] sm:$0xf] }
 0x12f   :  { %2801 = vmatpush.bf16.msra.mxu1 %v6265_v36  ;;  %2413 = vmatmul.bf16.vlgmr.msrb.gmra.mxu2 %v8586_v2  ;;  %v7839_v2 = vld [vmem:[#allocation17 + $0x48c] sm:$0xf]  ;;  %v6197_v36 = vor.u32 %v7836_v21, %v6196_v17  ;;  %v6158_v21 = vld [vmem:[#allocation17 + $0x418] sm:$0xf0] }
 0x130   :  { %2815 = vmatpush.bf16.msra.mxu2 %v6269_v40  ;;  %2427 = vmatmul.bf16.vlgmr.msrb.gmra.mxu3 %v8584_v60  ;;  %v885_v60 = vpop.f32.mrf.mxu0  ;;  %v6225_v25 = vor.u32 %v7839_v2, %v6222_v6  ;;  %v7832_v40 = vld [vmem:[#allocation17 + $0x44c] sm:$0xf0] }
 0x131   :  { %2829 = vmatpush.bf16.msra.mxu3 %v6273_v41  ;;  %v886_v61 = vadd.f32 %v8034_v28, %v885_v60  ;;  %v6205_v41 = vor.u32 %v7837_v32, %v6204_v30  ;;  %v6181_v54 = vor.u32 %v7832_v40, %v6180_v39  ;;  %v6156_v60 = vld [vmem:[#allocation17 + $0x408] sm:$0xf]  ;;  %v6516_v30 = vld [vmem:[#allocation17 + $0x1e0] sm:$0xf] }
 0x132   :  { %2788 = vmatpush.bf16.msra.mxu0 %v6245_v23  ;;  %v7831_v23 = vld [vmem:[#allocation17 + $0x44c] sm:$0xf] }
 0x133   :  { %2802 = vmatpush.bf16.msra.mxu1 %v6249_v53  ;;  %v900_v51 = vadd.f32 %v899_v35, %v886_v61  ;;  %v6190_v53 = vld [vmem:[#allocation17 + $0x458] sm:$0xf0]  ;;  %v6644_v61 = vld [vmem:[#allocation17 + $0x2e0] sm:$0xf] }
 0x134   :  { %2816 = vmatpush.bf16.msra.mxu2 %v6253_v57  ;;  %v6185_v57 = vor.u32 %v7830_v48, %v6182_v49  ;;  %v6193_v0 = vor.u32 %v7831_v23, %v6190_v53  ;;  %v6772_v35 = vld [vmem:[#allocation17 + $0x3e0] sm:$0xf]  ;;  %v7720_v49 = vld [vmem:[#allocation17 + $0xcc] sm:$0xf0]  ;;  %v6645_v50 = vor.u32 %v7788_v34, %v6644_v61 }
 0x135   :  { %2830 = vmatpush.bf16.msra.mxu3 %v6257_v43  ;;  %v6164_v43 = vld [vmem:[#allocation17 + $0x420] sm:$0xf]  ;;  %v914_v28 = vadd.f32 %v913_v58, %v900_v51  ;;  %v7784_v53 = vld [vmem:[#allocation17 + $0x2cc] sm:$0xf0] }
 0x136   :  { %2789 = vmatpush.bf16.msra.mxu0 %v6229_v12  ;;  %v7829_v12 = vld [vmem:[#allocation17 + $0x434] sm:$0xf0]  ;;  %v8610_v29 = vpop.f32.mrf.mxu1  ;;  %v6372_v48 = vld [vmem:[#allocation17 + $0xc0] sm:$0xf]  ;;  %v7708_v61 = vld [vmem:[#allocation17 + $0x6c] sm:$0xf0] }
 0x137   :  { %2803 = vmatpush.bf16.msra.mxu1 %v6233_v27  ;;  %v7827_v27 = vld [vmem:[#allocation17 + $0x42c] sm:$0xf]  ;;  %v6173_v2 = vor.u32 %v7829_v12, %v6172_v3  ;;  %v928_v17 = vadd.f32 %v927_v63, %v914_v28  ;;  %v6500_v51 = vld [vmem:[#allocation17 + $0x1c0] sm:$0xf]  ;;  %v7748_v12 = vld [vmem:[#allocation17 + $0x1ac] sm:$0xf0] }
 0x138   :  { %2817 = vmatpush.bf16.msra.mxu2 %v6237_v5  ;;  %v6148_v5 = vld [vmem:[#allocation17 + $0x400] sm:$0xf]  ;;  %v6177_v6 = vor.u32 %v7827_v27, %v6174_v13  ;;  %v8608_v26 = vpop.f32.mrf.mxu0  ;;  %v7780_v13 = vld [vmem:[#allocation17 + $0x2ac] sm:$0xf0] }
 0x139   :  { %2831 = vmatpush.bf16.msra.mxu3 %v6241_v15  ;;  %v6165_v15 = vor.u32 %v7828_v59, %v6164_v43  ;;  %v6149_v32 = vor.u32 %v7824_v16, %v6148_v5  ;;  %v931_v40 = vmax.f32 %v928_v17, 0.0  ;;  %v6628_v23 = vld [vmem:[#allocation17 + $0x2c0] sm:$0xf]  ;;  %v8614_v43 = vpop.f32.mrf.mxu2  ;;  %v8616_v59 = vpop.f32.mrf.mxu3  ;;  %v7812_v5 = vld [vmem:[#allocation17 + $0x3ac] sm:$0xf0]  ;;  %v6357_v16 = vor.u32 %v7716_v56, %v6356_v1 }
 0x13a   :  { %2790 = vmatpush.bf16.msra.mxu0 %v6213_v19  ;;  %v7825_v19 = vld [vmem:[#allocation17 + $0x414] sm:$0xf0]  ;;  %v6756_v58 = vld [vmem:[#allocation17 + $0x3c0] sm:$0xf]  ;;  %v6629_v3 = vor.u32 %v7784_v53, %v6628_v23  ;;  %v7776_v17 = vld [vmem:[#allocation17 + $0x28c] sm:$0xf0]  ;;  %v1801_v9 = vadd.f32 %v8610_v29, %v8608_v26 }
 0x13b   :  { %2804 = vmatpush.bf16.msra.mxu1 %v6217_v20  ;;  %v926_v20 = vadd.f32 %v8602_v22, %v912_v55  ;;  %v6157_v22 = vor.u32 %v7825_v19, %v6156_v60  ;;  %v6484_v28 = vld [vmem:[#allocation17 + $0x1a0] sm:$0xf]  ;;  %v7800_v1 = vld [vmem:[#allocation17 + $0x34c] sm:$0xf0]  ;;  %v6620_v26 = vld [vmem:[#allocation17 + $0x2a8] sm:$0xf] }
 0x13c   :  { %2818 = vmatpush.bf16.msra.mxu2 %v6221_v24  ;;  %v6388_v24 = vld [vmem:[#allocation17 + $0xe0] sm:$0xf]  ;;  %v6485_v4 = vor.u32 %v7748_v12, %v6484_v28  ;;  %v7700_v28 = vld [vmem:[#allocation17 + $0x2c] sm:$0xf0]  ;;  %v1815_v29 = vadd.f32 %v8614_v43, %v1801_v9  ;;  %v8692_v9 = vld [vmem:[%s8856_s9] sm:$0xf] }
 0x13d   :  { %2832 = vmatpush.bf16.msra.mxu3 %v6225_v25  ;;  %v7724_v25 = vld [vmem:[#allocation17 + $0xec] sm:$0xf0]  ;;  %v930_v39 = vmax.f32 %v926_v20, 0.0  ;;  %v6612_v27 = vld [vmem:[#allocation17 + $0x2a0] sm:$0xf] }
 0x13e   :  { %2791 = vmatpush.bf16.msra.mxu0 %v6197_v36  ;;  %v7820_v36 = vld [vmem:[#allocation17 + $0x3ec] sm:$0xf0]  ;;  %v6740_v63 = vld [vmem:[#allocation17 + $0x3a0] sm:$0xf]  ;;  %v6348_v43 = vld [vmem:[#allocation17 + $0x88] sm:$0xf] }
 0x13f   :  { %2805 = vmatpush.bf16.msra.mxu1 %v6201_v38  ;;  %v6161_v38 = vor.u32 %v7823_v14, %v6158_v21  ;;  %v6773_v37 = vor.u32 %v7820_v36, %v6772_v35  ;;  %v6741_v60 = vor.u32 %v7812_v5, %v6740_v63  ;;  %v6468_v19 = vld [vmem:[#allocation17 + $0x180] sm:$0xf]  ;;  %v7744_v14 = vld [vmem:[#allocation17 + $0x18c] sm:$0xf0] }
 0x140   :  { %2819 = vmatpush.bf16.msra.mxu2 %v6205_v41  ;;  %v6389_v41 = vor.u32 %v7724_v25, %v6388_v24  ;;  %v6596_v20 = vld [vmem:[#allocation17 + $0x280] sm:$0xf]  ;;  %v7808_v24 = vld [vmem:[#allocation17 + $0x38c] sm:$0xf0] }
 0x141   :  { %2833 = vmatpush.bf16.msra.mxu3 %v6209_v42  ;;  %v6517_v42 = vor.u32 %v7756_v31, %v6516_v30  ;;  %v6724_v21 = vld [vmem:[#allocation17 + $0x380] sm:$0xf]  ;;  %v6469_v30 = vor.u32 %v7744_v14, %v6468_v19  ;;  %v7740_v35 = vld [vmem:[#allocation17 + $0x16c] sm:$0xf0] }
 0x142   :  { %2792 = vmatpush.bf16.msra.mxu0 %v6181_v54  ;;  %v7816_v54 = vld [vmem:[#allocation17 + $0x3cc] sm:$0xf0]  ;;  %v6324_v31 = vld [vmem:[#allocation17 + $0x60] sm:$0xf] }
 0x143   :  { %2806 = vmatpush.bf16.msra.mxu1 %v6185_v57  ;;  %v8612_v57 = vpack.c.bf16 %v931_v40, %v930_v39  ;;  %v6757_v55 = vor.u32 %v7816_v54, %v6756_v58  ;;  %v6452_v34 = vld [vmem:[#allocation17 + $0x160] sm:$0xf]  ;;  %v7772_v39 = vld [vmem:[#allocation17 + $0x26c] sm:$0xf0] }
 0x144   :  { %2820 = vmatpush.bf16.msra.mxu2 %v6189_v62  ;;  %v6373_v62 = vor.u32 %v7720_v49, %v6372_v48  ;;  %v6580_v36 = vld [vmem:[#allocation17 + $0x260] sm:$0xf]  ;;  %v6325_v49 = vor.u32 %v7708_v61, %v6324_v31  ;;  %v7736_v58 = vld [vmem:[#allocation17 + $0x14c] sm:$0xf0] }
 0x145   :  { %2834 = vmatpush.bf16.msra.mxu3 %v6193_v0  ;;  %8870 = vst [vmem:[#allocation33_spill] sm:$0xff] %v8612_v57  ;;  %v6501_v0 = vor.u32 %v7752_v52, %v6500_v51  ;;  %v6708_v40 = vld [vmem:[#allocation17 + $0x360] sm:$0xf]  ;;  %v7704_v51 = vld [vmem:[#allocation17 + $0x4c] sm:$0xf0]  ;;  %v6581_v52 = vor.u32 %v7772_v39, %v6580_v36 }
 0x146   :  { %2793 = vmatpush.bf16.msra.mxu0 %v6165_v15  ;;  %v8620_v15 = vpop.f32.mrf.mxu0  ;;  %v6436_v53 = vld [vmem:[#allocation17 + $0x140] sm:$0xf]  ;;  %v7732_v63 = vld [vmem:[#allocation17 + $0x12c] sm:$0xf0]  ;;  %v6390_v36 = vld [vmem:[#allocation17 + $0xf0] sm:$0xf0] }
 0x147   :  { %2807 = vmatpush.bf16.msra.mxu1 %v6169_v7  ;;  %v8622_v7 = vpop.f32.mrf.mxu1  ;;  %v6564_v54 = vld [vmem:[#allocation17 + $0x240] sm:$0xf]  ;;  %v7754_v39 = vld [vmem:[#allocation17 + $0x1e4] sm:$0xf] }
 0x148   :  { %2821 = vmatpush.bf16.msra.mxu2 %v6173_v2  ;;  %v7712_v2 = vld [vmem:[#allocation17 + $0x8c] sm:$0xf0]  ;;  %v6548_v5 = vld [vmem:[#allocation17 + $0x220] sm:$0xf] }
 0x149   :  { %2835 = vmatpush.bf16.msra.mxu3 %v6177_v6  ;;  %v6613_v6 = vor.u32 %v7780_v13, %v6612_v27  ;;  %v6341_v25 = vor.u32 %v7712_v2, %v6340_v18  ;;  %v6420_v13 = vld [vmem:[#allocation17 + $0x120] sm:$0xf]  ;;  %v7764_v18 = vld [vmem:[#allocation17 + $0x22c] sm:$0xf0] }
 0x14a   :  { %2794 = vmatpush.bf16.msra.mxu0 %v6149_v32  ;;  %v6597_v32 = vor.u32 %v7776_v17, %v6596_v20  ;;  %v6676_v2 = vld [vmem:[#allocation17 + $0x320] sm:$0xf]  ;;  %v6421_v14 = vor.u32 %v7732_v63, %v6420_v13  ;;  %v7696_v20 = vld [vmem:[#allocation17 + $0xc] sm:$0xf0]  ;;  %v6630_v13 = vld [vmem:[#allocation17 + $0x2d0] sm:$0xf0] }
 0x14b   :  { %2808 = vmatpush.bf16.msra.mxu1 %v6153_v33  ;;  %v6725_v33 = vor.u32 %v7808_v24, %v6724_v21  ;;  %v6404_v17 = vld [vmem:[#allocation17 + $0x100] sm:$0xf]  ;;  %v7728_v21 = vld [vmem:[#allocation17 + $0x10c] sm:$0xf0]  ;;  %v7814_v63 = vld [vmem:[#allocation17 + $0x3c4] sm:$0xf] }
 0x14c   :  { %2822 = vmatpush.bf16.msra.mxu2 %v6157_v22  ;;  %v8626_v22 = vpop.f32.mrf.mxu2  ;;  %v6532_v61 = vld [vmem:[#allocation17 + $0x200] sm:$0xf] }
 0x14d   :  { %2836 = vmatpush.bf16.msra.mxu3 %v6161_v38  ;;  %2795 = vmatmul.bf16.vlgmr.msra.gmra.mxu0 %v8612_v57  ;;  %v8628_v38 = vpop.f32.mrf.mxu3 }
 0x14e   :  { %3483 = vmatpush.bf16.msrb.mxu0 %v6389_v41  ;;  %2809 = vmatmul.bf16.vlgmr.msra.gmra.mxu1 %v8612_v57  ;;  %v7804_v41 = vld [vmem:[#allocation17 + $0x36c] sm:$0xf0] }
 0x14f   :  { %3497 = vmatpush.bf16.msrb.mxu1 %v6517_v42  ;;  %2823 = vmatmul.bf16.vlgmr.msra.gmra.mxu2 %v8612_v57  ;;  %v8630_v42 = vpop.f32.mrf.mxu0  ;;  %v8632_v48 = vpop.f32.mrf.mxu1  ;;  %v6709_v23 = vor.u32 %v7804_v41, %v6708_v40  ;;  %v6518_v40 = vld [vmem:[#allocation17 + $0x1f0] sm:$0xf0]  ;;  %v7786_v41 = vld [vmem:[#allocation17 + $0x2e4] sm:$0xf] }
 0x150   :  { %3511 = vmatpush.bf16.msrb.mxu2 %v6645_v50  ;;  %2837 = vmatmul.bf16.vlgmr.msra.gmra.mxu3 %v8612_v57  ;;  %v6453_v50 = vor.u32 %v7740_v35, %v6452_v34  ;;  %v7792_v34 = vld [vmem:[#allocation17 + $0x30c] sm:$0xf0]  ;;  %v7722_v35 = vld [vmem:[#allocation17 + $0xe4] sm:$0xf]  ;;  %v7721_v57 = vld [vmem:[#allocation17 + $0xd4] sm:$0xf0] }
 0x151   :  { %3525 = vmatpush.bf16.msrb.mxu3 %v6773_v37  ;;  %v6308_v37 = vld [vmem:[#allocation17 + $0x40] sm:$0xf] }
 0x152   :  { %3484 = vmatpush.bf16.msrb.mxu0 %v6373_v62  ;;  %v7768_v62 = vld [vmem:[#allocation17 + $0x24c] sm:$0xf0]  ;;  %v6309_v56 = vor.u32 %v7704_v51, %v6308_v37  ;;  %v6646_v37 = vld [vmem:[#allocation17 + $0x2f0] sm:$0xf0]  ;;  %v7818_v51 = vld [vmem:[#allocation17 + $0x3e4] sm:$0xf] }
 0x153   :  { %3498 = vmatpush.bf16.msrb.mxu1 %v6501_v0  ;;  %v6692_v0 = vld [vmem:[#allocation17 + $0x340] sm:$0xf]  ;;  %v6565_v12 = vor.u32 %v7768_v62, %v6564_v54  ;;  %v6521_v54 = vor.u32 %v7754_v39, %v6518_v40  ;;  %v7718_v62 = vld [vmem:[#allocation17 + $0xc4] sm:$0xf]  ;;  %v6342_v39 = vld [vmem:[#allocation17 + $0x90] sm:$0xf0] }
 0x154   :  { %3512 = vmatpush.bf16.msrb.mxu2 %v6629_v3  ;;  %v6437_v3 = vor.u32 %v7736_v58, %v6436_v53  ;;  %v6693_v27 = vor.u32 %v7800_v1, %v6692_v0  ;;  %v6393_v58 = vor.u32 %v7722_v35, %v6390_v36  ;;  %v6374_v0 = vld [vmem:[#allocation17 + $0xd0] sm:$0xf0]  ;;  %v6649_v1 = vor.u32 %v7786_v41, %v6646_v37  ;;  %v7710_v36 = vld [vmem:[#allocation17 + $0x84] sm:$0xf] }
 0x155   :  { %3526 = vmatpush.bf16.msrb.mxu3 %v6757_v55  ;;  %v6292_v55 = vld [vmem:[#allocation17 + $0x20] sm:$0xf]  ;;  %v7774_v37 = vld [vmem:[#allocation17 + $0x284] sm:$0xf] }
 0x156   :  { %3485 = vmatpush.bf16.msrb.mxu0 %v6357_v16  ;;  %v8634_v16 = vpop.f32.mrf.mxu2  ;;  %v6293_v19 = vor.u32 %v7700_v28, %v6292_v55  ;;  %v6502_v55 = vld [vmem:[#allocation17 + $0x1d0] sm:$0xf0]  ;;  %v7782_v28 = vld [vmem:[#allocation17 + $0x2c4] sm:$0xf] }
 0x157   :  { %3499 = vmatpush.bf16.msrb.mxu1 %v6485_v4  ;;  %v8636_v4 = vpop.f32.mrf.mxu3  ;;  %v8638_v24 = vpop.f32.mrf.mxu0 }
 0x158   :  { %3513 = vmatpush.bf16.msrb.mxu2 %v6613_v6  ;;  %v7796_v6 = vld [vmem:[#allocation17 + $0x32c] sm:$0xf0] }
 0x159   :  { %3527 = vmatpush.bf16.msrb.mxu3 %v6741_v60  ;;  %v6276_v60 = vld [vmem:[#allocation17] sm:$0xf]  ;;  %v6677_v31 = vor.u32 %v7796_v6, %v6676_v2  ;;  %v6377_v6 = vor.u32 %v7718_v62, %v6374_v0  ;;  %v7706_v0 = vld [vmem:[#allocation17 + $0x64] sm:$0xf] }
 0x15a   :  { %3486 = vmatpush.bf16.msrb.mxu0 %v6341_v25  ;;  %v8640_v25 = vpop.f32.mrf.mxu1 }
 0x15b   :  { %3500 = vmatpush.bf16.msrb.mxu1 %v6469_v30  ;;  %v6549_v30 = vor.u32 %v7764_v18, %v6548_v5  ;;  %v6758_v5 = vld [vmem:[#allocation17 + $0x3d0] sm:$0xf0] }
 0x15c   :  { %3514 = vmatpush.bf16.msrb.mxu2 %v6597_v32  ;;  %v7760_v32 = vld [vmem:[#allocation17 + $0x20c] sm:$0xf0] }
 0x15d   :  { %3528 = vmatpush.bf16.msrb.mxu3 %v6725_v33  ;;  %v6660_v33 = vld [vmem:[#allocation17 + $0x300] sm:$0xf] }
 0x15e   :  { %3487 = vmatpush.bf16.msrb.mxu0 %v6325_v49  ;;  %v6277_v49 = vor.u32 %v7696_v20, %v6276_v60  ;;  %v6661_v53 = vor.u32 %v7792_v34, %v6660_v33  ;;  %v6633_v20 = vor.u32 %v7782_v28, %v6630_v13  ;;  %v6742_v33 = vld [vmem:[#allocation17 + $0x3b0] sm:$0xf0]  ;;  %v7738_v13 = vld [vmem:[#allocation17 + $0x164] sm:$0xf] }
 0x15f   :  { %3501 = vmatpush.bf16.msrb.mxu1 %v6453_v50  ;;  %v6405_v50 = vor.u32 %v7728_v21, %v6404_v17  ;;  %v8646_v18 = vpop.f32.mrf.mxu0  ;;  %v6761_v17 = vor.u32 %v7814_v63, %v6758_v5  ;;  %v7746_v21 = vld [vmem:[#allocation17 + $0x1a4] sm:$0xf]  ;;  %v6454_v63 = vld [vmem:[#allocation17 + $0x170] sm:$0xf0] }
 0x160   :  { %3515 = vmatpush.bf16.msrb.mxu2 %v6581_v52  ;;  %v6774_v52 = vld [vmem:[#allocation17 + $0x3f0] sm:$0xf0]  ;;  %v7770_v5 = vld [vmem:[#allocation17 + $0x264] sm:$0xf] }
 0x161   :  { %3529 = vmatpush.bf16.msrb.mxu3 %v6709_v23  ;;  %v6533_v23 = vor.u32 %v7760_v32, %v6532_v61  ;;  %v6614_v61 = vld [vmem:[#allocation17 + $0x2b0] sm:$0xf0]  ;;  %v7810_v32 = vld [vmem:[#allocation17 + $0x3a4] sm:$0xf] }
 0x162   :  { %3488 = vmatpush.bf16.msrb.mxu0 %v6309_v56  ;;  %v6777_v56 = vor.u32 %v7818_v51, %v6774_v52  ;;  %v8648_v2 = vpop.f32.mrf.mxu1  ;;  %v6745_v41 = vor.u32 %v7810_v32, %v6742_v33  ;;  %v6438_v32 = vld [vmem:[#allocation17 + $0x150] sm:$0xf0]  ;;  %v7766_v33 = vld [vmem:[#allocation17 + $0x244] sm:$0xf] }
 0x163   :  { %3502 = vmatpush.bf16.msrb.mxu1 %v6437_v3  ;;  %v7750_v3 = vld [vmem:[#allocation17 + $0x1c4] sm:$0xf] }
 0x164   :  { %3516 = vmatpush.bf16.msrb.mxu2 %v6565_v12  ;;  %v8642_v12 = vpop.f32.mrf.mxu2  ;;  %v6505_v60 = vor.u32 %v7750_v3, %v6502_v55 }
 0x165   :  { %3530 = vmatpush.bf16.msrb.mxu3 %v6693_v27  ;;  %v8644_v27 = vpop.f32.mrf.mxu3 }
 0x166   :  { %3489 = vmatpush.bf16.msrb.mxu0 %v6293_v19  ;;  %v7714_v19 = vld [vmem:[#allocation17 + $0xa4] sm:$0xf] }
 0x167   :  { %3503 = vmatpush.bf16.msrb.mxu1 %v6421_v14  ;;  %v6358_v14 = vld [vmem:[#allocation17 + $0xb0] sm:$0xf0] }
 0x168   :  { %3517 = vmatpush.bf16.msrb.mxu2 %v6549_v30  ;;  %v6486_v30 = vld [vmem:[#allocation17 + $0x1b0] sm:$0xf0]  ;;  %v6361_v34 = vor.u32 %v7714_v19, %v6358_v14 }
 0x169   :  { %3531 = vmatpush.bf16.msrb.mxu3 %v6677_v31  ;;  %v7778_v31 = vld [vmem:[#allocation17 + $0x2a4] sm:$0xf]  ;;  %v6489_v35 = vor.u32 %v7746_v21, %v6486_v30  ;;  %v6710_v19 = vld [vmem:[#allocation17 + $0x370] sm:$0xf0] }
 0x16a   :  { %3490 = vmatpush.bf16.msrb.mxu0 %v6277_v49  ;;  %v6617_v40 = vor.u32 %v7778_v31, %v6614_v61  ;;  %v7742_v49 = vld [vmem:[#allocation17 + $0x184] sm:$0xf]  ;;  %v8660_v3 = vpop.f32.mrf.mxu1  ;;  %v6310_v21 = vld [vmem:[#allocation17 + $0x50] sm:$0xf0] }
 0x16b   :  { %3504 = vmatpush.bf16.msrb.mxu1 %v6405_v50  ;;  %v6470_v50 = vld [vmem:[#allocation17 + $0x190] sm:$0xf0]  ;;  %v7734_v61 = vld [vmem:[#allocation17 + $0x144] sm:$0xf] }
 0x16c   :  { %3518 = vmatpush.bf16.msrb.mxu2 %v6533_v23  ;;  %v8654_v51 = vpop.f32.mrf.mxu2  ;;  %v6598_v23 = vld [vmem:[#allocation17 + $0x290] sm:$0xf0]  ;;  %v6473_v62 = vor.u32 %v7742_v49, %v6470_v50  ;;  %v6441_v49 = vor.u32 %v7734_v61, %v6438_v32  ;;  %v7698_v50 = vld [vmem:[#allocation17 + $0x24] sm:$0xf]  ;;  %v6396_v32 = vld [vmem:[#allocation17 + $0xe8] sm:$0xf] }
 0x16d   :  { %3532 = vmatpush.bf16.msrb.mxu3 %v6661_v53  ;;  %3491 = vmatmul.bf16.vlgmr.msrb.gmra.mxu0 %v8507_v45  ;;  %v8656_v52 = vpop.f32.mrf.mxu3  ;;  %v7806_v53 = vld [vmem:[#allocation17 + $0x384] sm:$0xf]  ;;  %v6601_v55 = vor.u32 %v7774_v37, %v6598_v23  ;;  %v6294_v37 = vld [vmem:[#allocation17 + $0x30] sm:$0xf0] }
 0x16e   :  { %3539 = vmatpush.bf16.msra.mxu0 %v6393_v58  ;;  %3505 = vmatmul.bf16.vlgmr.msrb.gmra.mxu1 %v8511_v47  ;;  %v6726_v58 = vld [vmem:[#allocation17 + $0x390] sm:$0xf0] }
 0x16f   :  { %3553 = vmatpush.bf16.msra.mxu1 %v6521_v54  ;;  %3519 = vmatmul.bf16.vlgmr.msrb.gmra.mxu2 %v8505_v44  ;;  %v6345_v54 = vor.u32 %v7710_v36, %v6342_v39  ;;  %v6729_v28 = vor.u32 %v7806_v53, %v6726_v58  ;;  %v6694_v36 = vld [vmem:[#allocation17 + $0x350] sm:$0xf0] }
 0x170   :  { %3567 = vmatpush.bf16.msra.mxu2 %v6649_v1  ;;  %3533 = vmatmul.bf16.vlgmr.msrb.gmra.mxu3 %v8509_v46  ;;  %v6326_v1 = vld [vmem:[#allocation17 + $0x70] sm:$0xf0] }
 0x171   :  { %3581 = vmatpush.bf16.msra.mxu3 %v6777_v56  ;;  %v8658_v56 = vpop.f32.mrf.mxu0  ;;  %v6329_v14 = vor.u32 %v7706_v0, %v6326_v1  ;;  %v6422_v0 = vld [vmem:[#allocation17 + $0x130] sm:$0xf0]  ;;  %v7762_v1 = vld [vmem:[#allocation17 + $0x224] sm:$0xf] }
 0x172   :  { %3540 = vmatpush.bf16.msra.mxu0 %v6377_v6  ;;  %v6582_v6 = vld [vmem:[#allocation17 + $0x270] sm:$0xf0] }
 0x173   :  { %3554 = vmatpush.bf16.msra.mxu1 %v6505_v60  ;;  %v7802_v60 = vld [vmem:[#allocation17 + $0x364] sm:$0xf]  ;;  %v6585_v30 = vor.u32 %v7770_v5, %v6582_v6  ;;  %v6297_v5 = vor.u32 %v7698_v50, %v6294_v37  ;;  %v6662_v61 = vld [vmem:[#allocation17 + $0x310] sm:$0xf0]  ;;  %v7789_v50 = vld [vmem:[#allocation17 + $0x2f4] sm:$0xf0] }
 0x174   :  { %3568 = vmatpush.bf16.msra.mxu2 %v6633_v20  ;;  %v6457_v20 = vor.u32 %v7738_v13, %v6454_v63  ;;  %v6713_v31 = vor.u32 %v7802_v60, %v6710_v19  ;;  %v8662_v39 = vpop.f32.mrf.mxu2  ;;  %v6678_v13 = vld [vmem:[#allocation17 + $0x330] sm:$0xf0]  ;;  %v7694_v63 = vld [vmem:[#allocation17 + $0x4] sm:$0xf]  ;;  %v6780_v37 = vld [vmem:[#allocation17 + $0x3e8] sm:$0xf] }
 0x175   :  { %3582 = vmatpush.bf16.msra.mxu3 %v6761_v17  ;;  %v7702_v17 = vld [vmem:[#allocation17 + $0x44] sm:$0xf]  ;;  %v6278_v60 = vld [vmem:[#allocation17 + $0x10] sm:$0xf0] }
 0x176   :  { %3541 = vmatpush.bf16.msra.mxu0 %v6361_v34  ;;  %v6566_v34 = vld [vmem:[#allocation17 + $0x250] sm:$0xf0]  ;;  %v7726_v19 = vld [vmem:[#allocation17 + $0x104] sm:$0xf] }
 0x177   :  { %3555 = vmatpush.bf16.msra.mxu1 %v6489_v35  ;;  %v7798_v35 = vld [vmem:[#allocation17 + $0x344] sm:$0xf]  ;;  %v6569_v23 = vor.u32 %v7766_v33, %v6566_v34  ;;  %v7725_v33 = vld [vmem:[#allocation17 + $0xf4] sm:$0xf0]  ;;  %v6524_v34 = vld [vmem:[#allocation17 + $0x1e8] sm:$0xf] }
 0x178   :  { %3569 = vmatpush.bf16.msra.mxu2 %v6617_v40  ;;  %v8664_v40 = vpop.f32.mrf.mxu3  ;;  %v6697_v53 = vor.u32 %v7798_v35, %v6694_v36  ;;  %v7757_v35 = vld [vmem:[#allocation17 + $0x1f4] sm:$0xf0]  ;;  %v6652_v36 = vld [vmem:[#allocation17 + $0x2e8] sm:$0xf] }
 0x179   :  { %3583 = vmatpush.bf16.msra.mxu3 %v6745_v41  ;;  %v6313_v41 = vor.u32 %v7702_v17, %v6310_v21  ;;  %v8666_v58 = vpop.f32.mrf.mxu0  ;;  %v7758_v21 = vld [vmem:[#allocation17 + $0x204] sm:$0xf]  ;;  %v6653_v11 = vor.u32 %v7789_v50, %v6652_v36  ;;  %v7749_v36 = vld [vmem:[#allocation17 + $0x1b4] sm:$0xf0] }
 0x17a   :  { %3542 = vmatpush.bf16.msra.mxu0 %v6345_v54  ;;  %v8668_v54 = vpop.f32.mrf.mxu1  ;;  %v7813_v50 = vld [vmem:[#allocation17 + $0x3b4] sm:$0xf0] }
 0x17b   :  { %3556 = vmatpush.bf16.msra.mxu1 %v6473_v62  ;;  %v7730_v62 = vld [vmem:[#allocation17 + $0x124] sm:$0xf] }
 0x17c   :  { %3570 = vmatpush.bf16.msra.mxu2 %v6601_v55  ;;  %v6550_v55 = vld [vmem:[#allocation17 + $0x230] sm:$0xf0]  ;;  %v6425_v6 = vor.u32 %v7730_v62, %v6422_v0  ;;  %v7821_v62 = vld [vmem:[#allocation17 + $0x3f4] sm:$0xf0] }
 0x17d   :  { %3584 = vmatpush.bf16.msra.mxu3 %v6729_v28  ;;  %v7794_v28 = vld [vmem:[#allocation17 + $0x324] sm:$0xf] }
 0x17e   :  { %3543 = vmatpush.bf16.msra.mxu0 %v6329_v14  ;;  %v6406_v14 = vld [vmem:[#allocation17 + $0x110] sm:$0xf0]  ;;  %v6681_v17 = vor.u32 %v7794_v28, %v6678_v13  ;;  %v6525_v28 = vor.u32 %v7757_v35, %v6524_v34  ;;  %v6380_v13 = vld [vmem:[#allocation17 + $0xc8] sm:$0xf] }
 0x17f   :  { %3557 = vmatpush.bf16.msra.mxu1 %v6457_v20  ;;  %v6553_v20 = vor.u32 %v7762_v1, %v6550_v55  ;;  %v6397_v55 = vor.u32 %v7725_v33, %v6396_v32  ;;  %v7717_v32 = vld [vmem:[#allocation17 + $0xb4] sm:$0xf0]  ;;  %v6492_v35 = vld [vmem:[#allocation17 + $0x1a8] sm:$0xf] }
 0x180   :  { %3571 = vmatpush.bf16.msra.mxu2 %v6585_v30  ;;  %v6534_v30 = vld [vmem:[#allocation17 + $0x210] sm:$0xf0] }
 0x181   :  { %3585 = vmatpush.bf16.msra.mxu3 %v6713_v31  ;;  %v7790_v31 = vld [vmem:[#allocation17 + $0x304] sm:$0xf]  ;;  %v6537_v0 = vor.u32 %v7758_v21, %v6534_v30  ;;  %v7817_v21 = vld [vmem:[#allocation17 + $0x3d4] sm:$0xf0]  ;;  %v6381_v30 = vor.u32 %v7721_v57, %v6380_v13  ;;  %v6493_v57 = vor.u32 %v7749_v36, %v6492_v35  ;;  %v6476_v13 = vld [vmem:[#allocation17 + $0x188] sm:$0xf] }
 0x182   :  { %3544 = vmatpush.bf16.msra.mxu0 %v6313_v41  ;;  %v6281_v41 = vor.u32 %v7694_v63, %v6278_v60  ;;  %v6665_v1 = vor.u32 %v7790_v31, %v6662_v61  ;;  %v8676_v63 = vpop.f32.mrf.mxu1  ;;  %v6508_v60 = vld [vmem:[#allocation17 + $0x1c8] sm:$0xf]  ;;  %v7741_v36 = vld [vmem:[#allocation17 + $0x174] sm:$0xf0] }
 0x183   :  { %3558 = vmatpush.bf16.msra.mxu1 %v6441_v49  ;;  %v6409_v49 = vor.u32 %v7726_v19, %v6406_v14  ;;  %v7753_v19 = vld [vmem:[#allocation17 + $0x1d4] sm:$0xf0]  ;;  %v6636_v14 = vld [vmem:[#allocation17 + $0x2c8] sm:$0xf] }
 0x184   :  { %3572 = vmatpush.bf16.msra.mxu2 %v6569_v23  ;;  %v8670_v23 = vpop.f32.mrf.mxu2  ;;  %v6509_v31 = vor.u32 %v7753_v19, %v6508_v60  ;;  %v6364_v61 = vld [vmem:[#allocation17 + $0xa8] sm:$0xf]  ;;  %v1829_v19 = vadd.f32 %v8616_v59, %v1815_v29 }
 0x185   :  { %3586 = vmatpush.bf16.msra.mxu3 %v6697_v53  ;;  %v8672_v53 = vpop.f32.mrf.mxu3  ;;  %v6604_v60 = vld [vmem:[#allocation17 + $0x288] sm:$0xf] }
 0x186   :  { %3545 = vmatpush.bf16.msra.mxu0 %v6297_v5  ;;  %v6781_v5 = vor.u32 %v7821_v62, %v6780_v37 }
 0x187   :  { %3559 = vmatpush.bf16.msra.mxu1 %v6425_v6  ;;  %v8674_v6 = vpop.f32.mrf.mxu0 }
 0x188   :  { %3573 = vmatpush.bf16.msra.mxu2 %v6553_v20  ;;  %v7785_v20 = vld [vmem:[#allocation17 + $0x2d4] sm:$0xf0] }
 0x189   :  { %3587 = vmatpush.bf16.msra.mxu3 %v6681_v17  ;;  %v6764_v17 = vld [vmem:[#allocation17 + $0x3c8] sm:$0xf]  ;;  %v6637_v33 = vor.u32 %v7785_v20, %v6636_v14  ;;  %v1803_v14 = vadd.f32 %v8622_v7, %v8620_v15  ;;  %v7777_v20 = vld [vmem:[#allocation17 + $0x294] sm:$0xf0] }
 0x18a   :  { %3546 = vmatpush.bf16.msra.mxu0 %v6281_v41  ;;  %v6765_v34 = vor.u32 %v7817_v21, %v6764_v17  ;;  %v7781_v41 = vld [vmem:[#allocation17 + $0x2b4] sm:$0xf0]  ;;  %v6732_v17 = vld [vmem:[#allocation17 + $0x388] sm:$0xf]  ;;  %v6605_v59 = vor.u32 %v7777_v20, %v6604_v60 }
 0x18b   :  { %3560 = vmatpush.bf16.msra.mxu1 %v6409_v49  ;;  %v6748_v49 = vld [vmem:[#allocation17 + $0x3a8] sm:$0xf]  ;;  %v7809_v21 = vld [vmem:[#allocation17 + $0x394] sm:$0xf0]  ;;  %v1817_v29 = vadd.f32 %v8626_v22, %v1803_v14 }
 0x18c   :  { %3574 = vmatpush.bf16.msra.mxu2 %v6537_v0  ;;  %v8685_v37 = vpop.f32.mrf.mxu2  ;;  %v7713_v0 = vld [vmem:[#allocation17 + $0x94] sm:$0xf0]  ;;  %v6733_v15 = vor.u32 %v7809_v21, %v6732_v17  ;;  %v6460_v7 = vld [vmem:[#allocation17 + $0x168] sm:$0xf] }
 0x18d   :  { %3588 = vmatpush.bf16.msra.mxu3 %v6665_v1  ;;  %3547 = vmatmul.bf16.vlgmr.msra.gmra.mxu0 %v8507_v45  ;;  %v8687_v62 = vpop.f32.mrf.mxu3  ;;  %v1857_v1 = vadd.f32 %v8632_v48, %v8630_v42  ;;  %v2435_v48 = vperm.slane %v8692_v9, 0  ;;  %v7737_v60 = vld [vmem:[#allocation17 + $0x154] sm:$0xf0]  ;;  %v6700_v21 = vld [vmem:[#allocation17 + $0x348] sm:$0xf] }
 0x18e   :  { %3595 = vmatpush.bf16.msrb.mxu0 %v6397_v55  ;;  %3561 = vmatmul.bf16.vlgmr.msra.gmra.mxu1 %v8511_v47  ;;  %v6621_v55 = vor.u32 %v7781_v41, %v6620_v26  ;;  %v6588_v26 = vld [vmem:[#allocation17 + $0x268] sm:$0xf]  ;;  %v7769_v14 = vld [vmem:[#allocation17 + $0x254] sm:$0xf0] }
 0x18f   :  { %3609 = vmatpush.bf16.msrb.mxu1 %v6525_v28  ;;  %3575 = vmatmul.bf16.vlgmr.msra.gmra.mxu2 %v8505_v44  ;;  %v6749_v28 = vor.u32 %v7813_v50, %v6748_v49  ;;  %v1871_v35 = vadd.f32 %v8634_v16, %v1857_v1  ;;  %v7773_v49 = vld [vmem:[#allocation17 + $0x274] sm:$0xf0]  ;;  %v6716_v50 = vld [vmem:[#allocation17 + $0x368] sm:$0xf] }
 0x190   :  { %3623 = vmatpush.bf16.msrb.mxu2 %v6653_v11  ;;  %3589 = vmatmul.bf16.vlgmr.msra.gmra.mxu3 %v8509_v46  ;;  %v6365_v11 = vor.u32 %v7717_v32, %v6364_v61  ;;  %v6349_v61 = vor.u32 %v7713_v0, %v6348_v43  ;;  %v6461_v0 = vor.u32 %v7741_v36, %v6460_v7  ;;  %v6316_v1 = vld [vmem:[#allocation17 + $0x48] sm:$0xf] }
 0x191   :  { %3637 = vmatpush.bf16.msrb.mxu3 %v6781_v5  ;;  %v7745_v5 = vld [vmem:[#allocation17 + $0x194] sm:$0xf0]  ;;  %v6589_v22 = vor.u32 %v7773_v49, %v6588_v26  ;;  %v6428_v26 = vld [vmem:[#allocation17 + $0x128] sm:$0xf] }
 0x192   :  { %3596 = vmatpush.bf16.msrb.mxu0 %v6381_v30  ;;  %v2330_v30 = vpop.f32.mrf.mxu0  ;;  %v6477_v32 = vor.u32 %v7745_v5, %v6476_v13  ;;  %v1885_v13 = vadd.f32 %v8636_v4, %v1871_v35  ;;  %v6300_v35 = vld [vmem:[#allocation17 + $0x28] sm:$0xf]  ;;  %v7765_v49 = vld [vmem:[#allocation17 + $0x234] sm:$0xf0] }
 0x193   :  { %3610 = vmatpush.bf16.msrb.mxu1 %v6509_v31  ;;  %v2344_v31 = vpop.f32.mrf.mxu1  ;;  %v2331_v42 = vadd.f32 %v2330_v30, %v1829_v19  ;;  %v6572_v19 = vld [vmem:[#allocation17 + $0x248] sm:$0xf]  ;;  %v7801_v30 = vld [vmem:[#allocation17 + $0x354] sm:$0xf0] }
 0x194   :  { %3624 = vmatpush.bf16.msrb.mxu2 %v6637_v33  ;;  %v6332_v33 = vld [vmem:[#allocation17 + $0x68] sm:$0xf]  ;;  %v2358_v20 = vpop.f32.mrf.mxu2  ;;  %v6573_v7 = vor.u32 %v7769_v14, %v6572_v19  ;;  %v6701_v36 = vor.u32 %v7801_v30, %v6700_v21  ;;  %v7793_v19 = vld [vmem:[#allocation17 + $0x314] sm:$0xf0]  ;;  %v6398_v21 = vld [vmem:[#allocation17 + $0xf8] sm:$0xf0] }
 0x195   :  { %3638 = vmatpush.bf16.msrb.mxu3 %v6765_v34  ;;  %v7709_v34 = vld [vmem:[#allocation17 + $0x74] sm:$0xf0]  ;;  %v2345_v41 = vadd.f32 %v2344_v31, %v2331_v42  ;;  %v2372_v17 = vpop.f32.mrf.mxu3  ;;  %v2359_v42 = vadd.f32 %v2358_v20, %v1885_v13 }
 0x196   :  { %3597 = vmatpush.bf16.msrb.mxu0 %v6365_v11  ;;  %v7805_v11 = vld [vmem:[#allocation17 + $0x374] sm:$0xf0]  ;;  %v6333_v16 = vor.u32 %v7709_v34, %v6332_v33 }
 0x197   :  { %3611 = vmatpush.bf16.msrb.mxu1 %v6493_v57  ;;  %v1859_v57 = vadd.f32 %v8640_v25, %v8638_v24  ;;  %v2443_v43 = vadd.f32 %v2435_v48, %v2345_v41  ;;  %v6717_v5 = vor.u32 %v7805_v11, %v6716_v50  ;;  %v1831_v24 = vadd.f32 %v8628_v38, %v1817_v29  ;;  %v6556_v29 = vld [vmem:[#allocation17 + $0x228] sm:$0xf]  ;;  %v7797_v11 = vld [vmem:[#allocation17 + $0x334] sm:$0xf0] }
 0x198   :  { %3625 = vmatpush.bf16.msrb.mxu2 %v6621_v55  ;;  %v7705_v55 = vld [vmem:[#allocation17 + $0x54] sm:$0xf0]  ;;  %v2373_v38 = vadd.f32 %v2372_v17, %v2359_v42  ;;  %v6684_v50 = vld [vmem:[#allocation17 + $0x328] sm:$0xf]  ;;  %v7723_v17 = vld [vmem:[#allocation17 + $0xec] sm:$0xf] }
 0x199   :  { %3639 = vmatpush.bf16.msrb.mxu3 %v6749_v28  ;;  %v6444_v28 = vld [vmem:[#allocation17 + $0x148] sm:$0xf]  ;;  %v2451_v25 = vmax.f32 %v2443_v43, 0.0  ;;  %v1873_v31 = vadd.f32 %v8642_v12, %v1859_v57  ;;  %v6317_v33 = vor.u32 %v7705_v55, %v6316_v1  ;;  %v7733_v12 = vld [vmem:[#allocation17 + $0x134] sm:$0xf0]  ;;  %v6685_v20 = vor.u32 %v7797_v11, %v6684_v50 }
 0x19a   :  { %3598 = vmatpush.bf16.msrb.mxu0 %v6349_v61  ;;  %v2436_v61 = vperm.slane %v8692_v9, 1  ;;  %v2332_v4 = vpop.f32.mrf.mxu0  ;;  %v6445_v34 = vor.u32 %v7737_v60, %v6444_v28  ;;  %v6284_v43 = vld [vmem:[#allocation17 + $0x8] sm:$0xf]  ;;  %v7729_v1 = vld [vmem:[#allocation17 + $0x114] sm:$0xf0]  ;;  %v6429_v13 = vor.u32 %v7733_v12, %v6428_v26  ;;  %v6401_v26 = vor.u32 %v7723_v17, %v6398_v21 }
 0x19b   :  { %3612 = vmatpush.bf16.msrb.mxu1 %v6477_v32  ;;  %2459 = vst [vmem:[#allocation20] sm:$0xff] %v2451_v25  ;;  %v2333_v32 = vadd.f32 %v2332_v4, %v1831_v24  ;;  %v6668_v60 = vld [vmem:[#allocation17 + $0x308] sm:$0xf]  ;;  %v1887_v14 = vadd.f32 %v8644_v27, %v1873_v31  ;;  %v6557_v25 = vor.u32 %v7765_v49, %v6556_v29  ;;  %v6526_v4 = vld [vmem:[#allocation17 + $0x1f8] sm:$0xf0] }
 0x19c   :  { %3626 = vmatpush.bf16.msrb.mxu2 %v6605_v59  ;;  %v7701_v59 = vld [vmem:[#allocation17 + $0x34] sm:$0xf0]  ;;  %v2444_v57 = vadd.f32 %v2436_v61, %v2373_v38  ;;  %v2360_v42 = vpop.f32.mrf.mxu2  ;;  %v6782_v38 = vld [vmem:[#allocation17 + $0x3f8] sm:$0xf0]  ;;  %v7719_v29 = vld [vmem:[#allocation17 + $0xcc] sm:$0xf] }
 0x19d   :  { %3640 = vmatpush.bf16.msrb.mxu3 %v6733_v15  ;;  %v2346_v15 = vpop.f32.mrf.mxu1  ;;  %v6301_v28 = vor.u32 %v7701_v59, %v6300_v35  ;;  %v2374_v35 = vpop.f32.mrf.mxu3  ;;  %v7819_v59 = vld [vmem:[#allocation17 + $0x3ec] sm:$0xf]  ;;  %v6750_v21 = vld [vmem:[#allocation17 + $0x3b8] sm:$0xf0] }
 0x19e   :  { %3599 = vmatpush.bf16.msrb.mxu0 %v6333_v16  ;;  %v2347_v41 = vadd.f32 %v2346_v15, %v2333_v32  ;;  %v7697_v16 = vld [vmem:[#allocation17 + $0x14] sm:$0xf0]  ;;  %v2452_v24 = vmax.f32 %v2444_v57, 0.0  ;;  %v2361_v32 = vadd.f32 %v2360_v42, %v1887_v14  ;;  %v6785_v11 = vor.u32 %v7819_v59, %v6782_v38  ;;  %v7751_v57 = vld [vmem:[#allocation17 + $0x1cc] sm:$0xf] }
 0x19f   :  { %3613 = vmatpush.bf16.msrb.mxu1 %v6461_v0  ;;  %v6412_v0 = vld [vmem:[#allocation17 + $0x108] sm:$0xf]  ;;  %v6285_v27 = vor.u32 %v7697_v16, %v6284_v43  ;;  %v7783_v43 = vld [vmem:[#allocation17 + $0x2cc] sm:$0xf]  ;;  %v1913_v16 = vadd.f32 %v8648_v2, %v8646_v18  ;;  %v6494_v2 = vld [vmem:[#allocation17 + $0x1b8] sm:$0xf0]  ;;  %v1915_v59 = vadd.f32 %v8660_v3, %v8658_v56 }
 0x1a0   :  { %3627 = vmatpush.bf16.msrb.mxu2 %v6589_v22  ;;  %v2447_v55 = vadd.f32 %v2435_v48, %v2347_v41  ;;  %v6540_v22 = vld [vmem:[#allocation17 + $0x208] sm:$0xf]  ;;  %v7755_v48 = vld [vmem:[#allocation17 + $0x1ec] sm:$0xf]  ;;  %2460 = vst [vmem:[#allocation20 + $0x8] sm:$0xff] %v2452_v24  ;;  %v6413_v31 = vor.u32 %v7729_v1, %v6412_v0  ;;  %v2375_v15 = vadd.f32 %v2374_v35, %v2361_v32 }
 0x1a1   :  { %3641 = vmatpush.bf16.msrb.mxu3 %v6717_v5  ;;  %v7761_v5 = vld [vmem:[#allocation17 + $0x214] sm:$0xf0]  ;;  %v6529_v12 = vor.u32 %v7755_v48, %v6526_v4  ;;  %v6382_v41 = vld [vmem:[#allocation17 + $0xd8] sm:$0xf0]  ;;  %v7815_v1 = vld [vmem:[#allocation17 + $0x3cc] sm:$0xf] }
 0x1a2   :  { %3600 = vmatpush.bf16.msrb.mxu0 %v6317_v33  ;;  %v2455_v30 = vmax.f32 %v2447_v55, 0.0  ;;  %v7787_v33 = vld [vmem:[#allocation17 + $0x2ec] sm:$0xf]  ;;  %v2448_v49 = vadd.f32 %v2436_v61, %v2375_v15  ;;  %v6510_v55 = vld [vmem:[#allocation17 + $0x1d8] sm:$0xf0] }
 0x1a3   :  { %3614 = vmatpush.bf16.msrb.mxu1 %v6445_v34  ;;  %v6654_v34 = vld [vmem:[#allocation17 + $0x2f8] sm:$0xf0]  ;;  %v6513_v61 = vor.u32 %v7751_v57, %v6510_v55  ;;  %v7779_v24 = vld [vmem:[#allocation17 + $0x2ac] sm:$0xf]  ;;  %v1929_v55 = vadd.f32 %v8662_v39, %v1915_v59 }
 0x1a4   :  { %3628 = vmatpush.bf16.msrb.mxu2 %v6573_v7  ;;  %2463 = vst [vmem:[#allocation20 + $0x20] sm:$0xff] %v2455_v30  ;;  %v6541_v7 = vor.u32 %v7761_v5, %v6540_v22  ;;  %v6657_v50 = vor.u32 %v7787_v33, %v6654_v34  ;;  %v6638_v0 = vld [vmem:[#allocation17 + $0x2d8] sm:$0xf0]  ;;  %v6385_v22 = vor.u32 %v7719_v29, %v6382_v41  ;;  %v7715_v5 = vld [vmem:[#allocation17 + $0xac] sm:$0xf] }
 0x1a5   :  { %3642 = vmatpush.bf16.msrb.mxu3 %v6701_v36  ;;  %v6669_v36 = vor.u32 %v7793_v19, %v6668_v60  ;;  %v6366_v60 = vld [vmem:[#allocation17 + $0xb8] sm:$0xf0]  ;;  %v7747_v19 = vld [vmem:[#allocation17 + $0x1ac] sm:$0xf]  ;;  %v6641_v14 = vor.u32 %v7783_v43, %v6638_v0 }
 0x1a6   :  { %3601 = vmatpush.bf16.msrb.mxu0 %v6301_v28  ;;  %v6766_v28 = vld [vmem:[#allocation17 + $0x3d8] sm:$0xf0]  ;;  %v7811_v17 = vld [vmem:[#allocation17 + $0x3ac] sm:$0xf]  ;;  %v6369_v30 = vor.u32 %v7715_v5, %v6366_v60  ;;  %v6497_v42 = vor.u32 %v7747_v19, %v6494_v2 }
 0x1a7   :  { %3615 = vmatpush.bf16.msrb.mxu1 %v6429_v13  ;;  %v2456_v13 = vmax.f32 %v2448_v49, 0.0  ;;  %v6769_v18 = vor.u32 %v7815_v1, %v6766_v28  ;;  %v7711_v48 = vld [vmem:[#allocation17 + $0x8c] sm:$0xf]  ;;  %v6350_v4 = vld [vmem:[#allocation17 + $0x98] sm:$0xf0]  ;;  %v6753_v33 = vor.u32 %v7811_v17, %v6750_v21  ;;  %v1971_v28 = vadd.f32 %v8676_v63, %v8674_v6 }
 0x1a8   :  { %3629 = vmatpush.bf16.msrb.mxu2 %v6557_v25  ;;  %v1927_v25 = vadd.f32 %v8654_v51, %v1913_v16  ;;  %v1969_v51 = vadd.f32 %v8668_v54, %v8666_v58  ;;  %v7743_v34 = vld [vmem:[#allocation17 + $0x18c] sm:$0xf]  ;;  %v6478_v35 = vld [vmem:[#allocation17 + $0x198] sm:$0xf0]  ;;  %v2437_v54 = vperm.slane %v8692_v9, 2  ;;  %v1943_v6 = vadd.f32 %v8664_v40, %v1929_v55 }
 0x1a9   :  { %3643 = vmatpush.bf16.msrb.mxu3 %v6685_v20  ;;  %2464 = vst [vmem:[#allocation20 + $0x28] sm:$0xff] %v2456_v13  ;;  %v6622_v20 = vld [vmem:[#allocation17 + $0x2b8] sm:$0xf0]  ;;  %v7807_v15 = vld [vmem:[#allocation17 + $0x38c] sm:$0xf]  ;;  %v6481_v29 = vor.u32 %v7743_v34, %v6478_v35 }
 0x1aa   :  { %3602 = vmatpush.bf16.msrb.mxu0 %v6285_v27  ;;  %v6625_v32 = vor.u32 %v7779_v24, %v6622_v20  ;;  %v7775_v27 = vld [vmem:[#allocation17 + $0x28c] sm:$0xf]  ;;  %v6606_v38 = vld [vmem:[#allocation17 + $0x298] sm:$0xf0] }
 0x1ab   :  { %3616 = vmatpush.bf16.msrb.mxu1 %v6413_v31  ;;  %v1941_v31 = vadd.f32 %v8656_v52, %v1927_v25  ;;  %v7707_v41 = vld [vmem:[#allocation17 + $0x6c] sm:$0xf]  ;;  %v6334_v49 = vld [vmem:[#allocation17 + $0x78] sm:$0xf0]  ;;  %v6609_v52 = vor.u32 %v7775_v27, %v6606_v38 }
 0x1ac   :  { %3630 = vmatpush.bf16.msrb.mxu2 %v6541_v7  ;;  %v6734_v7 = vld [vmem:[#allocation17 + $0x398] sm:$0xf0]  ;;  %v7739_v3 = vld [vmem:[#allocation17 + $0x16c] sm:$0xf] }
 0x1ad   :  { %3644 = vmatpush.bf16.msrb.mxu3 %v6669_v36  ;;  %3603 = vmatmul.bf16.vlgmr.msrb.gmra.mxu0 %v8507_v45  ;;  %v2386_v36 = vpop.f32.mrf.mxu0  ;;  %v6737_v56 = vor.u32 %v7807_v15, %v6734_v7  ;;  %v7771_v57 = vld [vmem:[#allocation17 + $0x26c] sm:$0xf]  ;;  %v6590_v16 = vld [vmem:[#allocation17 + $0x278] sm:$0xf0] }
 0x1ae   :  { %3651 = vmatpush.bf16.msra.mxu0 %v6401_v26  ;;  %3617 = vmatmul.bf16.vlgmr.msrb.gmra.mxu1 %v8511_v47  ;;  %v2400_v26 = vpop.f32.mrf.mxu1  ;;  %v2387_v58 = vadd.f32 %v2386_v36, %v1941_v31  ;;  %v7803_v0 = vld [vmem:[#allocation17 + $0x36c] sm:$0xf]  ;;  %v6718_v1 = vld [vmem:[#allocation17 + $0x378] sm:$0xf0]  ;;  %v6593_v39 = vor.u32 %v7771_v57, %v6590_v16 }
 0x1af   :  { %3665 = vmatpush.bf16.msra.mxu1 %v6529_v12  ;;  %3631 = vmatmul.bf16.vlgmr.msrb.gmra.mxu2 %v8505_v44  ;;  %v6353_v12 = vor.u32 %v7711_v48, %v6350_v4  ;;  %v6318_v5 = vld [vmem:[#allocation17 + $0x58] sm:$0xf0]  ;;  %v7735_v60 = vld [vmem:[#allocation17 + $0x14c] sm:$0xf]  ;;  %v2438_v48 = vperm.slane %v8692_v9, 3 }
 0x1b0   :  { %3679 = vmatpush.bf16.msra.mxu2 %v6657_v50  ;;  %3645 = vmatmul.bf16.vlgmr.msrb.gmra.mxu3 %v8509_v46  ;;  %v1983_v50 = vadd.f32 %v8670_v23, %v1969_v51  ;;  %v2401_v43 = vadd.f32 %v2400_v26, %v2387_v58  ;;  %v6337_v23 = vor.u32 %v7707_v41, %v6334_v49  ;;  %v7767_v2 = vld [vmem:[#allocation17 + $0x24c] sm:$0xf]  ;;  %v6574_v24 = vld [vmem:[#allocation17 + $0x258] sm:$0xf0]  ;;  %v7908_v9 = vld [vmem:[#allocation17 + $0x1ac] sm:$0xf0] }
 0x1b1   :  { %3693 = vmatpush.bf16.msra.mxu3 %v6785_v11  ;;  %v6462_v11 = vld [vmem:[#allocation17 + $0x178] sm:$0xf0]  ;;  %v7799_v17 = vld [vmem:[#allocation17 + $0x34c] sm:$0xf]  ;;  %v6577_v27 = vor.u32 %v7767_v2, %v6574_v24  ;;  %v8012_v2 = vld [vmem:[#allocation17 + $0x4ec] sm:$0xf0] }
 0x1b2   :  { %3652 = vmatpush.bf16.msra.mxu0 %v6385_v22  ;;  %v2445_v13 = vadd.f32 %v2437_v54, %v2401_v43  ;;  %v6465_v22 = vor.u32 %v7739_v3, %v6462_v11  ;;  %v1997_v19 = vadd.f32 %v8672_v53, %v1983_v50  ;;  %v2414_v25 = vpop.f32.mrf.mxu2  ;;  %v6702_v21 = vld [vmem:[#allocation17 + $0x358] sm:$0xf0]  ;;  %v7731_v59 = vld [vmem:[#allocation17 + $0x12c] sm:$0xf] }
 0x1b3   :  { %3666 = vmatpush.bf16.msra.mxu1 %v6513_v61  ;;  %v7703_v61 = vld [vmem:[#allocation17 + $0x4c] sm:$0xf]  ;;  %v2428_v20 = vpop.f32.mrf.mxu3  ;;  %v6302_v34 = vld [vmem:[#allocation17 + $0x38] sm:$0xf0]  ;;  %v6705_v31 = vor.u32 %v7799_v17, %v6702_v21  ;;  %v6884_v17 = vld [vmem:[#allocation17 + $0x1c0] sm:$0xf] }
 0x1b4   :  { %3680 = vmatpush.bf16.msra.mxu2 %v6641_v14  ;;  %v6721_v14 = vor.u32 %v7803_v0, %v6718_v1  ;;  %v2453_v63 = vmax.f32 %v2445_v13, 0.0  ;;  %v6321_v51 = vor.u32 %v7703_v61, %v6318_v5  ;;  %v7763_v38 = vld [vmem:[#allocation17 + $0x22c] sm:$0xf]  ;;  %v6558_v7 = vld [vmem:[#allocation17 + $0x238] sm:$0xf0] }
 0x1b5   :  { %3694 = vmatpush.bf16.msra.mxu3 %v6769_v18  ;;  %v6446_v18 = vld [vmem:[#allocation17 + $0x158] sm:$0xf0]  ;;  %v2388_v53 = vpop.f32.mrf.mxu0  ;;  %v7795_v36 = vld [vmem:[#allocation17 + $0x32c] sm:$0xf]  ;;  %v6561_v0 = vor.u32 %v7763_v38, %v6558_v7  ;;  %v7916_v13 = vld [vmem:[#allocation17 + $0x1ec] sm:$0xf0] }
 0x1b6   :  { %3653 = vmatpush.bf16.msra.mxu0 %v6369_v30  ;;  %v1985_v30 = vadd.f32 %v8685_v37, %v1971_v28  ;;  %2461 = vst [vmem:[#allocation20 + $0x10] sm:$0xff] %v2453_v63  ;;  %v2389_v4 = vadd.f32 %v2388_v53, %v1943_v6  ;;  %v2402_v35 = vpop.f32.mrf.mxu1  ;;  %v6430_v37 = vld [vmem:[#allocation17 + $0x138] sm:$0xf0]  ;;  %v7727_v41 = vld [vmem:[#allocation17 + $0x10c] sm:$0xf] }
 0x1b7   :  { %3667 = vmatpush.bf16.msra.mxu1 %v6497_v42  ;;  %v2415_v42 = vadd.f32 %v2414_v25, %v1997_v19  ;;  %v6686_v26 = vld [vmem:[#allocation17 + $0x338] sm:$0xf0]  ;;  %v7759_v3 = vld [vmem:[#allocation17 + $0x20c] sm:$0xf]  ;;  %v6900_v28 = vld [vmem:[#allocation17 + $0x1e0] sm:$0xf] }
 0x1b8   :  { %3681 = vmatpush.bf16.msra.mxu2 %v6625_v32  ;;  %v6449_v32 = vor.u32 %v7735_v60, %v6446_v18  ;;  %v2403_v15 = vadd.f32 %v2402_v35, %v2389_v4  ;;  %v6414_v49 = vld [vmem:[#allocation17 + $0x118] sm:$0xf0]  ;;  %v7791_v57 = vld [vmem:[#allocation17 + $0x30c] sm:$0xf]  ;;  %v1999_v43 = vadd.f32 %v8687_v62, %v1985_v30  ;;  %v6689_v1 = vor.u32 %v7795_v36, %v6686_v26  ;;  %v7948_v61 = vld [vmem:[#allocation17 + $0x2ec] sm:$0xf0] }
 0x1b9   :  { %3695 = vmatpush.bf16.msra.mxu3 %v6753_v33  ;;  %v7699_v33 = vld [vmem:[#allocation17 + $0x2c] sm:$0xf]  ;;  %v2429_v40 = vadd.f32 %v2428_v20, %v2415_v42  ;;  %v6542_v11 = vld [vmem:[#allocation17 + $0x218] sm:$0xf0]  ;;  %v7156_v60 = vld [vmem:[#allocation17 + $0x3e0] sm:$0xf]  ;;  %v6901_v25 = vor.u32 %v7916_v13, %v6900_v28 }
 0x1ba   :  { %3654 = vmatpush.bf16.msra.mxu0 %v6353_v12  ;;  %v7695_v12 = vld [vmem:[#allocation17 + $0xc] sm:$0xf]  ;;  %v2449_v50 = vadd.f32 %v2437_v54, %v2403_v15  ;;  %v6670_v55 = vld [vmem:[#allocation17 + $0x318] sm:$0xf0]  ;;  %v7028_v54 = vld [vmem:[#allocation17 + $0x2e0] sm:$0xf]  ;;  %v6545_v6 = vor.u32 %v7759_v3, %v6542_v11 }
 0x1bb   :  { %3668 = vmatpush.bf16.msra.mxu1 %v6481_v29  ;;  %v2446_v58 = vadd.f32 %v2438_v48, %v2429_v40  ;;  %v6286_v29 = vld [vmem:[#allocation17 + $0x18] sm:$0xf0]  ;;  %v7980_v19 = vld [vmem:[#allocation17 + $0x3ec] sm:$0xf0]  ;;  %v7284_v18 = vld [vmem:[#allocation17 + $0x4e0] sm:$0xf]  ;;  %v6673_v63 = vor.u32 %v7791_v57, %v6670_v55  ;;  %v7029_v20 = vor.u32 %v7948_v61, %v7028_v54 }
 0x1bc   :  { %3682 = vmatpush.bf16.msra.mxu2 %v6609_v52  ;;  %v6305_v52 = vor.u32 %v7699_v33, %v6302_v34  ;;  %v6289_v62 = vor.u32 %v7695_v12, %v6286_v29  ;;  %v7912_v21 = vld [vmem:[#allocation17 + $0x1cc] sm:$0xf0]  ;;  %v7157_v42 = vor.u32 %v7980_v19, %v7156_v60  ;;  %v7285_v53 = vor.u32 %v8012_v2, %v7284_v18  ;;  %v7012_v4 = vld [vmem:[#allocation17 + $0x2c0] sm:$0xf] }
 0x1bd   :  { %3696 = vmatpush.bf16.msra.mxu3 %v6737_v56  ;;  %v6433_v56 = vor.u32 %v7731_v59, %v6430_v37  ;;  %v2454_v16 = vmax.f32 %v2446_v58, 0.0  ;;  %v7976_v33 = vld [vmem:[#allocation17 + $0x3cc] sm:$0xf0]  ;;  %v7268_v34 = vld [vmem:[#allocation17 + $0x4c0] sm:$0xf] }
 0x1be   :  { %3655 = vmatpush.bf16.msra.mxu0 %v6337_v23  ;;  %v2457_v23 = vmax.f32 %v2449_v50, 0.0  ;;  %v8008_v40 = vld [vmem:[#allocation17 + $0x4cc] sm:$0xf0]  ;;  %v6868_v59 = vld [vmem:[#allocation17 + $0x1a0] sm:$0xf] }
 0x1bf   :  { %3669 = vmatpush.bf16.msra.mxu1 %v6465_v22  ;;  %v2416_v22 = vpop.f32.mrf.mxu2  ;;  %2462 = vst [vmem:[#allocation20 + $0x18] sm:$0xff] %v2454_v16  ;;  %v7269_v38 = vor.u32 %v8008_v40, %v7268_v34  ;;  %v7940_v15 = vld [vmem:[#allocation17 + $0x2ac] sm:$0xf0]  ;;  %v7124_v7 = vld [vmem:[#allocation17 + $0x3a0] sm:$0xf]  ;;  %v6869_v12 = vor.u32 %v7908_v9, %v6868_v59 }
 0x1c0   :  { %3683 = vmatpush.bf16.msra.mxu2 %v6593_v39  ;;  %v2417_v5 = vadd.f32 %v2416_v22, %v1999_v43  ;;  %2465 = vst [vmem:[#allocation20 + $0x30] sm:$0xff] %v2457_v23  ;;  %v2430_v39 = vpop.f32.mrf.mxu3  ;;  %v7972_v36 = vld [vmem:[#allocation17 + $0x3ac] sm:$0xf0]  ;;  %v7252_v26 = vld [vmem:[#allocation17 + $0x4a0] sm:$0xf] }
 0x1c1   :  { %3697 = vmatpush.bf16.msra.mxu3 %v6721_v14  ;;  %v6417_v14 = vor.u32 %v7727_v41, %v6414_v49  ;;  %v8004_v58 = vld [vmem:[#allocation17 + $0x4ac] sm:$0xf0]  ;;  %v6852_v41 = vld [vmem:[#allocation17 + $0x180] sm:$0xf]  ;;  %v7125_v50 = vor.u32 %v7972_v36, %v7124_v7 }
 0x1c2   :  { %3656 = vmatpush.bf16.msra.mxu0 %v6321_v51  ;;  %v2431_v24 = vadd.f32 %v2430_v39, %v2417_v5  ;;  %v7944_v51 = vld [vmem:[#allocation17 + $0x2cc] sm:$0xf0]  ;;  %v7236_v11 = vld [vmem:[#allocation17 + $0x480] sm:$0xf] }
 0x1c3   :  { %3670 = vmatpush.bf16.msra.mxu1 %v6449_v32  ;;  %v7140_v32 = vld [vmem:[#allocation17 + $0x3c0] sm:$0xf]  ;;  %v7904_v49 = vld [vmem:[#allocation17 + $0x18c] sm:$0xf0] }
 0x1c4   :  { %3684 = vmatpush.bf16.msra.mxu2 %v6577_v27  ;;  %v2450_v30 = vadd.f32 %v2438_v48, %v2431_v24  ;;  %v6885_v27 = vor.u32 %v7912_v21, %v6884_v17  ;;  %v6996_v48 = vld [vmem:[#allocation17 + $0x2a0] sm:$0xf]  ;;  %v7141_v37 = vor.u32 %v7976_v33, %v7140_v32  ;;  %v7968_v3 = vld [vmem:[#allocation17 + $0x38c] sm:$0xf0] }
 0x1c5   :  { %3698 = vmatpush.bf16.msra.mxu3 %v6705_v31  ;;  %v7013_v31 = vor.u32 %v7944_v51, %v7012_v4  ;;  %v6997_v29 = vor.u32 %v7940_v15, %v6996_v48  ;;  %v8000_v57 = vld [vmem:[#allocation17 + $0x48c] sm:$0xf0]  ;;  %v6836_v55 = vld [vmem:[#allocation17 + $0x160] sm:$0xf] }
 0x1c6   :  { %3657 = vmatpush.bf16.msra.mxu0 %v6305_v52  ;;  %v2458_v35 = vmax.f32 %v2450_v30, 0.0  ;;  %v7253_v52 = vor.u32 %v8004_v58, %v7252_v26  ;;  %v7900_v43 = vld [vmem:[#allocation17 + $0x16c] sm:$0xf0]  ;;  %v7092_v13 = vld [vmem:[#allocation17 + $0x360] sm:$0xf] }
 0x1c7   :  { %3671 = vmatpush.bf16.msra.mxu1 %v6433_v56  ;;  %v7936_v56 = vld [vmem:[#allocation17 + $0x28c] sm:$0xf0]  ;;  %v7220_v22 = vld [vmem:[#allocation17 + $0x460] sm:$0xf]  ;;  %v6837_v61 = vor.u32 %v7900_v43, %v6836_v55 }
 0x1c8   :  { %3685 = vmatpush.bf16.msra.mxu2 %v6561_v0  ;;  %2466 = vst [vmem:[#allocation20 + $0x38] sm:$0xff] %v2458_v35  ;;  %v7237_v0 = vor.u32 %v8000_v57, %v7236_v11  ;;  %v7932_v28 = vld [vmem:[#allocation17 + $0x26c] sm:$0xf0]  ;;  %v6820_v60 = vld [vmem:[#allocation17 + $0x140] sm:$0xf] }
 0x1c9   :  { %3699 = vmatpush.bf16.msra.mxu3 %v6689_v1  ;;  %v6964_v1 = vld [vmem:[#allocation17 + $0x260] sm:$0xf]  ;;  %v7964_v23 = vld [vmem:[#allocation17 + $0x36c] sm:$0xf0]  ;;  %5040 = dma.vmem_to_hbm [thread:$0]  %s5033_s25, 1024, %s5035_s28, [#allocation21], %s8378_s29, %s8378_s29, %s8379_s2  }
 0x1ca   :  { %3658 = vmatpush.bf16.msra.mxu0 %v6289_v62  ;;  %v7996_v54 = vld [vmem:[#allocation17 + $0x46c] sm:$0xf0]  ;;  %v6965_v5 = vor.u32 %v7932_v28, %v6964_v1  ;;  %v7093_v39 = vor.u32 %v7964_v23, %v7092_v13  ;;  %v7076_v2 = vld [vmem:[#allocation17 + $0x340] sm:$0xf]  ;;  %v8751_v40 = vpop.f32.mrf.mxu0  ;;  %v7942_v13 = vld [vmem:[#allocation17 + $0x2c4] sm:$0xf] }
 0x1cb   :  { %3672 = vmatpush.bf16.msra.mxu1 %v6417_v14  ;;  %v7896_v19 = vld [vmem:[#allocation17 + $0x14c] sm:$0xf0]  ;;  %v7221_v62 = vor.u32 %v7996_v54, %v7220_v22  ;;  %v6948_v14 = vld [vmem:[#allocation17 + $0x240] sm:$0xf]  ;;  %v7014_v23 = vld [vmem:[#allocation17 + $0x2d0] sm:$0xf0] }
 0x1cc   :  { %3686 = vmatpush.bf16.msra.mxu2 %v6545_v6  ;;  %v7928_v18 = vld [vmem:[#allocation17 + $0x24c] sm:$0xf0]  ;;  %v7204_v6 = vld [vmem:[#allocation17 + $0x440] sm:$0xf]  ;;  %v7974_v22 = vld [vmem:[#allocation17 + $0x3c4] sm:$0xf] }
 0x1cd   :  { %3700 = vmatpush.bf16.msra.mxu3 %v6673_v63  ;;  %3659 = vmatmul.bf16.vlgmr.msra.gmra.mxu0 %v8507_v45  ;;  %v6980_v45 = vld [vmem:[#allocation17 + $0x280] sm:$0xf]  ;;  %v7960_v24 = vld [vmem:[#allocation17 + $0x34c] sm:$0xf0]  ;;  %v7142_v54 = vld [vmem:[#allocation17 + $0x3d0] sm:$0xf0] }
 0x1ce   :  { %4541 = vmatpush.bf16.msrb.mxu0 %v6901_v25  ;;  %3673 = vmatmul.bf16.vlgmr.msra.gmra.mxu1 %v8511_v47  ;;  %v6853_v47 = vor.u32 %v7904_v49, %v6852_v41  ;;  %v7992_v63 = vld [vmem:[#allocation17 + $0x44c] sm:$0xf0]  ;;  %v6821_v25 = vor.u32 %v7896_v19, %v6820_v60  ;;  %v6804_v17 = vld [vmem:[#allocation17 + $0x120] sm:$0xf]  ;;  %v7077_v30 = vor.u32 %v7960_v24, %v7076_v2  ;;  %v7946_v41 = vld [vmem:[#allocation17 + $0x2e4] sm:$0xf] }
 0x1cf   :  { %4555 = vmatpush.bf16.msrb.mxu1 %v7029_v20  ;;  %3687 = vmatmul.bf16.vlgmr.msra.gmra.mxu2 %v8505_v44  ;;  %v7108_v44 = vld [vmem:[#allocation17 + $0x380] sm:$0xf]  ;;  %v6949_v20 = vor.u32 %v7928_v18, %v6948_v14  ;;  %v7892_v21 = vld [vmem:[#allocation17 + $0x12c] sm:$0xf0]  ;;  %v7030_v49 = vld [vmem:[#allocation17 + $0x2f0] sm:$0xf0]  ;;  %v7145_v2 = vor.u32 %v7974_v22, %v7142_v54 }
 0x1d0   :  { %4569 = vmatpush.bf16.msrb.mxu2 %v7157_v42  ;;  %3701 = vmatmul.bf16.vlgmr.msra.gmra.mxu3 %v8509_v46  ;;  %v6981_v46 = vor.u32 %v7936_v56, %v6980_v45  ;;  %v7109_v16 = vor.u32 %v7968_v3, %v7108_v44  ;;  %v7205_v42 = vor.u32 %v7992_v63, %v7204_v6  ;;  %v7924_v4 = vld [vmem:[#allocation17 + $0x22c] sm:$0xf0]  ;;  %v7060_v51 = vld [vmem:[#allocation17 + $0x320] sm:$0xf]  ;;  %v7158_v56 = vld [vmem:[#allocation17 + $0x3f0] sm:$0xf0] }
 0x1d1   :  { %4583 = vmatpush.bf16.msrb.mxu3 %v7285_v53  ;;  %v6932_v53 = vld [vmem:[#allocation17 + $0x220] sm:$0xf]  ;;  %v7956_v32 = vld [vmem:[#allocation17 + $0x32c] sm:$0xf0]  ;;  %v8010_v44 = vld [vmem:[#allocation17 + $0x4e4] sm:$0xf]  ;;  %v7033_v43 = vor.u32 %v7946_v41, %v7030_v49 }
 0x1d2   :  { %4542 = vmatpush.bf16.msrb.mxu0 %v6885_v27  ;;  %v7188_v33 = vld [vmem:[#allocation17 + $0x420] sm:$0xf]  ;;  %v7988_v34 = vld [vmem:[#allocation17 + $0x42c] sm:$0xf0]  ;;  %v8753_v27 = vpop.f32.mrf.mxu1  ;;  %v6933_v59 = vor.u32 %v7924_v4, %v6932_v53  ;;  %v7286_v3 = vld [vmem:[#allocation17 + $0x4f0] sm:$0xf0]  ;;  %v8755_v11 = vpop.f32.mrf.mxu2 }
 0x1d3   :  { %4556 = vmatpush.bf16.msrb.mxu1 %v7013_v31  ;;  %v6788_v35 = vld [vmem:[#allocation17 + $0x100] sm:$0xf]  ;;  %v6805_v31 = vor.u32 %v7892_v21, %v6804_v17  ;;  %v7888_v9 = vld [vmem:[#allocation17 + $0x10c] sm:$0xf0]  ;;  %v7189_v15 = vor.u32 %v7988_v34, %v7188_v33  ;;  %v7289_v28 = vor.u32 %v8010_v44, %v7286_v3  ;;  %v8759_v60 = vpop.f32.mrf.mxu0  ;;  %v7906_v14 = vld [vmem:[#allocation17 + $0x1a4] sm:$0xf] }
 0x1d4   :  { %4570 = vmatpush.bf16.msrb.mxu2 %v7141_v37  ;;  %v6916_v48 = vld [vmem:[#allocation17 + $0x200] sm:$0xf]  ;;  %v7920_v37 = vld [vmem:[#allocation17 + $0x20c] sm:$0xf0]  ;;  %v6870_v18 = vld [vmem:[#allocation17 + $0x1b0] sm:$0xf0] }
 0x1d5   :  { %4584 = vmatpush.bf16.msrb.mxu3 %v7269_v38  ;;  %v7061_v38 = vor.u32 %v7956_v32, %v7060_v51  ;;  %v7044_v7 = vld [vmem:[#allocation17 + $0x300] sm:$0xf]  ;;  %v7952_v36 = vld [vmem:[#allocation17 + $0x30c] sm:$0xf0]  ;;  %v6917_v45 = vor.u32 %v7920_v37, %v6916_v48  ;;  %v7938_v6 = vld [vmem:[#allocation17 + $0x2a4] sm:$0xf]  ;;  %v6873_v53 = vor.u32 %v7906_v14, %v6870_v18 }
 0x1d6   :  { %4543 = vmatpush.bf16.msrb.mxu0 %v6869_v12  ;;  %v7172_v26 = vld [vmem:[#allocation17 + $0x400] sm:$0xf]  ;;  %v7984_v58 = vld [vmem:[#allocation17 + $0x40c] sm:$0xf0]  ;;  %v7914_v12 = vld [vmem:[#allocation17 + $0x1e4] sm:$0xf]  ;;  %v7045_v57 = vor.u32 %v7952_v36, %v7044_v7 }
 0x1d7   :  { %4557 = vmatpush.bf16.msrb.mxu1 %v6997_v29  ;;  %v6902_v29 = vld [vmem:[#allocation17 + $0x1f0] sm:$0xf0]  ;;  %v8002_v17 = vld [vmem:[#allocation17 + $0x4a4] sm:$0xf]  ;;  %v8775_v44 = vld [vmem:[%s8858_s11] sm:$0xf] }
 0x1d8   :  { %4571 = vmatpush.bf16.msrb.mxu2 %v7125_v50  ;;  %v7978_v50 = vld [vmem:[#allocation17 + $0x3e4] sm:$0xf]  ;;  %v6905_v55 = vor.u32 %v7914_v12, %v6902_v29  ;;  %v6998_v63 = vld [vmem:[#allocation17 + $0x2b0] sm:$0xf0] }
 0x1d9   :  { %4585 = vmatpush.bf16.msrb.mxu3 %v7253_v52  ;;  %v6789_v52 = vor.u32 %v7888_v9, %v6788_v35  ;;  %v7161_v1 = vor.u32 %v7978_v50, %v7158_v56  ;;  %v7254_v21 = vld [vmem:[#allocation17 + $0x4b0] sm:$0xf0]  ;;  %v7001_v4 = vor.u32 %v7938_v6, %v6998_v63  ;;  %v7902_v51 = vld [vmem:[#allocation17 + $0x184] sm:$0xf] }
 0x1da   :  { %4544 = vmatpush.bf16.msrb.mxu0 %v6853_v47  ;;  %v7173_v47 = vor.u32 %v7984_v58, %v7172_v26  ;;  %v8761_v19 = vpop.f32.mrf.mxu1  ;;  %v6854_v32 = vld [vmem:[#allocation17 + $0x190] sm:$0xf0]  ;;  %v8767_v33 = vpop.f32.mrf.mxu2  ;;  %v7257_v35 = vor.u32 %v8002_v17, %v7254_v21  ;;  %v7966_v9 = vld [vmem:[#allocation17 + $0x384] sm:$0xf] }
 0x1db   :  { %4558 = vmatpush.bf16.msrb.mxu1 %v6981_v46  ;;  %v8757_v46 = vpop.f32.mrf.mxu3  ;;  %v7110_v37 = vld [vmem:[#allocation17 + $0x390] sm:$0xf0]  ;;  %v6857_v26 = vor.u32 %v7902_v51, %v6854_v32  ;;  %v7898_v29 = vld [vmem:[#allocation17 + $0x164] sm:$0xf] }
 0x1dc   :  { %4572 = vmatpush.bf16.msrb.mxu2 %v7109_v16  ;;  %v7910_v16 = vld [vmem:[#allocation17 + $0x1c4] sm:$0xf]  ;;  %v6838_v41 = vld [vmem:[#allocation17 + $0x170] sm:$0xf0]  ;;  %v7113_v50 = vor.u32 %v7966_v9, %v7110_v37 }
 0x1dd   :  { %4586 = vmatpush.bf16.msrb.mxu3 %v7237_v0  ;;  %v6886_v0 = vld [vmem:[#allocation17 + $0x1d0] sm:$0xf0]  ;;  %v7930_v49 = vld [vmem:[#allocation17 + $0x264] sm:$0xf] }
 0x1de   :  { %4545 = vmatpush.bf16.msrb.mxu0 %v6837_v61  ;;  %v8006_v61 = vld [vmem:[#allocation17 + $0x4c4] sm:$0xf]  ;;  %v7094_v3 = vld [vmem:[#allocation17 + $0x370] sm:$0xf0] }
 0x1df   :  { %4559 = vmatpush.bf16.msrb.mxu1 %v6965_v5  ;;  %v7270_v5 = vld [vmem:[#allocation17 + $0x4d0] sm:$0xf0]  ;;  %v7962_v56 = vld [vmem:[#allocation17 + $0x364] sm:$0xf] }
 0x1e0   :  { %4573 = vmatpush.bf16.msrb.mxu2 %v7093_v39  ;;  %v6889_v39 = vor.u32 %v7910_v16, %v6886_v0  ;;  %v7273_v24 = vor.u32 %v8006_v61, %v7270_v5  ;;  %v3709_v16 = vperm.slane %v8775_v44, 0  ;;  %v7894_v0 = vld [vmem:[#allocation17 + $0x144] sm:$0xf]  ;;  %v6950_v54 = vld [vmem:[#allocation17 + $0x250] sm:$0xf0] }
 0x1e1   :  { %4587 = vmatpush.bf16.msrb.mxu3 %v7221_v62  ;;  %v7017_v62 = vor.u32 %v7942_v13, %v7014_v23  ;;  %v7926_v22 = vld [vmem:[#allocation17 + $0x244] sm:$0xf]  ;;  %v7206_v18 = vld [vmem:[#allocation17 + $0x450] sm:$0xf0] }
 0x1e2   :  { %4546 = vmatpush.bf16.msrb.mxu0 %v6821_v25  ;;  %v7970_v25 = vld [vmem:[#allocation17 + $0x3a4] sm:$0xf]  ;;  %v6806_v17 = vld [vmem:[#allocation17 + $0x130] sm:$0xf0] }
 0x1e3   :  { %4560 = vmatpush.bf16.msrb.mxu1 %v6949_v20  ;;  %v7126_v20 = vld [vmem:[#allocation17 + $0x3b0] sm:$0xf0]  ;;  %v8769_v48 = vpop.f32.mrf.mxu3  ;;  %v7958_v61 = vld [vmem:[#allocation17 + $0x344] sm:$0xf] }
 0x1e4   :  { %4574 = vmatpush.bf16.msrb.mxu2 %v7077_v30  ;;  %v8871_v30 = vld [vmem:[#allocation31_spill] sm:$0xff]  ;;  %v7129_v34 = vor.u32 %v7970_v25, %v7126_v20  ;;  %v6953_v25 = vor.u32 %v7926_v22, %v6950_v54  ;;  %v6934_v32 = vld [vmem:[#allocation17 + $0x230] sm:$0xf0]  ;;  %v8013_v22 = vld [vmem:[#allocation17 + $0x4f4] sm:$0xf0] }
 0x1e5   :  { %4588 = vmatpush.bf16.msrb.mxu3 %v7205_v42  ;;  %v8872_v42 = vld [vmem:[#allocation32_spill] sm:$0xff]  ;;  %v7990_v14 = vld [vmem:[#allocation17 + $0x444] sm:$0xf]  ;;  %v7190_v9 = vld [vmem:[#allocation17 + $0x430] sm:$0xf0] }
 0x1e6   :  { %4547 = vmatpush.bf16.msrb.mxu0 %v6805_v31  ;;  %v7934_v31 = vld [vmem:[#allocation17 + $0x284] sm:$0xf] }
 0x1e7   :  { %4561 = vmatpush.bf16.msrb.mxu1 %v6933_v59  ;;  %v6982_v59 = vld [vmem:[#allocation17 + $0x290] sm:$0xf0]  ;;  %v7890_v20 = vld [vmem:[#allocation17 + $0x124] sm:$0xf] }
 0x1e8   :  { %4575 = vmatpush.bf16.msrb.mxu2 %v7061_v38  ;;  %v7998_v38 = vld [vmem:[#allocation17 + $0x484] sm:$0xf]  ;;  %v6985_v58 = vor.u32 %v7934_v31, %v6982_v59  ;;  %v7062_v31 = vld [vmem:[#allocation17 + $0x330] sm:$0xf0] }
 0x1e9   :  { %4589 = vmatpush.bf16.msrb.mxu3 %v7189_v15  ;;  %v7238_v15 = vld [vmem:[#allocation17 + $0x490] sm:$0xf0]  ;;  %v7922_v51 = vld [vmem:[#allocation17 + $0x224] sm:$0xf] }
 0x1ea   :  { %4548 = vmatpush.bf16.msrb.mxu0 %v6789_v52  ;;  %v3492_v7 = vpop.f32.mrf.mxu0  ;;  %v7241_v52 = vor.u32 %v7998_v38, %v7238_v15  ;;  %v7986_v59 = vld [vmem:[#allocation17 + $0x424] sm:$0xf] }
 0x1eb   :  { %4562 = vmatpush.bf16.msrb.mxu1 %v6917_v45  ;;  %v3493_v36 = vadd.f32 %v3492_v7, %v8751_v40  ;;  %v3506_v12 = vpop.f32.mrf.mxu1  ;;  %v6966_v45 = vld [vmem:[#allocation17 + $0x270] sm:$0xf0]  ;;  %v7886_v37 = vld [vmem:[#allocation17 + $0x104] sm:$0xf] }
 0x1ec   :  { %4576 = vmatpush.bf16.msrb.mxu2 %v7045_v57  ;;  %v7994_v57 = vld [vmem:[#allocation17 + $0x464] sm:$0xf]  ;;  %v7222_v40 = vld [vmem:[#allocation17 + $0x470] sm:$0xf0] }
 0x1ed   :  { %4590 = vmatpush.bf16.msrb.mxu3 %v7173_v47  ;;  %4549 = vmatmul.bf16.vlgmr.msrb.gmra.mxu0 %v8871_v30  ;;  %v3507_v47 = vadd.f32 %v3506_v12, %v3493_v36  ;;  %v7225_v13 = vor.u32 %v7994_v57, %v7222_v40  ;;  %v7918_v38 = vld [vmem:[#allocation17 + $0x204] sm:$0xf]  ;;  %v6809_v36 = vor.u32 %v7890_v20, %v6806_v17  ;;  %v6908_v57 = vld [vmem:[#allocation17 + $0x1e8] sm:$0xf]  ;;  %v7917_v40 = vld [vmem:[#allocation17 + $0x1f4] sm:$0xf0] }
 0x1ee   :  { %4597 = vmatpush.bf16.msra.mxu0 %v6905_v55  ;;  %4563 = vmatmul.bf16.vlgmr.msrb.gmra.mxu1 %v8872_v42  ;;  %v6841_v55 = vor.u32 %v7898_v29, %v6838_v41  ;;  %v7950_v12 = vld [vmem:[#allocation17 + $0x304] sm:$0xf]  ;;  %v7193_v41 = vor.u32 %v7986_v59, %v7190_v9  ;;  %v7977_v20 = vld [vmem:[#allocation17 + $0x3d4] sm:$0xf0]  ;;  %v7132_v9 = vld [vmem:[#allocation17 + $0x3a8] sm:$0xf] }
 0x1ef   :  { %4611 = vmatpush.bf16.msra.mxu1 %v7033_v43  ;;  %4577 = vmatmul.bf16.vlgmr.msrb.gmra.mxu2 %v8517_v8  ;;  %v6969_v43 = vor.u32 %v7930_v49, %v6966_v45  ;;  %v7174_v45 = vld [vmem:[#allocation17 + $0x410] sm:$0xf0]  ;;  %v7941_v59 = vld [vmem:[#allocation17 + $0x2b4] sm:$0xf0] }
 0x1f0   :  { %4625 = vmatpush.bf16.msra.mxu2 %v7161_v1  ;;  %4591 = vmatmul.bf16.vlgmr.msrb.gmra.mxu3 %v8521_v10  ;;  %v6822_v1 = vld [vmem:[#allocation17 + $0x150] sm:$0xf0] }
 0x1f1   :  { %4639 = vmatpush.bf16.msra.mxu3 %v7289_v28  ;;  %v7097_v28 = vor.u32 %v7962_v56, %v7094_v3 }
 0x1f2   :  { %4598 = vmatpush.bf16.msra.mxu0 %v6889_v39  ;;  %v3520_v23 = vpop.f32.mrf.mxu2 }
 0x1f3   :  { %4612 = vmatpush.bf16.msra.mxu1 %v7017_v62  ;;  %v3521_v5 = vadd.f32 %v3520_v23, %v3507_v47  ;;  %v3534_v39 = vpop.f32.mrf.mxu3  ;;  %v7078_v62 = vld [vmem:[#allocation17 + $0x350] sm:$0xf0]  ;;  %v7036_v47 = vld [vmem:[#allocation17 + $0x2e8] sm:$0xf] }
 0x1f4   :  { %4626 = vmatpush.bf16.msra.mxu2 %v7145_v2  ;;  %v3494_v2 = vpop.f32.mrf.mxu0  ;;  %v7081_v21 = vor.u32 %v7958_v61, %v7078_v62  ;;  %v7292_v23 = vld [vmem:[#allocation17 + $0x4e8] sm:$0xf] }
 0x1f5   :  { %4640 = vmatpush.bf16.msra.mxu3 %v7273_v24  ;;  %v6825_v24 = vor.u32 %v7894_v0, %v6822_v1  ;;  %v3495_v6 = vadd.f32 %v3494_v2, %v8759_v60  ;;  %v3535_v63 = vadd.f32 %v3534_v39, %v3521_v5  ;;  %v6790_v60 = vld [vmem:[#allocation17 + $0x110] sm:$0xf0]  ;;  %v6909_v39 = vor.u32 %v7917_v40, %v6908_v57  ;;  %v7020_v2 = vld [vmem:[#allocation17 + $0x2c8] sm:$0xf] }
 0x1f6   :  { %4599 = vmatpush.bf16.msra.mxu0 %v6873_v53  ;;  %v7209_v53 = vor.u32 %v7990_v14, %v7206_v18  ;;  %v6793_v1 = vor.u32 %v7886_v37, %v6790_v60  ;;  %v6892_v14 = vld [vmem:[#allocation17 + $0x1c8] sm:$0xf]  ;;  %v7913_v18 = vld [vmem:[#allocation17 + $0x1d4] sm:$0xf0] }
 0x1f7   :  { %4613 = vmatpush.bf16.msra.mxu1 %v7001_v4  ;;  %v3508_v4 = vpop.f32.mrf.mxu1  ;;  %v7973_v37 = vld [vmem:[#allocation17 + $0x3b4] sm:$0xf0]  ;;  %v7260_v60 = vld [vmem:[#allocation17 + $0x4a8] sm:$0xf] }
 0x1f8   :  { %4627 = vmatpush.bf16.msra.mxu2 %v7129_v34  ;;  %v7954_v34 = vld [vmem:[#allocation17 + $0x324] sm:$0xf]  ;;  %v3509_v7 = vadd.f32 %v3508_v4, %v3495_v6  ;;  %v7293_v6 = vor.u32 %v8013_v22, %v7292_v23  ;;  %v7100_v23 = vld [vmem:[#allocation17 + $0x368] sm:$0xf]  ;;  %v7965_v22 = vld [vmem:[#allocation17 + $0x374] sm:$0xf0] }
 0x1f9   :  { %4641 = vmatpush.bf16.msra.mxu3 %v7257_v35  ;;  %v3717_v35 = vadd.f32 %v3709_v16, %v3535_v63  ;;  %v7065_v29 = vor.u32 %v7954_v34, %v7062_v31  ;;  %v7945_v63 = vld [vmem:[#allocation17 + $0x2d4] sm:$0xf0]  ;;  %v7004_v31 = vld [vmem:[#allocation17 + $0x2a8] sm:$0xf] }
 0x1fa   :  { %4600 = vmatpush.bf16.msra.mxu0 %v6857_v26  ;;  %v6937_v26 = vor.u32 %v7922_v51, %v6934_v32  ;;  %v3522_v49 = vpop.f32.mrf.mxu2  ;;  %v7021_v4 = vor.u32 %v7945_v63, %v7020_v2  ;;  %v6876_v51 = vld [vmem:[#allocation17 + $0x1a8] sm:$0xf]  ;;  %v7909_v32 = vld [vmem:[#allocation17 + $0x1b4] sm:$0xf0]  ;;  %v7101_v2 = vor.u32 %v7965_v22, %v7100_v23  ;;  %v7915_v23 = vld [vmem:[#allocation17 + $0x1ec] sm:$0xf] }
 0x1fb   :  { %4614 = vmatpush.bf16.msra.mxu1 %v6985_v58  ;;  %v3725_v15 = vmax.f32 %v3717_v35, 0.0  ;;  %v6918_v58 = vld [vmem:[#allocation17 + $0x210] sm:$0xf0]  ;;  %v3523_v56 = vadd.f32 %v3522_v49, %v3509_v7  ;;  %v3536_v3 = vpop.f32.mrf.mxu3  ;;  %v7005_v7 = vor.u32 %v7941_v59, %v7004_v31  ;;  %v7116_v49 = vld [vmem:[#allocation17 + $0x388] sm:$0xf] }
 0x1fc   :  { %4628 = vmatpush.bf16.msra.mxu2 %v7113_v50  ;;  %v7046_v50 = vld [vmem:[#allocation17 + $0x310] sm:$0xf0]  ;;  %v6956_v63 = vld [vmem:[#allocation17 + $0x248] sm:$0xf]  ;;  %v6910_v22 = vld [vmem:[#allocation17 + $0x1f8] sm:$0xf0] }
 0x1fd   :  { %4642 = vmatpush.bf16.msra.mxu3 %v7241_v52  ;;  %v7982_v52 = vld [vmem:[#allocation17 + $0x404] sm:$0xf]  ;;  %3733 = vst [vmem:[#allocation19] sm:$0xff] %v3725_v15  ;;  %v3537_v0 = vadd.f32 %v3536_v3, %v3523_v56  ;;  %v7049_v54 = vor.u32 %v7950_v12, %v7046_v50  ;;  %v6877_v15 = vor.u32 %v7909_v32, %v6876_v51  ;;  %v7969_v50 = vld [vmem:[#allocation17 + $0x394] sm:$0xf0] }
 0x1fe   :  { %4601 = vmatpush.bf16.msra.mxu0 %v6841_v55  ;;  %v7949_v55 = vld [vmem:[#allocation17 + $0x2f4] sm:$0xf0]  ;;  %v7177_v61 = vor.u32 %v7982_v52, %v7174_v45  ;;  %v7244_v52 = vld [vmem:[#allocation17 + $0x488] sm:$0xf] }
 0x1ff   :  { %4615 = vmatpush.bf16.msra.mxu1 %v6969_v43  ;;  %v7164_v43 = vld [vmem:[#allocation17 + $0x3e8] sm:$0xf]  ;;  %v3721_v5 = vadd.f32 %v3709_v16, %v3537_v0  ;;  %v7037_v62 = vor.u32 %v7949_v55, %v7036_v47  ;;  %v6893_v16 = vor.u32 %v7913_v18, %v6892_v14  ;;  %v8001_v45 = vld [vmem:[#allocation17 + $0x494] sm:$0xf0]  ;;  %v7117_v0 = vor.u32 %v7969_v50, %v7116_v49 }
 0x200   :  { %4629 = vmatpush.bf16.msra.mxu2 %v7097_v28  ;;  %v6921_v28 = vor.u32 %v7918_v38, %v6918_v58  ;;  %v8005_v38 = vld [vmem:[#allocation17 + $0x4b4] sm:$0xf0]  ;;  %v7133_v58 = vor.u32 %v7973_v37, %v7132_v9  ;;  %v6844_v55 = vld [vmem:[#allocation17 + $0x168] sm:$0xf] }
 0x201   :  { %4643 = vmatpush.bf16.msra.mxu3 %v7225_v13  ;;  %v7981_v13 = vld [vmem:[#allocation17 + $0x3f4] sm:$0xf0]  ;;  %v3729_v17 = vmax.f32 %v3721_v5, 0.0  ;;  %v7261_v12 = vor.u32 %v8005_v38, %v7260_v60  ;;  %v6828_v14 = vld [vmem:[#allocation17 + $0x148] sm:$0xf] }
 0x202   :  { %4602 = vmatpush.bf16.msra.mxu0 %v6825_v24  ;;  %v7165_v24 = vor.u32 %v7981_v13, %v7164_v43  ;;  %v7901_v43 = vld [vmem:[#allocation17 + $0x174] sm:$0xf0]  ;;  %v6812_v59 = vld [vmem:[#allocation17 + $0x128] sm:$0xf] }
 0x203   :  { %4616 = vmatpush.bf16.msra.mxu1 %v6953_v25  ;;  %v7148_v25 = vld [vmem:[#allocation17 + $0x3c8] sm:$0xf]  ;;  %3737 = vst [vmem:[#allocation19 + $0x20] sm:$0xff] %v3729_v17  ;;  %v7933_v13 = vld [vmem:[#allocation17 + $0x274] sm:$0xf0] }
 0x204   :  { %4630 = vmatpush.bf16.msra.mxu2 %v7081_v21  ;;  %v7276_v21 = vld [vmem:[#allocation17 + $0x4c8] sm:$0xf]  ;;  %v7149_v34 = vor.u32 %v7977_v20, %v7148_v25  ;;  %v7897_v18 = vld [vmem:[#allocation17 + $0x154] sm:$0xf0] }
 0x205   :  { %4644 = vmatpush.bf16.msra.mxu3 %v7209_v53  ;;  %v8009_v53 = vld [vmem:[#allocation17 + $0x4d4] sm:$0xf0]  ;;  %v7084_v20 = vld [vmem:[#allocation17 + $0x348] sm:$0xf]  ;;  %v6829_v32 = vor.u32 %v7897_v18, %v6828_v14  ;;  %v7166_v18 = vld [vmem:[#allocation17 + $0x3f8] sm:$0xf0] }
 0x206   :  { %4603 = vmatpush.bf16.msra.mxu0 %v6809_v36  ;;  %v7277_v35 = vor.u32 %v8009_v53, %v7276_v21  ;;  %v6860_v36 = vld [vmem:[#allocation17 + $0x188] sm:$0xf]  ;;  %v7929_v25 = vld [vmem:[#allocation17 + $0x254] sm:$0xf0] }
 0x207   :  { %4617 = vmatpush.bf16.msra.mxu1 %v6937_v26  ;;  %v7905_v26 = vld [vmem:[#allocation17 + $0x194] sm:$0xf0]  ;;  %v6957_v31 = vor.u32 %v7929_v25, %v6956_v63  ;;  %v6924_v49 = vld [vmem:[#allocation17 + $0x208] sm:$0xf] }
 0x208   :  { %4631 = vmatpush.bf16.msra.mxu2 %v7065_v29  ;;  %v6988_v29 = vld [vmem:[#allocation17 + $0x288] sm:$0xf]  ;;  %v6861_v57 = vor.u32 %v7905_v26, %v6860_v36  ;;  %v7961_v53 = vld [vmem:[#allocation17 + $0x354] sm:$0xf0] }
 0x209   :  { %4645 = vmatpush.bf16.msra.mxu3 %v7193_v41  ;;  %v7937_v41 = vld [vmem:[#allocation17 + $0x294] sm:$0xf0]  ;;  %v7085_v37 = vor.u32 %v7961_v53, %v7084_v20  ;;  %v7068_v36 = vld [vmem:[#allocation17 + $0x328] sm:$0xf]  ;;  %v6913_v20 = vor.u32 %v7915_v23, %v6910_v22  ;;  %v6894_v53 = vld [vmem:[#allocation17 + $0x1d8] sm:$0xf0] }
 0x20a   :  { %4604 = vmatpush.bf16.msra.mxu0 %v6793_v1  ;;  %v3548_v56 = vpop.f32.mrf.mxu0  ;;  %v6989_v40 = vor.u32 %v7937_v41, %v6988_v29  ;;  %v7245_v1 = vor.u32 %v8001_v45, %v7244_v52  ;;  %v7893_v9 = vld [vmem:[#allocation17 + $0x134] sm:$0xf0]  ;;  %v6796_v41 = vld [vmem:[#allocation17 + $0x108] sm:$0xf]  ;;  %v7899_v22 = vld [vmem:[#allocation17 + $0x16c] sm:$0xf] }
 0x20b   :  { %4618 = vmatpush.bf16.msra.mxu1 %v6921_v28  ;;  %v3549_v3 = vadd.f32 %v3548_v56, %v8753_v27  ;;  %v3562_v47 = vpop.f32.mrf.mxu1  ;;  %v6972_v28 = vld [vmem:[#allocation17 + $0x268] sm:$0xf]  ;;  %v7989_v29 = vld [vmem:[#allocation17 + $0x434] sm:$0xf0]  ;;  %v6813_v45 = vor.u32 %v7893_v9, %v6812_v59  ;;  %v8007_v59 = vld [vmem:[#allocation17 + $0x4cc] sm:$0xf] }
 0x20c   :  { %4632 = vmatpush.bf16.msra.mxu2 %v7049_v54  ;;  %v7228_v54 = vld [vmem:[#allocation17 + $0x468] sm:$0xf]  ;;  %v6973_v27 = vor.u32 %v7933_v13, %v6972_v28  ;;  %v7278_v9 = vld [vmem:[#allocation17 + $0x4d8] sm:$0xf0] }
 0x20d   :  { %4646 = vmatpush.bf16.msra.mxu3 %v7177_v61  ;;  %4605 = vmatmul.bf16.vlgmr.msra.gmra.mxu0 %v8871_v30  ;;  %v7997_v61 = vld [vmem:[#allocation17 + $0x474] sm:$0xf0]  ;;  %v3563_v5 = vadd.f32 %v3562_v47, %v3549_v3 }
 0x20e   :  { %4653 = vmatpush.bf16.msrb.mxu0 %v6909_v39  ;;  %4619 = vmatmul.bf16.vlgmr.msra.gmra.mxu1 %v8872_v42  ;;  %v6845_v39 = vor.u32 %v7901_v43, %v6844_v55  ;;  %v7921_v3 = vld [vmem:[#allocation17 + $0x214] sm:$0xf0] }
 0x20f   :  { %4667 = vmatpush.bf16.msrb.mxu1 %v7037_v62  ;;  %4633 = vmatmul.bf16.vlgmr.msra.gmra.mxu2 %v8517_v8  ;;  %v3710_v62 = vperm.slane %v8775_v44, 1  ;;  %v7953_v43 = vld [vmem:[#allocation17 + $0x314] sm:$0xf0]  ;;  %v6925_v14 = vor.u32 %v7921_v3, %v6924_v49  ;;  %v7935_v3 = vld [vmem:[#allocation17 + $0x28c] sm:$0xf] }
 0x210   :  { %4681 = vmatpush.bf16.msrb.mxu2 %v7165_v24  ;;  %4647 = vmatmul.bf16.vlgmr.msra.gmra.mxu3 %v8521_v10  ;;  %v7229_v24 = vor.u32 %v7997_v61, %v7228_v54  ;;  %v7947_v54 = vld [vmem:[#allocation17 + $0x2ec] sm:$0xf]  ;;  %v7038_v61 = vld [vmem:[#allocation17 + $0x2f8] sm:$0xf0] }
 0x211   :  { %4695 = vmatpush.bf16.msrb.mxu3 %v7293_v6 }
 0x212   :  { %4654 = vmatpush.bf16.msrb.mxu0 %v6893_v16  ;;  %v3576_v6 = vpop.f32.mrf.mxu2  ;;  %v7212_v16 = vld [vmem:[#allocation17 + $0x448] sm:$0xf]  ;;  %v3550_v51 = vpop.f32.mrf.mxu0 }
 0x213   :  { %4668 = vmatpush.bf16.msrb.mxu1 %v7021_v4  ;;  %v3577_v17 = vadd.f32 %v3576_v6, %v3563_v5  ;;  %v3590_v21 = vpop.f32.mrf.mxu3  ;;  %v7993_v4 = vld [vmem:[#allocation17 + $0x454] sm:$0xf0]  ;;  %v3564_v38 = vpop.f32.mrf.mxu1  ;;  %v7979_v5 = vld [vmem:[#allocation17 + $0x3ec] sm:$0xf] }
 0x214   :  { %4682 = vmatpush.bf16.msrb.mxu2 %v7149_v34  ;;  %v3551_v34 = vadd.f32 %v3550_v51, %v8761_v19  ;;  %v7213_v60 = vor.u32 %v7993_v4, %v7212_v16  ;;  %v7889_v19 = vld [vmem:[#allocation17 + $0x114] sm:$0xf0]  ;;  %v7943_v16 = vld [vmem:[#allocation17 + $0x2cc] sm:$0xf]  ;;  %v7169_v4 = vor.u32 %v7979_v5, %v7166_v18  ;;  %v7102_v18 = vld [vmem:[#allocation17 + $0x378] sm:$0xf0] }
 0x215   :  { %4696 = vmatpush.bf16.msrb.mxu3 %v7277_v35  ;;  %v3591_v35 = vadd.f32 %v3590_v21, %v3577_v17  ;;  %v7041_v17 = vor.u32 %v7947_v54, %v7038_v61  ;;  %v7911_v21 = vld [vmem:[#allocation17 + $0x1cc] sm:$0xf]  ;;  %v6846_v54 = vld [vmem:[#allocation17 + $0x178] sm:$0xf0] }
 0x216   :  { %4655 = vmatpush.bf16.msrb.mxu0 %v6877_v15  ;;  %v6940_v15 = vld [vmem:[#allocation17 + $0x228] sm:$0xf]  ;;  %v3565_v52 = vadd.f32 %v3564_v38, %v3551_v34  ;;  %v7975_v34 = vld [vmem:[#allocation17 + $0x3cc] sm:$0xf]  ;;  %v6878_v38 = vld [vmem:[#allocation17 + $0x1b8] sm:$0xf0] }
 0x217   :  { %4669 = vmatpush.bf16.msrb.mxu1 %v7005_v7  ;;  %v7925_v7 = vld [vmem:[#allocation17 + $0x234] sm:$0xf0]  ;;  %v3718_v26 = vadd.f32 %v3710_v62, %v3591_v35  ;;  %v7150_v35 = vld [vmem:[#allocation17 + $0x3d8] sm:$0xf0] }
 0x218   :  { %4683 = vmatpush.bf16.msrb.mxu2 %v7133_v58  ;;  %v7957_v58 = vld [vmem:[#allocation17 + $0x334] sm:$0xf0]  ;;  %v6941_v56 = vor.u32 %v7925_v7, %v6940_v15  ;;  %v7153_v15 = vor.u32 %v7975_v34, %v7150_v35  ;;  %v7281_v7 = vor.u32 %v8007_v59, %v7278_v9  ;;  %v7991_v59 = vld [vmem:[#allocation17 + $0x44c] sm:$0xf]  ;;  %v7214_v9 = vld [vmem:[#allocation17 + $0x458] sm:$0xf0] }
 0x219   :  { %4697 = vmatpush.bf16.msrb.mxu3 %v7261_v12  ;;  %v7196_v12 = vld [vmem:[#allocation17 + $0x428] sm:$0xf]  ;;  %v3726_v50 = vmax.f32 %v3718_v26, 0.0  ;;  %v7006_v26 = vld [vmem:[#allocation17 + $0x2b8] sm:$0xf0] }
 0x21a   :  { %4656 = vmatpush.bf16.msrb.mxu0 %v6861_v57  ;;  %v7052_v57 = vld [vmem:[#allocation17 + $0x308] sm:$0xf]  ;;  %v7197_v47 = vor.u32 %v7989_v29, %v7196_v12  ;;  %v3578_v55 = vpop.f32.mrf.mxu2  ;;  %v7134_v12 = vld [vmem:[#allocation17 + $0x3b8] sm:$0xf0]  ;;  %v8003_v29 = vld [vmem:[#allocation17 + $0x4ac] sm:$0xf] }
 0x21b   :  { %4670 = vmatpush.bf16.msrb.mxu1 %v6989_v40  ;;  %v7069_v40 = vor.u32 %v7957_v58, %v7068_v36  ;;  %3734 = vst [vmem:[#allocation19 + $0x8] sm:$0xff] %v3726_v50  ;;  %v3579_v28 = vadd.f32 %v3578_v55, %v3565_v52  ;;  %v3592_v13 = vpop.f32.mrf.mxu3  ;;  %v7053_v6 = vor.u32 %v7953_v43, %v7052_v57  ;;  %v7939_v36 = vld [vmem:[#allocation17 + $0x2ac] sm:$0xf]  ;;  %v6862_v52 = vld [vmem:[#allocation17 + $0x198] sm:$0xf0] }
 0x21c   :  { %4684 = vmatpush.bf16.msrb.mxu2 %v7117_v0  ;;  %v7180_v0 = vld [vmem:[#allocation17 + $0x408] sm:$0xf]  ;;  %v7971_v58 = vld [vmem:[#allocation17 + $0x3ac] sm:$0xf]  ;;  %v7009_v49 = vor.u32 %v7939_v36, %v7006_v26  ;;  %v6990_v57 = vld [vmem:[#allocation17 + $0x298] sm:$0xf0] }
 0x21d   :  { %4698 = vmatpush.bf16.msrb.mxu3 %v7245_v1  ;;  %v7985_v1 = vld [vmem:[#allocation17 + $0x414] sm:$0xf0]  ;;  %v7903_v50 = vld [vmem:[#allocation17 + $0x18c] sm:$0xf]  ;;  %v7246_v43 = vld [vmem:[#allocation17 + $0x498] sm:$0xf0] }
 0x21e   :  { %4657 = vmatpush.bf16.msrb.mxu0 %v6845_v39  ;;  %v3593_v39 = vadd.f32 %v3592_v13, %v3579_v28  ;;  %v7181_v63 = vor.u32 %v7985_v1, %v7180_v0  ;;  %v7999_v55 = vld [vmem:[#allocation17 + $0x48c] sm:$0xf]  ;;  %v6865_v28 = vor.u32 %v7903_v50, %v6862_v52  ;;  %v6993_v13 = vor.u32 %v7935_v3, %v6990_v57  ;;  %v6814_v36 = vld [vmem:[#allocation17 + $0x138] sm:$0xf0] }
 0x21f   :  { %4671 = vmatpush.bf16.msrb.mxu1 %v6973_v27  ;;  %v6797_v27 = vor.u32 %v7889_v19, %v6796_v41  ;;  %v7262_v41 = vld [vmem:[#allocation17 + $0x4b8] sm:$0xf0]  ;;  %v7249_v5 = vor.u32 %v7999_v55, %v7246_v43  ;;  %v7987_v52 = vld [vmem:[#allocation17 + $0x42c] sm:$0xf] }
 0x220   :  { %4685 = vmatpush.bf16.msrb.mxu2 %v7101_v2  ;;  %v8011_v2 = vld [vmem:[#allocation17 + $0x4ec] sm:$0xf]  ;;  %v3722_v25 = vadd.f32 %v3710_v62, %v3593_v39  ;;  %v6897_v62 = vor.u32 %v7911_v21, %v6894_v53  ;;  %v7070_v50 = vld [vmem:[#allocation17 + $0x338] sm:$0xf0] }
 0x221   :  { %4699 = vmatpush.bf16.msrb.mxu3 %v7229_v24  ;;  %v7294_v24 = vld [vmem:[#allocation17 + $0x4f8] sm:$0xf0]  ;;  %v7931_v39 = vld [vmem:[#allocation17 + $0x26c] sm:$0xf] }
 0x222   :  { %4658 = vmatpush.bf16.msrb.mxu0 %v6829_v32  ;;  %v7297_v51 = vor.u32 %v8011_v2, %v7294_v24  ;;  %v7022_v32 = vld [vmem:[#allocation17 + $0x2d8] sm:$0xf0]  ;;  %v7995_v2 = vld [vmem:[#allocation17 + $0x46c] sm:$0xf] }
 0x223   :  { %4672 = vmatpush.bf16.msrb.mxu1 %v6957_v31  ;;  %v3730_v31 = vmax.f32 %v3722_v25, 0.0  ;;  %v7230_v24 = vld [vmem:[#allocation17 + $0x478] sm:$0xf0]  ;;  %v3711_v25 = vperm.slane %v8775_v44, 2  ;;  %v7919_v3 = vld [vmem:[#allocation17 + $0x20c] sm:$0xf] }
 0x224   :  { %4686 = vmatpush.bf16.msrb.mxu2 %v7085_v37  ;;  %v7025_v37 = vor.u32 %v7943_v16, %v7022_v32  ;;  %v7233_v53 = vor.u32 %v7995_v2, %v7230_v24  ;;  %v7959_v32 = vld [vmem:[#allocation17 + $0x34c] sm:$0xf]  ;;  %v6926_v43 = vld [vmem:[#allocation17 + $0x218] sm:$0xf0]  ;;  %v7420_v2 = vld [vmem:[#allocation17 + $0xe8] sm:$0xf] }
 0x225   :  { %4700 = vmatpush.bf16.msrb.mxu3 %v7213_v60  ;;  %3738 = vst [vmem:[#allocation19 + $0x28] sm:$0xff] %v3730_v31  ;;  %v7907_v60 = vld [vmem:[#allocation17 + $0x1ac] sm:$0xf]  ;;  %v7086_v31 = vld [vmem:[#allocation17 + $0x358] sm:$0xf0] }
 0x226   :  { %4659 = vmatpush.bf16.msrb.mxu0 %v6813_v45  ;;  %v6881_v19 = vor.u32 %v7907_v60, %v6878_v38  ;;  %v7137_v45 = vor.u32 %v7971_v58, %v7134_v12  ;;  %v7089_v26 = vor.u32 %v7959_v32, %v7086_v31  ;;  %v7217_v58 = vor.u32 %v7991_v59, %v7214_v9  ;;  %v7396_v32 = vld [vmem:[#allocation17 + $0xc0] sm:$0xf]  ;;  %v7398_v9 = vld [vmem:[#allocation17 + $0xd0] sm:$0xf0] }
 0x227   :  { %4673 = vmatpush.bf16.msrb.mxu1 %v6941_v56  ;;  %v7265_v56 = vor.u32 %v8003_v29, %v7262_v41  ;;  %v7923_v29 = vld [vmem:[#allocation17 + $0x22c] sm:$0xf]  ;;  %v6942_v41 = vld [vmem:[#allocation17 + $0x238] sm:$0xf0] }
 0x228   :  { %4687 = vmatpush.bf16.msrb.mxu2 %v7069_v40  ;;  %v7967_v40 = vld [vmem:[#allocation17 + $0x38c] sm:$0xf]  ;;  %v6945_v55 = vor.u32 %v7923_v29, %v6942_v41  ;;  %v7874_v29 = vld [vmem:[#allocation17 + $0xa4] sm:$0xf]  ;;  %v7382_v41 = vld [vmem:[#allocation17 + $0xb0] sm:$0xf0] }
 0x229   :  { %4701 = vmatpush.bf16.msrb.mxu3 %v7197_v47  ;;  %v7118_v47 = vld [vmem:[#allocation17 + $0x398] sm:$0xf0] }
 0x22a   :  { %4660 = vmatpush.bf16.msrb.mxu0 %v6797_v27  ;;  %v3604_v0 = vpop.f32.mrf.mxu0  ;;  %v7121_v61 = vor.u32 %v7967_v40, %v7118_v47  ;;  %v6974_v27 = vld [vmem:[#allocation17 + $0x278] sm:$0xf0] }
 0x22b   :  { %4674 = vmatpush.bf16.msrb.mxu1 %v6925_v14  ;;  %v3605_v1 = vadd.f32 %v3604_v0, %v8755_v11  ;;  %v3618_v23 = vpop.f32.mrf.mxu1  ;;  %v7963_v14 = vld [vmem:[#allocation17 + $0x36c] sm:$0xf]  ;;  %v6977_v11 = vor.u32 %v7931_v39, %v6974_v27  ;;  %v7412_v39 = vld [vmem:[#allocation17 + $0xe0] sm:$0xf]  ;;  %v7884_v27 = vld [vmem:[#allocation17 + $0xec] sm:$0xf0] }
 0x22c   :  { %4688 = vmatpush.bf16.msrb.mxu2 %v7053_v6  ;;  %v7105_v21 = vor.u32 %v7963_v14, %v7102_v18  ;;  %v7951_v0 = vld [vmem:[#allocation17 + $0x30c] sm:$0xf]  ;;  %v7882_v14 = vld [vmem:[#allocation17 + $0xe4] sm:$0xf]  ;;  %v7414_v18 = vld [vmem:[#allocation17 + $0xf0] sm:$0xf0] }
 0x22d   :  { %4702 = vmatpush.bf16.msrb.mxu3 %v7181_v63  ;;  %4661 = vmatmul.bf16.vlgmr.msrb.gmra.mxu0 %v8871_v30  ;;  %v3619_v6 = vadd.f32 %v3618_v23, %v3605_v1  ;;  %v6849_v63 = vor.u32 %v7899_v22, %v6846_v54  ;;  %v7054_v23 = vld [vmem:[#allocation17 + $0x318] sm:$0xf0]  ;;  %v7983_v22 = vld [vmem:[#allocation17 + $0x40c] sm:$0xf] }
 0x22e   :  { %4709 = vmatpush.bf16.msra.mxu0 %v6913_v20  ;;  %4675 = vmatmul.bf16.vlgmr.msrb.gmra.mxu1 %v8872_v42  ;;  %v7895_v20 = vld [vmem:[#allocation17 + $0x14c] sm:$0xf]  ;;  %v7182_v54 = vld [vmem:[#allocation17 + $0x418] sm:$0xf0] }
 0x22f   :  { %4723 = vmatpush.bf16.msra.mxu1 %v7041_v17  ;;  %4689 = vmatmul.bf16.vlgmr.msrb.gmra.mxu2 %v8517_v8  ;;  %v6830_v17 = vld [vmem:[#allocation17 + $0x158] sm:$0xf0] }
 0x230   :  { %4737 = vmatpush.bf16.msra.mxu2 %v7169_v4  ;;  %4703 = vmatmul.bf16.vlgmr.msrb.gmra.mxu3 %v8521_v10  ;;  %v7927_v4 = vld [vmem:[#allocation17 + $0x24c] sm:$0xf] }
 0x231   :  { %4751 = vmatpush.bf16.msra.mxu3 %v7297_v51  ;;  %v6958_v51 = vld [vmem:[#allocation17 + $0x258] sm:$0xf0] }
 0x232   :  { %4710 = vmatpush.bf16.msra.mxu0 %v6897_v62  ;;  %v3632_v16 = vpop.f32.mrf.mxu2  ;;  %v3606_v62 = vpop.f32.mrf.mxu0 }
 0x233   :  { %4724 = vmatpush.bf16.msra.mxu1 %v7025_v37  ;;  %v3633_v34 = vadd.f32 %v3632_v16, %v3619_v6  ;;  %v3646_v35 = vpop.f32.mrf.mxu3  ;;  %v6833_v37 = vor.u32 %v7895_v20, %v6830_v17  ;;  %v3607_v60 = vadd.f32 %v3606_v62, %v8767_v33  ;;  %v3620_v12 = vpop.f32.mrf.mxu1  ;;  %v6798_v33 = vld [vmem:[#allocation17 + $0x118] sm:$0xf0]  ;;  %v7883_v20 = vld [vmem:[#allocation17 + $0xec] sm:$0xf]  ;;  %v7404_v62 = vld [vmem:[#allocation17 + $0xc8] sm:$0xf] }
 0x234   :  { %4738 = vmatpush.bf16.msra.mxu2 %v7153_v15  ;;  %v6961_v15 = vor.u32 %v7927_v4, %v6958_v51  ;;  %v7422_v17 = vld [vmem:[#allocation17 + $0xf8] sm:$0xf0]  ;;  %v7413_v4 = vor.u32 %v7884_v27, %v7412_v39  ;;  %v7417_v51 = vor.u32 %v7882_v14, %v7414_v18  ;;  %v7350_v39 = vld [vmem:[#allocation17 + $0x70] sm:$0xf0]  ;;  %v7356_v27 = vld [vmem:[#allocation17 + $0x68] sm:$0xf] }
 0x235   :  { %4752 = vmatpush.bf16.msra.mxu3 %v7281_v7  ;;  %v3647_v38 = vadd.f32 %v3646_v35, %v3633_v34  ;;  %v7891_v7 = vld [vmem:[#allocation17 + $0x12c] sm:$0xf]  ;;  %v3621_v40 = vadd.f32 %v3620_v12, %v3607_v60  ;;  %v7880_v34 = vld [vmem:[#allocation17 + $0xcc] sm:$0xf0]  ;;  %v7878_v35 = vld [vmem:[#allocation17 + $0xc4] sm:$0xf]  ;;  %v7425_v59 = vor.u32 %v7883_v20, %v7422_v17 }
 0x236   :  { %4711 = vmatpush.bf16.msra.mxu0 %v6881_v19  ;;  %v7955_v19 = vld [vmem:[#allocation17 + $0x32c] sm:$0xf]  ;;  %v6817_v47 = vor.u32 %v7891_v7, %v6814_v36  ;;  %v7401_v7 = vor.u32 %v7878_v35, %v7398_v9  ;;  %v7380_v36 = vld [vmem:[#allocation17 + $0xa0] sm:$0xf]  ;;  %v7869_v14 = vld [vmem:[#allocation17 + $0x74] sm:$0xf0] }
 0x237   :  { %4725 = vmatpush.bf16.msra.mxu1 %v7009_v49  ;;  %v3719_v49 = vadd.f32 %v3711_v25, %v3647_v38  ;;  %v7073_v1 = vor.u32 %v7955_v19, %v7070_v50  ;;  %v7879_v38 = vld [vmem:[#allocation17 + $0xcc] sm:$0xf]  ;;  %v7388_v19 = vld [vmem:[#allocation17 + $0xa8] sm:$0xf]  ;;  %v7864_v20 = vld [vmem:[#allocation17 + $0x4c] sm:$0xf0]  ;;  %v7357_v17 = vor.u32 %v7869_v14, %v7356_v27 }
 0x238   :  { %4739 = vmatpush.bf16.msra.mxu2 %v7137_v45  ;;  %v7198_v45 = vld [vmem:[#allocation17 + $0x438] sm:$0xf0]  ;;  %v7875_v50 = vld [vmem:[#allocation17 + $0xac] sm:$0xf]  ;;  %v7865_v35 = vld [vmem:[#allocation17 + $0x54] sm:$0xf0] }
 0x239   :  { %4753 = vmatpush.bf16.msra.mxu3 %v7265_v56  ;;  %v7887_v56 = vld [vmem:[#allocation17 + $0x10c] sm:$0xf]  ;;  %v3727_v57 = vmax.f32 %v3719_v49, 0.0  ;;  %v7877_v49 = vld [vmem:[#allocation17 + $0xb4] sm:$0xf0] }
 0x23a   :  { %4712 = vmatpush.bf16.msra.mxu0 %v6865_v28  ;;  %v7201_v28 = vor.u32 %v7987_v52, %v7198_v45  ;;  %v6801_v6 = vor.u32 %v7887_v56, %v6798_v33  ;;  %v7390_v52 = vld [vmem:[#allocation17 + $0xb8] sm:$0xf0]  ;;  %v7385_v56 = vor.u32 %v7874_v29, %v7382_v41  ;;  %v7364_v33 = vld [vmem:[#allocation17 + $0x80] sm:$0xf]  ;;  %v7867_v18 = vld [vmem:[#allocation17 + $0x6c] sm:$0xf] }
 0x23b   :  { %4726 = vmatpush.bf16.msra.mxu1 %v6993_v13  ;;  %v3634_v13 = vpop.f32.mrf.mxu2  ;;  %3735 = vst [vmem:[#allocation19 + $0x10] sm:$0xff] %v3727_v57  ;;  %v7389_v57 = vor.u32 %v7877_v49, %v7388_v19  ;;  %v7324_v29 = vld [vmem:[#allocation17 + $0x28] sm:$0xf]  ;;  %v7861_v19 = vld [vmem:[#allocation17 + $0x34] sm:$0xf0] }
 0x23c   :  { %4740 = vmatpush.bf16.msra.mxu2 %v7121_v61  ;;  %v3635_v61 = vadd.f32 %v3634_v13, %v3621_v40  ;;  %v7393_v40 = vor.u32 %v7875_v50, %v7390_v52  ;;  %v7859_v49 = vld [vmem:[#allocation17 + $0x2c] sm:$0xf]  ;;  %v7326_v50 = vld [vmem:[#allocation17 + $0x38] sm:$0xf0]  ;;  %v7300_v52 = vld [vmem:[#allocation17] sm:$0xf] }
 0x23d   :  { %4754 = vmatpush.bf16.msra.mxu3 %v7249_v5  ;;  %v3648_v5 = vpop.f32.mrf.mxu3 }
 0x23e   :  { %4713 = vmatpush.bf16.msra.mxu0 %v6849_v63  ;;  %v3649_v24 = vadd.f32 %v3648_v5, %v3635_v61  ;;  %v6929_v63 = vor.u32 %v7919_v3, %v6926_v43  ;;  %v7872_v3 = vld [vmem:[#allocation17 + $0x8c] sm:$0xf0]  ;;  %v7871_v43 = vld [vmem:[#allocation17 + $0x8c] sm:$0xf]  ;;  %v7866_v5 = vld [vmem:[#allocation17 + $0x64] sm:$0xf] }
 0x23f   :  { %4727 = vmatpush.bf16.msra.mxu1 %v6977_v11  ;;  %v7885_v11 = vld [vmem:[#allocation17 + $0xf4] sm:$0xf0] }
 0x240   :  { %4741 = vmatpush.bf16.msra.mxu2 %v7105_v21  ;;  %v7057_v21 = vor.u32 %v7951_v0, %v7054_v23  ;;  %v3723_v16 = vadd.f32 %v3711_v25, %v3649_v24  ;;  %v7421_v31 = vor.u32 %v7885_v11, %v7420_v2  ;;  %v7397_v25 = vor.u32 %v7880_v34, %v7396_v32  ;;  %v7374_v0 = vld [vmem:[#allocation17 + $0x98] sm:$0xf0]  ;;  %v7348_v23 = vld [vmem:[#allocation17 + $0x60] sm:$0xf] }
 0x241   :  { %4755 = vmatpush.bf16.msra.mxu3 %v7233_v53  ;;  %v7185_v53 = vor.u32 %v7983_v22, %v7182_v54  ;;  %v7868_v22 = vld [vmem:[#allocation17 + $0x6c] sm:$0xf0]  ;;  %v7377_v61 = vor.u32 %v7871_v43, %v7374_v0  ;;  %v7358_v2 = vld [vmem:[#allocation17 + $0x78] sm:$0xf0]  ;;  %v7332_v11 = vld [vmem:[#allocation17 + $0x40] sm:$0xf] }
 0x242   :  { %4714 = vmatpush.bf16.msra.mxu0 %v6833_v37  ;;  %v7881_v37 = vld [vmem:[#allocation17 + $0xd4] sm:$0xf0]  ;;  %v3731_v60 = vmax.f32 %v3723_v16, 0.0  ;;  %v7862_v16 = vld [vmem:[#allocation17 + $0x44] sm:$0xf] }
 0x243   :  { %4728 = vmatpush.bf16.msra.mxu1 %v6961_v15  ;;  %v7406_v15 = vld [vmem:[#allocation17 + $0xd8] sm:$0xf0]  ;;  %v7857_v43 = vld [vmem:[#allocation17 + $0x14] sm:$0xf0] }
 0x244   :  { %4742 = vmatpush.bf16.msra.mxu2 %v7089_v26  ;;  %3739 = vst [vmem:[#allocation19 + $0x30] sm:$0xff] %v3731_v60  ;;  %v7876_v26 = vld [vmem:[#allocation17 + $0xac] sm:$0xf0]  ;;  %v7409_v12 = vor.u32 %v7879_v38, %v7406_v15  ;;  %v7316_v15 = vld [vmem:[#allocation17 + $0x20] sm:$0xf] }
 0x245   :  { %4756 = vmatpush.bf16.msra.mxu3 %v7217_v58  ;;  %v7405_v58 = vor.u32 %v7881_v37, %v7404_v62  ;;  %v7381_v45 = vor.u32 %v7876_v26, %v7380_v36  ;;  %v7333_v62 = vor.u32 %v7864_v20, %v7332_v11 }
 0x246   :  { %4715 = vmatpush.bf16.msra.mxu0 %v6817_v47  ;;  %v7366_v47 = vld [vmem:[#allocation17 + $0x90] sm:$0xf0] }
 0x247   :  { %4729 = vmatpush.bf16.msra.mxu1 %v6945_v55  ;;  %v7873_v55 = vld [vmem:[#allocation17 + $0x94] sm:$0xf0] }
 0x248   :  { %4743 = vmatpush.bf16.msra.mxu2 %v7073_v1 }
 0x249   :  { %4757 = vmatpush.bf16.msra.mxu3 %v7201_v28 }
 0x24a   :  { %4716 = vmatpush.bf16.msra.mxu0 %v6801_v6  ;;  %v3660_v1 = vpop.f32.mrf.mxu0  ;;  %v7349_v6 = vor.u32 %v7868_v22, %v7348_v23 }
 0x24b   :  { %4730 = vmatpush.bf16.msra.mxu1 %v6929_v63  ;;  %v3674_v13 = vpop.f32.mrf.mxu1  ;;  %v3712_v63 = vperm.slane %v8775_v44, 3 }
 0x24c   :  { %4744 = vmatpush.bf16.msra.mxu2 %v7057_v21  ;;  %v7361_v21 = vor.u32 %v7867_v18, %v7358_v2 }
 0x24d   :  { %4758 = vmatpush.bf16.msra.mxu3 %v7185_v53  ;;  %4717 = vmatmul.bf16.vlgmr.msra.gmra.mxu0 %v8871_v30  ;;  %v3661_v30 = vadd.f32 %v3660_v1, %v8757_v46  ;;  %v7353_v46 = vor.u32 %v7866_v5, %v7350_v39  ;;  %v8873_v39 = vld [vmem:[#allocation33_spill] sm:$0xff] }
 0x24e   :  { %4925 = vmatpush.bf16.msrb.mxu0 %v7413_v4  ;;  %4731 = vmatmul.bf16.vlgmr.msra.gmra.mxu1 %v8872_v42  ;;  %v7365_v42 = vor.u32 %v7872_v3, %v7364_v33  ;;  %v7334_v4 = vld [vmem:[#allocation17 + $0x50] sm:$0xf0]  ;;  %v7856_v3 = vld [vmem:[#allocation17 + $0xc] sm:$0xf0] }
 0x24f   :  { %4939 = vmatpush.bf16.msrb.mxu1 %v7417_v51  ;;  %4745 = vmatmul.bf16.vlgmr.msra.gmra.mxu2 %v8517_v8  ;;  %v7870_v8 = vld [vmem:[#allocation17 + $0x84] sm:$0xf]  ;;  %v3675_v24 = vadd.f32 %v3674_v13, %v3661_v30  ;;  %v7340_v51 = vld [vmem:[#allocation17 + $0x48] sm:$0xf]  ;;  %v7337_v38 = vor.u32 %v7862_v16, %v7334_v4  ;;  %v7855_v30 = vld [vmem:[#allocation17 + $0xc] sm:$0xf]  ;;  %v7301_v13 = vor.u32 %v7856_v3, %v7300_v52 }
 0x250   :  { %4953 = vmatpush.bf16.msrb.mxu2 %v7421_v31  ;;  %4759 = vmatmul.bf16.vlgmr.msra.gmra.mxu3 %v8521_v10  ;;  %v7372_v10 = vld [vmem:[#allocation17 + $0x88] sm:$0xf]  ;;  %v7369_v28 = vor.u32 %v7870_v8, %v7366_v47  ;;  %v7863_v31 = vld [vmem:[#allocation17 + $0x4c] sm:$0xf]  ;;  %v7329_v8 = vor.u32 %v7859_v49, %v7326_v50 }
 0x251   :  { %4967 = vmatpush.bf16.msrb.mxu3 %v7425_v59  ;;  %v7373_v54 = vor.u32 %v7873_v55, %v7372_v10  ;;  %v7342_v59 = vld [vmem:[#allocation17 + $0x58] sm:$0xf0]  ;;  %v7302_v10 = vld [vmem:[#allocation17 + $0x10] sm:$0xf0]  ;;  %v7308_v55 = vld [vmem:[#allocation17 + $0x8] sm:$0xf] }
 0x252   :  { %4926 = vmatpush.bf16.msrb.mxu0 %v7397_v25  ;;  %v3688_v53 = vpop.f32.mrf.mxu2  ;;  %v3662_v9 = vpop.f32.mrf.mxu0  ;;  %v7860_v25 = vld [vmem:[#allocation17 + $0x2c] sm:$0xf0]  ;;  %v7345_v36 = vor.u32 %v7863_v31, %v7342_v59  ;;  %v7309_v22 = vor.u32 %v7857_v43, %v7308_v55 }
 0x253   :  { %4940 = vmatpush.bf16.msrb.mxu1 %v7401_v7  ;;  %v3689_v32 = vadd.f32 %v3688_v53, %v3675_v24  ;;  %v3702_v34 = vpop.f32.mrf.mxu3  ;;  %v3663_v37 = vadd.f32 %v3662_v9, %v8769_v48  ;;  %v7341_v7 = vor.u32 %v7865_v35, %v7340_v51  ;;  %v3676_v26 = vpop.f32.mrf.mxu1 }
 0x254   :  { %4954 = vmatpush.bf16.msrb.mxu2 %v7405_v58  ;;  %v7858_v58 = vld [vmem:[#allocation17 + $0x24] sm:$0xf] }
 0x255   :  { %4968 = vmatpush.bf16.msrb.mxu3 %v7409_v12  ;;  %v3703_v60 = vadd.f32 %v3702_v34, %v3689_v32  ;;  %v7318_v12 = vld [vmem:[#allocation17 + $0x30] sm:$0xf0] }
 0x256   :  { %4927 = vmatpush.bf16.msrb.mxu0 %v7381_v45  ;;  %v3677_v45 = vadd.f32 %v3676_v26, %v3663_v37  ;;  %v7321_v33 = vor.u32 %v7858_v58, %v7318_v12 }
 0x257   :  { %4941 = vmatpush.bf16.msrb.mxu1 %v7385_v56  ;;  %v3720_v41 = vadd.f32 %v3712_v63, %v3703_v60  ;;  %v7317_v56 = vor.u32 %v7860_v25, %v7316_v15 }
 0x258   :  { %4955 = vmatpush.bf16.msrb.mxu2 %v7389_v57  ;;  %v7854_v57 = vld [vmem:[#allocation17 + $0x4] sm:$0xf] }
 0x259   :  { %4969 = vmatpush.bf16.msrb.mxu3 %v7393_v40  ;;  %v3728_v48 = vmax.f32 %v3720_v41, 0.0  ;;  %v7325_v40 = vor.u32 %v7861_v19, %v7324_v29  ;;  %v7305_v23 = vor.u32 %v7854_v57, %v7302_v10  ;;  %v8835_v29 = vld [vmem:[%s8858_s11] sm:$0xf]  ;;  %s8381_s11 = smov [#allocation22]  }
 0x25a   :  { %4928 = vmatpush.bf16.msrb.mxu0 %v7365_v42  ;;  %v3690_v47 = vpop.f32.mrf.mxu2  ;;  %v7310_v42 = vld [vmem:[#allocation17 + $0x18] sm:$0xf0]  ;;  %v4984_v3 = vperm.slane %v8835_v29, 1  ;;  %s5045_s17 = sshll.u32 %s8381_s11, 4  ;;  %s5046_s17 = int_to_ptr.vmem [resolvable:$true] %s5045_s17 }
 0x25b   :  { %4942 = vmatpush.bf16.msrb.mxu1 %v7369_v28  ;;  %3736 = vst [vmem:[#allocation19 + $0x18] sm:$0xff] %v3728_v48  ;;  %v3691_v0 = vadd.f32 %v3690_v47, %v3677_v45  ;;  %v3704_v1 = vpop.f32.mrf.mxu3 }
 0x25c   :  { %4956 = vmatpush.bf16.msrb.mxu2 %v7373_v54  ;;  %v7313_v54 = vor.u32 %v7855_v30, %v7310_v42 }
 0x25d   :  { %4970 = vmatpush.bf16.msrb.mxu3 %v7377_v61  ;;  %v3705_v28 = vadd.f32 %v3704_v1, %v3691_v0 }
 0x25e   :  { %4929 = vmatpush.bf16.msrb.mxu0 %v7349_v6 }
 0x25f   :  { %4943 = vmatpush.bf16.msrb.mxu1 %v7353_v46  ;;  %v3724_v61 = vadd.f32 %v3712_v63, %v3705_v28 }
 0x260   :  { %4957 = vmatpush.bf16.msrb.mxu2 %v7357_v17 }
 0x261   :  { %4971 = vmatpush.bf16.msrb.mxu3 %v7361_v21  ;;  %v3732_v5 = vmax.f32 %v3724_v61, 0.0  ;;  %v4985_v61 = vperm.slane %v8835_v29, 2 }
 0x262   :  { %4930 = vmatpush.bf16.msrb.mxu0 %v7333_v62 }
 0x263   :  { %4944 = vmatpush.bf16.msrb.mxu1 %v7337_v38  ;;  %3740 = vst [vmem:[#allocation19 + $0x38] sm:$0xff] %v3732_v5  ;;  %v4986_v5 = vperm.slane %v8835_v29, 3 }
 0x264   :  { %4958 = vmatpush.bf16.msrb.mxu2 %v7341_v7  ;;  %5027 = dma.vmem_to_hbm [thread:$0]  %s5020_s15, 1024, %s5022_s16, [#allocation4], %s8378_s29, %s8378_s29, %s8379_s2  }
 0x265   :  { %4972 = vmatpush.bf16.msrb.mxu3 %v7345_v36 }
 0x266   :  { %4931 = vmatpush.bf16.msrb.mxu0 %v7317_v56 }
 0x267   :  { %4945 = vmatpush.bf16.msrb.mxu1 %v7321_v33  ;;  %v4983_v33 = vperm.slane %v8835_v29, 0 }
 0x268   :  { %4959 = vmatpush.bf16.msrb.mxu2 %v7325_v40 }
 0x269   :  { %4973 = vmatpush.bf16.msrb.mxu3 %v7329_v8 }
 0x26a   :  { %4932 = vmatpush.bf16.msrb.mxu0 %v7301_v13  ;;  %v4550_v44 = vpop.f32.mrf.mxu0 }
 0x26b   :  { %4946 = vmatpush.bf16.msrb.mxu1 %v7305_v23  ;;  %v4564_v27 = vpop.f32.mrf.mxu1 }
 0x26c   :  { %4960 = vmatpush.bf16.msrb.mxu2 %v7309_v22  ;;  %v4565_v25 = vadd.f32 %v4564_v27, %v4550_v44 }
 0x26d   :  { %4974 = vmatpush.bf16.msrb.mxu3 %v7313_v54  ;;  %4933 = vmatmul.bf16.vlgmr.msrb.gmra.mxu0 %v8873_v39 }
 0x26e   :  { %4947 = vmatmul.bf16.vlgmr.msrb.gmra.mxu1 %v8873_v39 }
 0x26f   :  { %4961 = vmatmul.bf16.vlgmr.msrb.gmra.mxu2 %v8873_v39 }
 0x270   :  { %4975 = vmatmul.bf16.vlgmr.msrb.gmra.mxu3 %v8873_v39 }
 0x272   :  { %v4578_v14 = vpop.f32.mrf.mxu2  ;;  %v4552_v2 = vpop.f32.mrf.mxu0 }
 0x273   :  { %v4592_v18 = vpop.f32.mrf.mxu3  ;;  %v4566_v24 = vpop.f32.mrf.mxu1  ;;  %v4579_v58 = vadd.f32 %v4578_v14, %v4565_v25 }
 0x274   :  { %v4567_v49 = vadd.f32 %v4566_v24, %v4552_v2 }
 0x275   :  { %v4593_v19 = vadd.f32 %v4592_v18, %v4579_v58 }
 0x27a   :  { %v4580_v6 = vpop.f32.mrf.mxu2 }
 0x27b   :  { %v4594_v46 = vpop.f32.mrf.mxu3  ;;  %v4581_v43 = vadd.f32 %v4580_v6, %v4567_v49 }
 0x27d   :  { %v4595_v39 = vadd.f32 %v4594_v46, %v4581_v43 }
 0x28a   :  { %v4606_v63 = vpop.f32.mrf.mxu0 }
 0x28b   :  { %v4620_v11 = vpop.f32.mrf.mxu1 }
 0x28c   :  { %v4621_v7 = vadd.f32 %v4620_v11, %v4606_v63 }
 0x292   :  { %v4634_v20 = vpop.f32.mrf.mxu2  ;;  %v4608_v21 = vpop.f32.mrf.mxu0 }
 0x293   :  { %v4648_v17 = vpop.f32.mrf.mxu3  ;;  %v4622_v53 = vpop.f32.mrf.mxu1  ;;  %v4635_v12 = vadd.f32 %v4634_v20, %v4621_v7 }
 0x294   :  { %v4623_v48 = vadd.f32 %v4622_v53, %v4608_v21 }
 0x295   :  { %v4649_v52 = vadd.f32 %v4648_v17, %v4635_v12 }
 0x29a   :  { %v4636_v16 = vpop.f32.mrf.mxu2 }
 0x29b   :  { %v4650_v4 = vpop.f32.mrf.mxu3  ;;  %v4637_v0 = vadd.f32 %v4636_v16, %v4623_v48 }
 0x29d   :  { %v4651_v44 = vadd.f32 %v4650_v4, %v4637_v0 }
 0x2aa   :  { %v4662_v51 = vpop.f32.mrf.mxu0 }
 0x2ab   :  { %v4676_v32 = vpop.f32.mrf.mxu1 }
 0x2ac   :  { %v4677_v41 = vadd.f32 %v4676_v32, %v4662_v51 }
 0x2b2   :  { %v4690_v34 = vpop.f32.mrf.mxu2  ;;  %v4664_v31 = vpop.f32.mrf.mxu0 }
 0x2b3   :  { %v4704_v35 = vpop.f32.mrf.mxu3  ;;  %v4678_v59 = vpop.f32.mrf.mxu1  ;;  %v4691_v8 = vadd.f32 %v4690_v34, %v4677_v41 }
 0x2b4   :  { %v4679_v28 = vadd.f32 %v4678_v59, %v4664_v31 }
 0x2b5   :  { %v4705_v42 = vadd.f32 %v4704_v35, %v4691_v8 }
 0x2ba   :  { %v4692_v9 = vpop.f32.mrf.mxu2 }
 0x2bb   :  { %v4706_v62 = vpop.f32.mrf.mxu3  ;;  %v4693_v20 = vadd.f32 %v4692_v9, %v4679_v28 }
 0x2bd   :  { %v4707_v35 = vadd.f32 %v4706_v62, %v4693_v20 }
 0x2ca   :  { %v4718_v37 = vpop.f32.mrf.mxu0 }
 0x2cb   :  { %v4732_v60 = vpop.f32.mrf.mxu1 }
 0x2cc   :  { %v4733_v50 = vadd.f32 %v4732_v60, %v4718_v37 }
 0x2d2   :  { %v4746_v38 = vpop.f32.mrf.mxu2  ;;  %v4720_v36 = vpop.f32.mrf.mxu0 }
 0x2d3   :  { %v4760_v15 = vpop.f32.mrf.mxu3  ;;  %v4734_v26 = vpop.f32.mrf.mxu1  ;;  %v4747_v55 = vadd.f32 %v4746_v38, %v4733_v50 }
 0x2d4   :  { %v4735_v54 = vadd.f32 %v4734_v26, %v4720_v36 }
 0x2d5   :  { %v4761_v22 = vadd.f32 %v4760_v15, %v4747_v55 }
 0x2da   :  { %v4748_v45 = vpop.f32.mrf.mxu2 }
 0x2db   :  { %v4762_v56 = vpop.f32.mrf.mxu3  ;;  %v4749_v17 = vadd.f32 %v4748_v45, %v4735_v54 }
 0x2dd   :  { %v4763_v31 = vadd.f32 %v4762_v56, %v4749_v17 }
 0x2ea   :  { %v4934_v57 = vpop.f32.mrf.mxu0 }
 0x2eb   :  { %v4948_v40 = vpop.f32.mrf.mxu1  ;;  %v4935_v47 = vadd.f32 %v4934_v57, %v4593_v19 }
 0x2ec   :  { %v4949_v10 = vadd.f32 %v4948_v40, %v4649_v52 }
 0x2ed   :  { %v4991_v1 = vadd.f32 %v4983_v33, %v4935_v47 }
 0x2ee   :  { %v4992_v30 = vadd.f32 %v4984_v3, %v4949_v10 }
 0x2ef   :  { %v4999_v13 = vmax.f32 %v4991_v1, 0.0 }
 0x2f0   :  { %v5000_v23 = vmax.f32 %v4992_v30, 0.0 }
 0x2f1   :  { %5007 = vst [vmem:[#allocation22] sm:$0xff] %v4999_v13 }
 0x2f2   :  { %v4962_v27 = vpop.f32.mrf.mxu2  ;;  %5008 = vst [vmem:[#allocation22 + $0x8] sm:$0xff] %v5000_v23  ;;  %v4936_v24 = vpop.f32.mrf.mxu0 }
 0x2f3   :  { %v4976_v14 = vpop.f32.mrf.mxu3  ;;  %v4963_v18 = vadd.f32 %v4962_v27, %v4705_v42  ;;  %v4950_v6 = vpop.f32.mrf.mxu1  ;;  %v4937_v63 = vadd.f32 %v4936_v24, %v4595_v39 }
 0x2f4   :  { %v4977_v2 = vadd.f32 %v4976_v14, %v4761_v22  ;;  %v4951_v11 = vadd.f32 %v4950_v6, %v4651_v44 }
 0x2f5   :  { %v4993_v21 = vadd.f32 %v4985_v61, %v4963_v18  ;;  %v4995_v16 = vadd.f32 %v4983_v33, %v4937_v63 }
 0x2f6   :  { %v4994_v53 = vadd.f32 %v4986_v5, %v4977_v2  ;;  %v4996_v51 = vadd.f32 %v4984_v3, %v4951_v11 }
 0x2f7   :  { %v5001_v32 = vmax.f32 %v4993_v21, 0.0  ;;  %v5003_v46 = vmax.f32 %v4995_v16, 0.0 }
 0x2f8   :  { %v5002_v34 = vmax.f32 %v4994_v53, 0.0  ;;  %v5004_v4 = vmax.f32 %v4996_v51, 0.0 }
 0x2f9   :  { %5009 = vst [vmem:[#allocation22 + $0x10] sm:$0xff] %v5001_v32 }
 0x2fa   :  { %5010 = vst [vmem:[#allocation22 + $0x18] sm:$0xff] %v5002_v34  ;;  %v4964_v59 = vpop.f32.mrf.mxu2 }
 0x2fb   :  { %v4978_v37 = vpop.f32.mrf.mxu3  ;;  %5011 = vst [vmem:[#allocation22 + $0x20] sm:$0xff] %v5003_v46  ;;  %v4965_v60 = vadd.f32 %v4964_v59, %v4707_v35 }
 0x2fc   :  { %v4979_v38 = vadd.f32 %v4978_v37, %v4763_v31  ;;  %5012 = vst [vmem:[#allocation22 + $0x28] sm:$0xff] %v5004_v4 }
 0x2fd   :  { %v4997_v9 = vadd.f32 %v4985_v61, %v4965_v60 }
 0x2fe   :  { %v4998_v15 = vadd.f32 %v4986_v5, %v4979_v38 }
 0x2ff   :  { %v5005_v25 = vmax.f32 %v4997_v9, 0.0 }
 0x300   :  { %v5006_v7 = vmax.f32 %v4998_v15, 0.0 }
 0x301   :  { %5013 = vst [vmem:[#allocation22 + $0x30] sm:$0xff] %v5005_v25 }
 0x302   :  { %5014 = vst [vmem:[#allocation22 + $0x38] sm:$0xff] %v5006_v7 }
 0x303   :  { %5053 = dma.vmem_to_hbm [thread:$0]  %s5046_s17, 1024, %s5048_s4, [#allocation21], %s8378_s29, %s8378_s29, %s8379_s2  }
 0x304   :  { %8359 = dma.done.wait [#allocation4], 1024  }
 0x305   :  { %8360 = vsyncadd [#allocation4], 4294966272 }
 0x306   :  { %8361 = dma.done.wait [#allocation21], 2048  }
 0x307   :  { %8362 = vsyncadd [#allocation21], 4294965248 }
 0x308   :  { %5066 = vsyncpa [#allocation3], 1 }
 0x309   :  { %5067 = vsyncpa [#allocation6], 1 }
 0x30a   :  { %5068 = vsyncpa [#allocation9], 1 }
 0x30b   :  { %5069 = vsyncpa [#allocation12], 1 }
 0x30c   :  { %5070 = vsyncpa [#allocation15], 1 }
 0x30d   :  { %5071 = vsyncpa [#allocation18], 1 }
 0x30e   :  { %5072 = vsyncpa [#allocation4], 1 }
 0x30f   :  { %5073 = vsyncpa [#allocation21], 1 }

</bundles_post_ra>
